<compile_context>
chip_gen: v7x
topology: tpu7x:2x2x1
jax: 0.10.0
libtpu: 0.0.40
codegen_flags: <defaults>
</compile_context>

<pallas_src>
import functools
import math

import jax
import jax.numpy as jnp
from jax.experimental import pallas as pl
from jax.experimental.pallas import tpu as pltpu


# ----------------------------- in-kernel helpers -----------------------------

def _layer_norm(x, gamma, beta, eps):
    """a_2 * (x - mean) / (std + eps) + b_2; std is the unbiased (N-1) estimator to match
    torch.Tensor.std() used by the homework LayerNorm. Stats from one traversal."""
    d = x.shape[-1]
    s1 = jnp.sum(x, axis=-1, keepdims=True)
    s2 = jnp.sum(x * x, axis=-1, keepdims=True)
    mean = s1 * (1.0 / d)
    var = jnp.maximum((s2 - s1 * mean) * (1.0 / (d - 1)), 0.0)
    std = jnp.sqrt(var)
    inv = pl.reciprocal(std + eps, approx=True)          # EUP slot, frees VALU
    return gamma * ((x - mean) * inv) + beta


def _mha(xq, xkv, bias, wq, bq, wk, bk, wv, bv, wo, bo, *, heads, d_k, scale, cdt):
    """Multi-head attention.

    Projections are full-width matmuls (lane-dense, full MXU width).  Heads are then
    processed one at a time via static lane slices of q/k/v (the head-major output layout
    matches PyTorch's .view(B, S, H, d_k)), so only one (Sq, Sk) score tile is live per
    head, and the head-concat + output projection is fused into a per-head
    (Sq, d_k) @ (d_k, D) accumulation — no (H, Sq, Sk)/(H, Sq, D) intermediates.
    """
    xq_c = xq.astype(cdt)
    xkv_c = xkv.astype(cdt)
    # 1/sqrt(d_k) folded into q (bias included first, exactly matching scores/sqrt(d_k)).
    q = (jnp.dot(xq_c, wq, preferred_element_type=jnp.float32) + bq) * scale
    k = jnp.dot(xkv_c, wk, preferred_element_type=jnp.float32) + bk
    v = jnp.dot(xkv_c, wv, preferred_element_type=jnp.float32) + bv

    out = jnp.zeros((xq.shape[0], wo.shape[1]), jnp.float32)
    # TODO(synk): at production Sq/Sk (>=1k) additionally tile the KV axis flash-style
    # (running max/sum) so the (Sq, Sk) tile itself is bounded.
    for h in range(heads):
        lo = h * d_k
        qh = q[:, lo:lo + d_k].astype(cdt)
        kh = k[:, lo:lo + d_k].astype(cdt)
        vh = v[:, lo:lo + d_k].astype(cdt)

        s = jnp.einsum("qc,kc->qk", qh, kh,
                       preferred_element_type=jnp.float32) + bias
        s = s - jnp.max(s, axis=-1, keepdims=True)        # stable softmax (same result)
        p = jnp.exp(s)
        p = p * pl.reciprocal(jnp.sum(p, axis=-1, keepdims=True), approx=True)

        ctx = jnp.dot(p.astype(cdt), vh, preferred_element_type=jnp.float32)
        out = out + jnp.dot(ctx.astype(cdt), wo[lo:lo + d_k, :],
                            preferred_element_type=jnp.float32)
    return out + bo


def _ffn(x, w1, b1, w2, b2, *, cdt):
    """w_2(relu(w_1(x)))  (dropout is identity)."""
    h = jnp.dot(x.astype(cdt), w1, preferred_element_type=jnp.float32) + b1
    h = jnp.maximum(h, 0.0)
    return jnp.dot(h.astype(cdt), w2, preferred_element_type=jnp.float32) + b2


# ----------------------------- fused decoder-stack kernel -----------------------------

def _decoder_stack_kernel(
        x_ref, enc_ref, tbias_ref, sbias_ref,
        # self-attention weights (shared across blocks)
        sa_wq, sa_bq, sa_wk, sa_bk, sa_wv, sa_bv, sa_wo, sa_bo,
        # encoder (cross) attention weights
        ca_wq, ca_bq, ca_wk, ca_bk, ca_wv, ca_bv, ca_wo, ca_bo,
        # feed-forward weights
        ff_w1, ff_b1, ff_w2, ff_b2,
        # layer norms (3 per block, shared) + final norm
        ln0_g, ln0_b, ln1_g, ln1_b, ln2_g, ln2_b, lnf_g, lnf_b,
        o_ref,
        *, heads, d_k, blocks_count, eps, compute_dtype):
    cdt = compute_dtype
    scale = 1.0 / math.sqrt(d_k)

    x = x_ref[0]                                          # (Sq, D) f32
    enc = enc_ref[0].astype(cdt)                          # (Sk, D), cast once for all blocks
    tbias = tbias_ref[0]                                  # (Sq, Sq) additive bias (0/-1e9)
    sbias = sbias_ref[0]                                  # (Sq, Sk) additive bias (0/-1e9)

    # All parameter loads hoisted out of the block loop (no per-block re-load/re-broadcast).
    sa = (sa_wq[...], sa_bq[...], sa_wk[...], sa_bk[...],
          sa_wv[...], sa_bv[...], sa_wo[...], sa_bo[...])
    ca = (ca_wq[...], ca_bq[...], ca_wk[...], ca_bk[...],
          ca_wv[...], ca_bv[...], ca_wo[...], ca_bo[...])
    ffw = (ff_w1[...], ff_b1[...], ff_w2[...], ff_b2[...])
    g0, b0 = ln0_g[...], ln0_b[...]
    g1, b1 = ln1_g[...], ln1_b[...]
    g2, b2 = ln2_g[...], ln2_b[...]
    gf, bf = lnf_g[...], lnf_b[...]

    def block(xb):
        h = _layer_norm(xb, g0, b0, eps)
        xb = xb + _mha(h, h, tbias, *sa, heads=heads, d_k=d_k, scale=scale, cdt=cdt)
        h = _layer_norm(xb, g1, b1, eps)
        xb = xb + _mha(h, enc, sbias, *ca, heads=heads, d_k=d_k, scale=scale, cdt=cdt)
        h = _layer_norm(xb, g2, b2, eps)
        return xb + _ffn(h, *ffw, cdt=cdt)

    # All blocks share one weight set (ModuleList of the same DecoderLayer object).
    if blocks_count <= 4:
        for _ in range(blocks_count):                     # static unroll: small, shared body
            x = block(x)
    else:
        x = jax.lax.fori_loop(0, blocks_count, lambda _, v: block(v), x)

    o_ref[0] = _layer_norm(x, gf, bf, eps)


# ----------------------------- pallas_call wrapper -----------------------------

def decoder_stack(x, enc, target_mask, source_mask, params, *, heads, blocks_count,
                  eps=1e-6, compute_dtype=jnp.float32):
    B, Sq, D = x.shape
    Sk = enc.shape[1]
    d_k = D // heads
    lp = params["layer"]
    ffn = lp["ffn"]
    Dff = ffn["w1"].shape[1]
    cdt = compute_dtype

    # Masks -> additive bias once wrapper-side; the kernel only adds (no compare+select per
    # head per block).  TODO(synk): for a purely-causal target mask this could be generated
    # in-kernel from broadcasted_iota and never touch HBM.
    tbias = jnp.where(target_mask == 0, -1e9, 0.0).astype(jnp.float32)
    sbias = jnp.where(source_mask == 0, -1e9, 0.0).astype(jnp.float32)

    operands, in_specs = [], []

    def add(arr, spec):
        operands.append(arr)
        in_specs.append(spec)

    def _rep(shape):
        """BlockSpec for a parameter replicated across the batch grid (whole-array block).
        TODO(synk): at production sizes request single-buffering for these constant-index
        operands (pipeline_mode=pl.Buffered(1)) to free VMEM — not needed at toy shapes."""
        nd = len(shape)
        return pl.BlockSpec(shape, lambda i, _nd=nd: (0,) * _nd)

    add(x.astype(jnp.float32), pl.BlockSpec((1, Sq, D), lambda i: (i, 0, 0)))
    add(enc.astype(jnp.float32), pl.BlockSpec((1, Sk, D), lambda i: (i, 0, 0)))
    add(tbias, pl.BlockSpec((1, Sq, Sq), lambda i: (i, 0, 0)))
    add(sbias, pl.BlockSpec((1, Sq, Sk), lambda i: (i, 0, 0)))

    # Matmul operand weights cast to compute_dtype wrapper-side (halves weight DMA/VMEM in
    # bf16 mode); biases stay f32 (added after f32-accumulated matmuls).
    for mp in (lp["self_attn"], lp["enc_attn"]):
        for a in (mp["wq"].astype(cdt), mp["bq"].reshape(1, D),
                  mp["wk"].astype(cdt), mp["bk"].reshape(1, D),
                  mp["wv"].astype(cdt), mp["bv"].reshape(1, D),
                  mp["wo"].astype(cdt), mp["bo"].reshape(1, D)):
            add(a, _rep(a.shape))

    for a in (ffn["w1"].astype(cdt), ffn["b1"].reshape(1, Dff),
              ffn["w2"].astype(cdt), ffn["b2"].reshape(1, D)):
        add(a, _rep(a.shape))

    for a in (lp["ln0_g"], lp["ln0_b"], lp["ln1_g"], lp["ln1_b"],
              lp["ln2_g"], lp["ln2_b"], params["final_ln_g"], params["final_ln_b"]):
        add(a.reshape(1, D), _rep((1, D)))

    kernel = functools.partial(_decoder_stack_kernel, heads=heads, d_k=d_k,
                               blocks_count=blocks_count, eps=eps, compute_dtype=cdt)

    # TODO(synk): at production sizes (D>=512, Dff>=2048, S>=1024) pad D to a multiple of
    # 128 / S to a multiple of 8 for lane-dense stores, raise vmem_limit_bytes on v5e/v6e,
    # and tile the KV axis flash-style (see _mha).  grid=(B,) with "parallel" already shards
    # batch elements across v7x's two TensorCores when B >= 2.
    return pl.pallas_call(
        kernel,
        out_shape=jax.ShapeDtypeStruct((B, Sq, D), jnp.float32),
        grid=(B,),
        in_specs=in_specs,
        out_specs=pl.BlockSpec((1, Sq, D), lambda i: (i, 0, 0)),
        compiler_params=pltpu.CompilerParams(
            dimension_semantics=("parallel",)),
    )(*operands)


# ----------------------------- glue: PE, params, full forward -----------------------------

def make_positional_encoding(max_len, d_model):
    position = jnp.arange(max_len, dtype=jnp.float32)[:, None]
    div_term = jnp.exp(jnp.arange(0, d_model, 2, dtype=jnp.float32)
                       * (-math.log(10000.0) / d_model))
    pe = jnp.zeros((max_len, d_model), dtype=jnp.float32)
    pe = pe.at[:, 0::2].set(jnp.sin(position * div_term))
    pe = pe.at[:, 1::2].set(jnp.cos(position * div_term))
    return pe


def _init_linear(key, fan_in, fan_out):
    limit = 1.0 / math.sqrt(fan_in)
    kw, kb = jax.random.split(key)
    w = jax.random.uniform(kw, (fan_in, fan_out), jnp.float32, -limit, limit)
    b = jax.random.uniform(kb, (fan_out,), jnp.float32, -limit, limit)
    return w, b


def _init_mha(key, d_model):
    ks = jax.random.split(key, 4)
    p = {}
    for name, k in zip(("q", "k", "v", "o"), ks):
        w, b = _init_linear(k, d_model, d_model)
        p["w" + name], p["b" + name] = w, b
    return p


def init_params(key, vocab, d_model, d_ff, max_len):
    ks = jax.random.split(key, 6)
    params = {
        "embedding": 0.1 * jax.random.normal(ks[0], (vocab, d_model), jnp.float32),
        "pe": make_positional_encoding(max_len, d_model),
        "layer": {
            "self_attn": _init_mha(ks[1], d_model),
            "enc_attn": _init_mha(ks[2], d_model),
            "ffn": {},
            "ln0_g": jnp.ones((d_model,), jnp.float32), "ln0_b": jnp.zeros((d_model,), jnp.float32),
            "ln1_g": jnp.ones((d_model,), jnp.float32), "ln1_b": jnp.zeros((d_model,), jnp.float32),
            "ln2_g": jnp.ones((d_model,), jnp.float32), "ln2_b": jnp.zeros((d_model,), jnp.float32),
        },
        "final_ln_g": jnp.ones((d_model,), jnp.float32),
        "final_ln_b": jnp.zeros((d_model,), jnp.float32),
    }
    w1, b1 = _init_linear(ks[3], d_model, d_ff)
    w2, b2 = _init_linear(ks[4], d_ff, d_model)
    params["layer"]["ffn"] = {"w1": w1, "b1": b1, "w2": w2, "b2": b2}
    return params


def decoder_forward(tokens, encoder_output, source_mask, target_mask, params,
                    heads, blocks_count, compute_dtype=jnp.float32):
    # embeddings + positional encoding (glue, tiny)
    x = jnp.take(params["embedding"], tokens, axis=0)     # (B, S, D)
    S = x.shape[1]
    x = x + params["pe"][None, :S, :]
    # TODO(synk): all dropout layers (pe/residual/attention/ffn) are identity (eval mode).
    # compute_dtype=jnp.bfloat16 is recommended on v6e/v7x at production sizes (f32
    # accumulation is kept either way); f32 default preserves the reference numerics here.
    return decoder_stack(x, encoder_output, target_mask, source_mask, params,
                         heads=heads, blocks_count=blocks_count,
                         compute_dtype=compute_dtype)


# ----------------------------- pure-JAX reference (PyTorch math) -----------------------------

def _reference_forward(tokens, enc, source_mask, target_mask, params, heads, blocks_count,
                       eps=1e-6):
    D = params["embedding"].shape[1]
    d_k = D // heads

    x = jnp.take(params["embedding"], tokens, axis=0)
    x = x + params["pe"][None, :x.shape[1], :]

    def layer_norm(v, g, b):
        mean = v.mean(-1, keepdims=True)
        var = jnp.sum((v - mean) ** 2, axis=-1, keepdims=True) / (v.shape[-1] - 1)
        return g * (v - mean) / (jnp.sqrt(var) + eps) + b

    def mha(q_in, kv_in, mask, p):
        B, Sq, _ = q_in.shape
        Sk = kv_in.shape[1]
        q = (q_in @ p["wq"] + p["bq"]).reshape(B, Sq, heads, d_k).transpose(0, 2, 1, 3)
        k = (kv_in @ p["wk"] + p["bk"]).reshape(B, Sk, heads, d_k).transpose(0, 2, 1, 3)
        v = (kv_in @ p["wv"] + p["bv"]).reshape(B, Sk, heads, d_k).transpose(0, 2, 1, 3)
        s = jnp.einsum("bhqc,bhkc->bhqk", q, k) / math.sqrt(d_k)
        s = jnp.where(mask[:, None] == 0, -1e9, s)
        pr = jax.nn.softmax(s, axis=-1)
        ctx = jnp.einsum("bhqk,bhkc->bhqc", pr, v).transpose(0, 2, 1, 3).reshape(B, Sq, D)
        return ctx @ p["wo"] + p["bo"]

    lp = params["layer"]
    ff = lp["ffn"]
    for _ in range(blocks_count):
        h = layer_norm(x, lp["ln0_g"], lp["ln0_b"])
        x = x + mha(h, h, target_mask, lp["self_attn"])
        h = layer_norm(x, lp["ln1_g"], lp["ln1_b"])
        x = x + mha(h, enc, source_mask, lp["enc_attn"])
        h = layer_norm(x, lp["ln2_g"], lp["ln2_b"])
        x = x + (jnp.maximum(h @ ff["w1"] + ff["b1"], 0.0) @ ff["w2"] + ff["b2"])
    return layer_norm(x, params["final_ln_g"], params["final_ln_b"])


if __name__ == "__main__":
    B, S_TGT, S_SRC = 2, 8, 8
    D_MODEL, D_FF, HEADS, BLOCKS, VOCAB = 32, 64, 4, 2, 50

    key = jax.random.PRNGKey(0)
    k_params, k_tok, k_enc = jax.random.split(key, 3)

    params = init_params(k_params, VOCAB, D_MODEL, D_FF, max_len=128)

    tokens = jax.random.randint(k_tok, (B, S_TGT), 0, VOCAB)
    encoder_output = jax.random.normal(k_enc, (B, S_SRC, D_MODEL), jnp.float32)

    # target mask: causal (subsequent) mask per batch; source mask: all visible.
    target_mask = jnp.broadcast_to(
        jnp.tril(jnp.ones((S_TGT, S_TGT), jnp.int32)), (B, S_TGT, S_TGT))
    source_mask = jnp.ones((B, S_TGT, S_SRC), jnp.int32)

    out = decoder_forward(tokens, encoder_output, source_mask, target_mask,
                          params, heads=HEADS, blocks_count=BLOCKS,
                          compute_dtype=jnp.float32)
    jax.block_until_ready(out)

    ref = _reference_forward(tokens, encoder_output, source_mask, target_mask,
                             params, HEADS, BLOCKS)
    jax.block_until_ready(ref)

    assert out.shape == (B, S_TGT, D_MODEL) and out.dtype == jnp.float32
    assert bool(jnp.all(jnp.isfinite(out)))
    # approx reciprocal (EUP) in softmax/LayerNorm -> small deviation vs exact reference.
    assert bool(jnp.allclose(out, ref, atol=3e-2, rtol=3e-2)), \
        f"max abs diff {float(jnp.max(jnp.abs(out - ref)))}"
    print("KERNEL_OK")
</pallas_src>

<mosaic_0001>
module attributes {stable_mosaic.version = 11 : i64} {
  func.func @_decoder_stack_kernel(%arg0: i32, %arg1: memref<1x8x32xf32, #tpu.memory_space<vmem>>, %arg2: memref<1x8x32xf32, #tpu.memory_space<vmem>>, %arg3: memref<1x8x8xf32, #tpu.memory_space<vmem>>, %arg4: memref<1x8x8xf32, #tpu.memory_space<vmem>>, %arg5: memref<32x32xf32, #tpu.memory_space<vmem>>, %arg6: memref<1x32xf32, #tpu.memory_space<vmem>>, %arg7: memref<32x32xf32, #tpu.memory_space<vmem>>, %arg8: memref<1x32xf32, #tpu.memory_space<vmem>>, %arg9: memref<32x32xf32, #tpu.memory_space<vmem>>, %arg10: memref<1x32xf32, #tpu.memory_space<vmem>>, %arg11: memref<32x32xf32, #tpu.memory_space<vmem>>, %arg12: memref<1x32xf32, #tpu.memory_space<vmem>>, %arg13: memref<32x32xf32, #tpu.memory_space<vmem>>, %arg14: memref<1x32xf32, #tpu.memory_space<vmem>>, %arg15: memref<32x32xf32, #tpu.memory_space<vmem>>, %arg16: memref<1x32xf32, #tpu.memory_space<vmem>>, %arg17: memref<32x32xf32, #tpu.memory_space<vmem>>, %arg18: memref<1x32xf32, #tpu.memory_space<vmem>>, %arg19: memref<32x32xf32, #tpu.memory_space<vmem>>, %arg20: memref<1x32xf32, #tpu.memory_space<vmem>>, %arg21: memref<32x64xf32, #tpu.memory_space<vmem>>, %arg22: memref<1x64xf32, #tpu.memory_space<vmem>>, %arg23: memref<64x32xf32, #tpu.memory_space<vmem>>, %arg24: memref<1x32xf32, #tpu.memory_space<vmem>>, %arg25: memref<1x32xf32, #tpu.memory_space<vmem>>, %arg26: memref<1x32xf32, #tpu.memory_space<vmem>>, %arg27: memref<1x32xf32, #tpu.memory_space<vmem>>, %arg28: memref<1x32xf32, #tpu.memory_space<vmem>>, %arg29: memref<1x32xf32, #tpu.memory_space<vmem>>, %arg30: memref<1x32xf32, #tpu.memory_space<vmem>>, %arg31: memref<1x32xf32, #tpu.memory_space<vmem>>, %arg32: memref<1x32xf32, #tpu.memory_space<vmem>>, %arg33: memref<1x8x32xf32, #tpu.memory_space<vmem>>) attributes {dimension_semantics = [#tpu.dimension_semantics<parallel>], iteration_bounds = array<i64: 2>, scalar_prefetch = 0 : i64, scratch_operands = 0 : i64, tpu.core_type = #tpu.core_type<tc>, window_params = [{transform_indices = @transform_0, window_bounds = array<i64: 1, 8, 32>}, {transform_indices = @transform_1, window_bounds = array<i64: 1, 8, 32>}, {transform_indices = @transform_2, window_bounds = array<i64: 1, 8, 8>}, {transform_indices = @transform_3, window_bounds = array<i64: 1, 8, 8>}, {pipeline_mode = #tpu.pipeline_mode<synchronous>, transform_indices = @transform_4, window_bounds = array<i64: 32, 32>}, {pipeline_mode = #tpu.pipeline_mode<synchronous>, transform_indices = @transform_5, window_bounds = array<i64: 1, 32>}, {pipeline_mode = #tpu.pipeline_mode<synchronous>, transform_indices = @transform_6, window_bounds = array<i64: 32, 32>}, {pipeline_mode = #tpu.pipeline_mode<synchronous>, transform_indices = @transform_7, window_bounds = array<i64: 1, 32>}, {pipeline_mode = #tpu.pipeline_mode<synchronous>, transform_indices = @transform_8, window_bounds = array<i64: 32, 32>}, {pipeline_mode = #tpu.pipeline_mode<synchronous>, transform_indices = @transform_9, window_bounds = array<i64: 1, 32>}, {pipeline_mode = #tpu.pipeline_mode<synchronous>, transform_indices = @transform_10, window_bounds = array<i64: 32, 32>}, {pipeline_mode = #tpu.pipeline_mode<synchronous>, transform_indices = @transform_11, window_bounds = array<i64: 1, 32>}, {pipeline_mode = #tpu.pipeline_mode<synchronous>, transform_indices = @transform_12, window_bounds = array<i64: 32, 32>}, {pipeline_mode = #tpu.pipeline_mode<synchronous>, transform_indices = @transform_13, window_bounds = array<i64: 1, 32>}, {pipeline_mode = #tpu.pipeline_mode<synchronous>, transform_indices = @transform_14, window_bounds = array<i64: 32, 32>}, {pipeline_mode = #tpu.pipeline_mode<synchronous>, transform_indices = @transform_15, window_bounds = array<i64: 1, 32>}, {pipeline_mode = #tpu.pipeline_mode<synchronous>, transform_indices = @transform_16, window_bounds = array<i64: 32, 32>}, {pipeline_mode = #tpu.pipeline_mode<synchronous>, transform_indices = @transform_17, window_bounds = array<i64: 1, 32>}, {pipeline_mode = #tpu.pipeline_mode<synchronous>, transform_indices = @transform_18, window_bounds = array<i64: 32, 32>}, {pipeline_mode = #tpu.pipeline_mode<synchronous>, transform_indices = @transform_19, window_bounds = array<i64: 1, 32>}, {pipeline_mode = #tpu.pipeline_mode<synchronous>, transform_indices = @transform_20, window_bounds = array<i64: 32, 64>}, {pipeline_mode = #tpu.pipeline_mode<synchronous>, transform_indices = @transform_21, window_bounds = array<i64: 1, 64>}, {pipeline_mode = #tpu.pipeline_mode<synchronous>, transform_indices = @transform_22, window_bounds = array<i64: 64, 32>}, {pipeline_mode = #tpu.pipeline_mode<synchronous>, transform_indices = @transform_23, window_bounds = array<i64: 1, 32>}, {pipeline_mode = #tpu.pipeline_mode<synchronous>, transform_indices = @transform_24, window_bounds = array<i64: 1, 32>}, {pipeline_mode = #tpu.pipeline_mode<synchronous>, transform_indices = @transform_25, window_bounds = array<i64: 1, 32>}, {pipeline_mode = #tpu.pipeline_mode<synchronous>, transform_indices = @transform_26, window_bounds = array<i64: 1, 32>}, {pipeline_mode = #tpu.pipeline_mode<synchronous>, transform_indices = @transform_27, window_bounds = array<i64: 1, 32>}, {pipeline_mode = #tpu.pipeline_mode<synchronous>, transform_indices = @transform_28, window_bounds = array<i64: 1, 32>}, {pipeline_mode = #tpu.pipeline_mode<synchronous>, transform_indices = @transform_29, window_bounds = array<i64: 1, 32>}, {pipeline_mode = #tpu.pipeline_mode<synchronous>, transform_indices = @transform_30, window_bounds = array<i64: 1, 32>}, {pipeline_mode = #tpu.pipeline_mode<synchronous>, transform_indices = @transform_31, window_bounds = array<i64: 1, 32>}, {transform_indices = @transform_32, window_bounds = array<i64: 1, 8, 32>}]} {
    %c0 = arith.constant 0 : index
    %c0_0 = arith.constant 0 : index
    %c0_1 = arith.constant 0 : index
    %0 = vector.load %arg1[%c0, %c0_0, %c0_1] : memref<1x8x32xf32, #tpu.memory_space<vmem>>, vector<1x8x32xf32>
    %1 = vector.shape_cast %0 : vector<1x8x32xf32> to vector<8x32xf32>
    %c0_2 = arith.constant 0 : index
    %c0_3 = arith.constant 0 : index
    %c0_4 = arith.constant 0 : index
    %2 = vector.load %arg2[%c0_2, %c0_3, %c0_4] : memref<1x8x32xf32, #tpu.memory_space<vmem>>, vector<1x8x32xf32>
    %3 = vector.shape_cast %2 : vector<1x8x32xf32> to vector<8x32xf32>
    %c0_5 = arith.constant 0 : index
    %c0_6 = arith.constant 0 : index
    %c0_7 = arith.constant 0 : index
    %4 = vector.load %arg3[%c0_5, %c0_6, %c0_7] : memref<1x8x8xf32, #tpu.memory_space<vmem>>, vector<1x8x8xf32>
    %5 = vector.shape_cast %4 : vector<1x8x8xf32> to vector<8x8xf32>
    %c0_8 = arith.constant 0 : index
    %c0_9 = arith.constant 0 : index
    %c0_10 = arith.constant 0 : index
    %6 = vector.load %arg4[%c0_8, %c0_9, %c0_10] : memref<1x8x8xf32, #tpu.memory_space<vmem>>, vector<1x8x8xf32>
    %7 = vector.shape_cast %6 : vector<1x8x8xf32> to vector<8x8xf32>
    %c0_11 = arith.constant 0 : index
    %c0_12 = arith.constant 0 : index
    %8 = vector.load %arg5[%c0_11, %c0_12] : memref<32x32xf32, #tpu.memory_space<vmem>>, vector<32x32xf32>
    %c0_13 = arith.constant 0 : index
    %c0_14 = arith.constant 0 : index
    %9 = vector.load %arg6[%c0_13, %c0_14] : memref<1x32xf32, #tpu.memory_space<vmem>>, vector<1x32xf32>
    %c0_15 = arith.constant 0 : index
    %c0_16 = arith.constant 0 : index
    %10 = vector.load %arg7[%c0_15, %c0_16] : memref<32x32xf32, #tpu.memory_space<vmem>>, vector<32x32xf32>
    %c0_17 = arith.constant 0 : index
    %c0_18 = arith.constant 0 : index
    %11 = vector.load %arg8[%c0_17, %c0_18] : memref<1x32xf32, #tpu.memory_space<vmem>>, vector<1x32xf32>
    %c0_19 = arith.constant 0 : index
    %c0_20 = arith.constant 0 : index
    %12 = vector.load %arg9[%c0_19, %c0_20] : memref<32x32xf32, #tpu.memory_space<vmem>>, vector<32x32xf32>
    %c0_21 = arith.constant 0 : index
    %c0_22 = arith.constant 0 : index
    %13 = vector.load %arg10[%c0_21, %c0_22] : memref<1x32xf32, #tpu.memory_space<vmem>>, vector<1x32xf32>
    %c0_23 = arith.constant 0 : index
    %c0_24 = arith.constant 0 : index
    %14 = vector.load %arg11[%c0_23, %c0_24] : memref<32x32xf32, #tpu.memory_space<vmem>>, vector<32x32xf32>
    %c0_25 = arith.constant 0 : index
    %c0_26 = arith.constant 0 : index
    %15 = vector.load %arg12[%c0_25, %c0_26] : memref<1x32xf32, #tpu.memory_space<vmem>>, vector<1x32xf32>
    %c0_27 = arith.constant 0 : index
    %c0_28 = arith.constant 0 : index
    %16 = vector.load %arg13[%c0_27, %c0_28] : memref<32x32xf32, #tpu.memory_space<vmem>>, vector<32x32xf32>
    %c0_29 = arith.constant 0 : index
    %c0_30 = arith.constant 0 : index
    %17 = vector.load %arg14[%c0_29, %c0_30] : memref<1x32xf32, #tpu.memory_space<vmem>>, vector<1x32xf32>
    %c0_31 = arith.constant 0 : index
    %c0_32 = arith.constant 0 : index
    %18 = vector.load %arg15[%c0_31, %c0_32] : memref<32x32xf32, #tpu.memory_space<vmem>>, vector<32x32xf32>
    %c0_33 = arith.constant 0 : index
    %c0_34 = arith.constant 0 : index
    %19 = vector.load %arg16[%c0_33, %c0_34] : memref<1x32xf32, #tpu.memory_space<vmem>>, vector<1x32xf32>
    %c0_35 = arith.constant 0 : index
    %c0_36 = arith.constant 0 : index
    %20 = vector.load %arg17[%c0_35, %c0_36] : memref<32x32xf32, #tpu.memory_space<vmem>>, vector<32x32xf32>
    %c0_37 = arith.constant 0 : index
    %c0_38 = arith.constant 0 : index
    %21 = vector.load %arg18[%c0_37, %c0_38] : memref<1x32xf32, #tpu.memory_space<vmem>>, vector<1x32xf32>
    %c0_39 = arith.constant 0 : index
    %c0_40 = arith.constant 0 : index
    %22 = vector.load %arg19[%c0_39, %c0_40] : memref<32x32xf32, #tpu.memory_space<vmem>>, vector<32x32xf32>
    %c0_41 = arith.constant 0 : index
    %c0_42 = arith.constant 0 : index
    %23 = vector.load %arg20[%c0_41, %c0_42] : memref<1x32xf32, #tpu.memory_space<vmem>>, vector<1x32xf32>
    %c0_43 = arith.constant 0 : index
    %c0_44 = arith.constant 0 : index
    %24 = vector.load %arg21[%c0_43, %c0_44] : memref<32x64xf32, #tpu.memory_space<vmem>>, vector<32x64xf32>
    %c0_45 = arith.constant 0 : index
    %c0_46 = arith.constant 0 : index
    %25 = vector.load %arg22[%c0_45, %c0_46] : memref<1x64xf32, #tpu.memory_space<vmem>>, vector<1x64xf32>
    %c0_47 = arith.constant 0 : index
    %c0_48 = arith.constant 0 : index
    %26 = vector.load %arg23[%c0_47, %c0_48] : memref<64x32xf32, #tpu.memory_space<vmem>>, vector<64x32xf32>
    %c0_49 = arith.constant 0 : index
    %c0_50 = arith.constant 0 : index
    %27 = vector.load %arg24[%c0_49, %c0_50] : memref<1x32xf32, #tpu.memory_space<vmem>>, vector<1x32xf32>
    %c0_51 = arith.constant 0 : index
    %c0_52 = arith.constant 0 : index
    %28 = vector.load %arg25[%c0_51, %c0_52] : memref<1x32xf32, #tpu.memory_space<vmem>>, vector<1x32xf32>
    %c0_53 = arith.constant 0 : index
    %c0_54 = arith.constant 0 : index
    %29 = vector.load %arg26[%c0_53, %c0_54] : memref<1x32xf32, #tpu.memory_space<vmem>>, vector<1x32xf32>
    %c0_55 = arith.constant 0 : index
    %c0_56 = arith.constant 0 : index
    %30 = vector.load %arg27[%c0_55, %c0_56] : memref<1x32xf32, #tpu.memory_space<vmem>>, vector<1x32xf32>
    %c0_57 = arith.constant 0 : index
    %c0_58 = arith.constant 0 : index
    %31 = vector.load %arg28[%c0_57, %c0_58] : memref<1x32xf32, #tpu.memory_space<vmem>>, vector<1x32xf32>
    %c0_59 = arith.constant 0 : index
    %c0_60 = arith.constant 0 : index
    %32 = vector.load %arg29[%c0_59, %c0_60] : memref<1x32xf32, #tpu.memory_space<vmem>>, vector<1x32xf32>
    %c0_61 = arith.constant 0 : index
    %c0_62 = arith.constant 0 : index
    %33 = vector.load %arg30[%c0_61, %c0_62] : memref<1x32xf32, #tpu.memory_space<vmem>>, vector<1x32xf32>
    %c0_63 = arith.constant 0 : index
    %c0_64 = arith.constant 0 : index
    %34 = vector.load %arg31[%c0_63, %c0_64] : memref<1x32xf32, #tpu.memory_space<vmem>>, vector<1x32xf32>
    %c0_65 = arith.constant 0 : index
    %c0_66 = arith.constant 0 : index
    %35 = vector.load %arg32[%c0_65, %c0_66] : memref<1x32xf32, #tpu.memory_space<vmem>>, vector<1x32xf32>
    %cst = arith.constant dense<0.000000e+00> : vector<8xf32>
    %36 = vector.multi_reduction <add>, %1, %cst [1] : vector<8x32xf32> to vector<8xf32>
    %37 = vector.shape_cast %36 : vector<8xf32> to vector<8x1xf32>
    %38 = arith.mulf %1, %1 : vector<8x32xf32>
    %cst_67 = arith.constant dense<0.000000e+00> : vector<8xf32>
    %39 = vector.multi_reduction <add>, %38, %cst_67 [1] : vector<8x32xf32> to vector<8xf32>
    %40 = vector.shape_cast %39 : vector<8xf32> to vector<8x1xf32>
    %cst_68 = arith.constant 3.125000e-02 : f32
    %41 = vector.broadcast %cst_68 : f32 to vector<8x1xf32>
    %42 = arith.mulf %37, %41 : vector<8x1xf32>
    %43 = arith.mulf %37, %42 : vector<8x1xf32>
    %44 = arith.subf %40, %43 : vector<8x1xf32>
    %cst_69 = arith.constant 0.0322580636 : f32
    %45 = vector.broadcast %cst_69 : f32 to vector<8x1xf32>
    %46 = arith.mulf %44, %45 : vector<8x1xf32>
    %cst_70 = arith.constant 0.000000e+00 : f32
    %47 = vector.broadcast %cst_70 : f32 to vector<8x1xf32>
    %48 = arith.maximumf %46, %47 : vector<8x1xf32>
    %49 = math.sqrt %48 : vector<8x1xf32>
    %cst_71 = arith.constant 9.99999997E-7 : f32
    %50 = vector.broadcast %cst_71 : f32 to vector<8x1xf32>
    %51 = arith.addf %49, %50 : vector<8x1xf32>
    %52 = tpu.reciprocal %51 {approx = true} : vector<8x1xf32> -> vector<8x1xf32>
    %53 = vector.broadcast %42 : vector<8x1xf32> to vector<8x32xf32>
    %54 = arith.subf %1, %53 : vector<8x32xf32>
    %55 = vector.broadcast %52 : vector<8x1xf32> to vector<8x32xf32>
    %56 = arith.mulf %54, %55 : vector<8x32xf32>
    %57 = vector.broadcast %28 : vector<1x32xf32> to vector<8x32xf32>
    %58 = arith.mulf %57, %56 : vector<8x32xf32>
    %59 = vector.broadcast %29 : vector<1x32xf32> to vector<8x32xf32>
    %60 = arith.addf %58, %59 : vector<8x32xf32>
    %cst_72 = arith.constant dense<0.000000e+00> : vector<8x32xf32>
    %61 = tpu.matmul %60, %8, %cst_72 {dimension_numbers = #tpu.dot_dimension_numbers<[1], [0], [0], [1], [0, 0, 1, 1], [], []>} : vector<8x32xf32>, vector<32x32xf32>, vector<8x32xf32> -> vector<8x32xf32>
    %62 = vector.broadcast %9 : vector<1x32xf32> to vector<8x32xf32>
    %63 = arith.addf %61, %62 : vector<8x32xf32>
    %cst_73 = arith.constant 0.353553385 : f32
    %64 = vector.broadcast %cst_73 : f32 to vector<8x32xf32>
    %65 = arith.mulf %63, %64 : vector<8x32xf32>
    %cst_74 = arith.constant dense<0.000000e+00> : vector<8x32xf32>
    %66 = tpu.matmul %60, %10, %cst_74 {dimension_numbers = #tpu.dot_dimension_numbers<[1], [0], [0], [1], [0, 0, 1, 1], [], []>} : vector<8x32xf32>, vector<32x32xf32>, vector<8x32xf32> -> vector<8x32xf32>
    %67 = vector.broadcast %11 : vector<1x32xf32> to vector<8x32xf32>
    %68 = arith.addf %66, %67 : vector<8x32xf32>
    %cst_75 = arith.constant dense<0.000000e+00> : vector<8x32xf32>
    %69 = tpu.matmul %60, %12, %cst_75 {dimension_numbers = #tpu.dot_dimension_numbers<[1], [0], [0], [1], [0, 0, 1, 1], [], []>} : vector<8x32xf32>, vector<32x32xf32>, vector<8x32xf32> -> vector<8x32xf32>
    %70 = vector.broadcast %13 : vector<1x32xf32> to vector<8x32xf32>
    %71 = arith.addf %69, %70 : vector<8x32xf32>
    %cst_76 = arith.constant 0.000000e+00 : f32
    %72 = vector.broadcast %cst_76 : f32 to vector<8x32xf32>
    %73 = vector.extract_strided_slice %65 {offsets = [0, 0], sizes = [8, 8], strides = [1, 1]} : vector<8x32xf32> to vector<8x8xf32>
    %74 = vector.extract_strided_slice %68 {offsets = [0, 0], sizes = [8, 8], strides = [1, 1]} : vector<8x32xf32> to vector<8x8xf32>
    %75 = vector.extract_strided_slice %71 {offsets = [0, 0], sizes = [8, 8], strides = [1, 1]} : vector<8x32xf32> to vector<8x8xf32>
    "tpu.trace_start"() <{level = 10 : i32, message = "qc,kc->qk"}> : () -> ()
    %cst_77 = arith.constant dense<0.000000e+00> : vector<8x8xf32>
    %76 = tpu.matmul %73, %74, %cst_77 {dimension_numbers = #tpu.dot_dimension_numbers<[1], [1], [0], [0], [0, 0, 1, 0], [], []>} : vector<8x8xf32>, vector<8x8xf32>, vector<8x8xf32> -> vector<8x8xf32>
    "tpu.trace_stop"() : () -> ()
    %77 = arith.addf %76, %5 : vector<8x8xf32>
    %cst_78 = arith.constant dense<0xFF800000> : vector<8xf32>
    %78 = vector.multi_reduction <maximumf>, %77, %cst_78 [1] : vector<8x8xf32> to vector<8xf32>
    %79 = vector.shape_cast %78 : vector<8xf32> to vector<8x1xf32>
    %80 = vector.broadcast %79 : vector<8x1xf32> to vector<8x8xf32>
    %81 = arith.subf %77, %80 : vector<8x8xf32>
    %82 = math.exp %81 : vector<8x8xf32>
    %cst_79 = arith.constant dense<0.000000e+00> : vector<8xf32>
    %83 = vector.multi_reduction <add>, %82, %cst_79 [1] : vector<8x8xf32> to vector<8xf32>
    %84 = vector.shape_cast %83 : vector<8xf32> to vector<8x1xf32>
    %85 = tpu.reciprocal %84 {approx = true} : vector<8x1xf32> -> vector<8x1xf32>
    %86 = vector.broadcast %85 : vector<8x1xf32> to vector<8x8xf32>
    %87 = arith.mulf %82, %86 : vector<8x8xf32>
    %cst_80 = arith.constant dense<0.000000e+00> : vector<8x8xf32>
    %88 = tpu.matmul %87, %75, %cst_80 {dimension_numbers = #tpu.dot_dimension_numbers<[1], [0], [0], [1], [0, 0, 1, 1], [], []>} : vector<8x8xf32>, vector<8x8xf32>, vector<8x8xf32> -> vector<8x8xf32>
    %89 = vector.extract_strided_slice %14 {offsets = [0, 0], sizes = [8, 32], strides = [1, 1]} : vector<32x32xf32> to vector<8x32xf32>
    %cst_81 = arith.constant dense<0.000000e+00> : vector<8x32xf32>
    %90 = tpu.matmul %88, %89, %cst_81 {dimension_numbers = #tpu.dot_dimension_numbers<[1], [0], [0], [1], [0, 0, 1, 1], [], []>} : vector<8x8xf32>, vector<8x32xf32>, vector<8x32xf32> -> vector<8x32xf32>
    %91 = arith.addf %72, %90 : vector<8x32xf32>
    %92 = vector.extract_strided_slice %65 {offsets = [0, 8], sizes = [8, 8], strides = [1, 1]} : vector<8x32xf32> to vector<8x8xf32>
    %93 = vector.extract_strided_slice %68 {offsets = [0, 8], sizes = [8, 8], strides = [1, 1]} : vector<8x32xf32> to vector<8x8xf32>
    %94 = vector.extract_strided_slice %71 {offsets = [0, 8], sizes = [8, 8], strides = [1, 1]} : vector<8x32xf32> to vector<8x8xf32>
    "tpu.trace_start"() <{level = 10 : i32, message = "qc,kc->qk"}> : () -> ()
    %cst_82 = arith.constant dense<0.000000e+00> : vector<8x8xf32>
    %95 = tpu.matmul %92, %93, %cst_82 {dimension_numbers = #tpu.dot_dimension_numbers<[1], [1], [0], [0], [0, 0, 1, 0], [], []>} : vector<8x8xf32>, vector<8x8xf32>, vector<8x8xf32> -> vector<8x8xf32>
    "tpu.trace_stop"() : () -> ()
    %96 = arith.addf %95, %5 : vector<8x8xf32>
    %cst_83 = arith.constant dense<0xFF800000> : vector<8xf32>
    %97 = vector.multi_reduction <maximumf>, %96, %cst_83 [1] : vector<8x8xf32> to vector<8xf32>
    %98 = vector.shape_cast %97 : vector<8xf32> to vector<8x1xf32>
    %99 = vector.broadcast %98 : vector<8x1xf32> to vector<8x8xf32>
    %100 = arith.subf %96, %99 : vector<8x8xf32>
    %101 = math.exp %100 : vector<8x8xf32>
    %cst_84 = arith.constant dense<0.000000e+00> : vector<8xf32>
    %102 = vector.multi_reduction <add>, %101, %cst_84 [1] : vector<8x8xf32> to vector<8xf32>
    %103 = vector.shape_cast %102 : vector<8xf32> to vector<8x1xf32>
    %104 = tpu.reciprocal %103 {approx = true} : vector<8x1xf32> -> vector<8x1xf32>
    %105 = vector.broadcast %104 : vector<8x1xf32> to vector<8x8xf32>
    %106 = arith.mulf %101, %105 : vector<8x8xf32>
    %cst_85 = arith.constant dense<0.000000e+00> : vector<8x8xf32>
    %107 = tpu.matmul %106, %94, %cst_85 {dimension_numbers = #tpu.dot_dimension_numbers<[1], [0], [0], [1], [0, 0, 1, 1], [], []>} : vector<8x8xf32>, vector<8x8xf32>, vector<8x8xf32> -> vector<8x8xf32>
    %108 = vector.extract_strided_slice %14 {offsets = [8, 0], sizes = [8, 32], strides = [1, 1]} : vector<32x32xf32> to vector<8x32xf32>
    %cst_86 = arith.constant dense<0.000000e+00> : vector<8x32xf32>
    %109 = tpu.matmul %107, %108, %cst_86 {dimension_numbers = #tpu.dot_dimension_numbers<[1], [0], [0], [1], [0, 0, 1, 1], [], []>} : vector<8x8xf32>, vector<8x32xf32>, vector<8x32xf32> -> vector<8x32xf32>
    %110 = arith.addf %91, %109 : vector<8x32xf32>
    %111 = vector.extract_strided_slice %65 {offsets = [0, 16], sizes = [8, 8], strides = [1, 1]} : vector<8x32xf32> to vector<8x8xf32>
    %112 = vector.extract_strided_slice %68 {offsets = [0, 16], sizes = [8, 8], strides = [1, 1]} : vector<8x32xf32> to vector<8x8xf32>
    %113 = vector.extract_strided_slice %71 {offsets = [0, 16], sizes = [8, 8], strides = [1, 1]} : vector<8x32xf32> to vector<8x8xf32>
    "tpu.trace_start"() <{level = 10 : i32, message = "qc,kc->qk"}> : () -> ()
    %cst_87 = arith.constant dense<0.000000e+00> : vector<8x8xf32>
    %114 = tpu.matmul %111, %112, %cst_87 {dimension_numbers = #tpu.dot_dimension_numbers<[1], [1], [0], [0], [0, 0, 1, 0], [], []>} : vector<8x8xf32>, vector<8x8xf32>, vector<8x8xf32> -> vector<8x8xf32>
    "tpu.trace_stop"() : () -> ()
    %115 = arith.addf %114, %5 : vector<8x8xf32>
    %cst_88 = arith.constant dense<0xFF800000> : vector<8xf32>
    %116 = vector.multi_reduction <maximumf>, %115, %cst_88 [1] : vector<8x8xf32> to vector<8xf32>
    %117 = vector.shape_cast %116 : vector<8xf32> to vector<8x1xf32>
    %118 = vector.broadcast %117 : vector<8x1xf32> to vector<8x8xf32>
    %119 = arith.subf %115, %118 : vector<8x8xf32>
    %120 = math.exp %119 : vector<8x8xf32>
    %cst_89 = arith.constant dense<0.000000e+00> : vector<8xf32>
    %121 = vector.multi_reduction <add>, %120, %cst_89 [1] : vector<8x8xf32> to vector<8xf32>
    %122 = vector.shape_cast %121 : vector<8xf32> to vector<8x1xf32>
    %123 = tpu.reciprocal %122 {approx = true} : vector<8x1xf32> -> vector<8x1xf32>
    %124 = vector.broadcast %123 : vector<8x1xf32> to vector<8x8xf32>
    %125 = arith.mulf %120, %124 : vector<8x8xf32>
    %cst_90 = arith.constant dense<0.000000e+00> : vector<8x8xf32>
    %126 = tpu.matmul %125, %113, %cst_90 {dimension_numbers = #tpu.dot_dimension_numbers<[1], [0], [0], [1], [0, 0, 1, 1], [], []>} : vector<8x8xf32>, vector<8x8xf32>, vector<8x8xf32> -> vector<8x8xf32>
    %127 = vector.extract_strided_slice %14 {offsets = [16, 0], sizes = [8, 32], strides = [1, 1]} : vector<32x32xf32> to vector<8x32xf32>
    %cst_91 = arith.constant dense<0.000000e+00> : vector<8x32xf32>
    %128 = tpu.matmul %126, %127, %cst_91 {dimension_numbers = #tpu.dot_dimension_numbers<[1], [0], [0], [1], [0, 0, 1, 1], [], []>} : vector<8x8xf32>, vector<8x32xf32>, vector<8x32xf32> -> vector<8x32xf32>
    %129 = arith.addf %110, %128 : vector<8x32xf32>
    %130 = vector.extract_strided_slice %65 {offsets = [0, 24], sizes = [8, 8], strides = [1, 1]} : vector<8x32xf32> to vector<8x8xf32>
    %131 = vector.extract_strided_slice %68 {offsets = [0, 24], sizes = [8, 8], strides = [1, 1]} : vector<8x32xf32> to vector<8x8xf32>
    %132 = vector.extract_strided_slice %71 {offsets = [0, 24], sizes = [8, 8], strides = [1, 1]} : vector<8x32xf32> to vector<8x8xf32>
    "tpu.trace_start"() <{level = 10 : i32, message = "qc,kc->qk"}> : () -> ()
    %cst_92 = arith.constant dense<0.000000e+00> : vector<8x8xf32>
    %133 = tpu.matmul %130, %131, %cst_92 {dimension_numbers = #tpu.dot_dimension_numbers<[1], [1], [0], [0], [0, 0, 1, 0], [], []>} : vector<8x8xf32>, vector<8x8xf32>, vector<8x8xf32> -> vector<8x8xf32>
    "tpu.trace_stop"() : () -> ()
    %134 = arith.addf %133, %5 : vector<8x8xf32>
    %cst_93 = arith.constant dense<0xFF800000> : vector<8xf32>
    %135 = vector.multi_reduction <maximumf>, %134, %cst_93 [1] : vector<8x8xf32> to vector<8xf32>
    %136 = vector.shape_cast %135 : vector<8xf32> to vector<8x1xf32>
    %137 = vector.broadcast %136 : vector<8x1xf32> to vector<8x8xf32>
    %138 = arith.subf %134, %137 : vector<8x8xf32>
    %139 = math.exp %138 : vector<8x8xf32>
    %cst_94 = arith.constant dense<0.000000e+00> : vector<8xf32>
    %140 = vector.multi_reduction <add>, %139, %cst_94 [1] : vector<8x8xf32> to vector<8xf32>
    %141 = vector.shape_cast %140 : vector<8xf32> to vector<8x1xf32>
    %142 = tpu.reciprocal %141 {approx = true} : vector<8x1xf32> -> vector<8x1xf32>
    %143 = vector.broadcast %142 : vector<8x1xf32> to vector<8x8xf32>
    %144 = arith.mulf %139, %143 : vector<8x8xf32>
    %cst_95 = arith.constant dense<0.000000e+00> : vector<8x8xf32>
    %145 = tpu.matmul %144, %132, %cst_95 {dimension_numbers = #tpu.dot_dimension_numbers<[1], [0], [0], [1], [0, 0, 1, 1], [], []>} : vector<8x8xf32>, vector<8x8xf32>, vector<8x8xf32> -> vector<8x8xf32>
    %146 = vector.extract_strided_slice %14 {offsets = [24, 0], sizes = [8, 32], strides = [1, 1]} : vector<32x32xf32> to vector<8x32xf32>
    %cst_96 = arith.constant dense<0.000000e+00> : vector<8x32xf32>
    %147 = tpu.matmul %145, %146, %cst_96 {dimension_numbers = #tpu.dot_dimension_numbers<[1], [0], [0], [1], [0, 0, 1, 1], [], []>} : vector<8x8xf32>, vector<8x32xf32>, vector<8x32xf32> -> vector<8x32xf32>
    %148 = arith.addf %129, %147 : vector<8x32xf32>
    %149 = vector.broadcast %15 : vector<1x32xf32> to vector<8x32xf32>
    %150 = arith.addf %148, %149 : vector<8x32xf32>
    %151 = arith.addf %1, %150 : vector<8x32xf32>
    %cst_97 = arith.constant dense<0.000000e+00> : vector<8xf32>
    %152 = vector.multi_reduction <add>, %151, %cst_97 [1] : vector<8x32xf32> to vector<8xf32>
    %153 = vector.shape_cast %152 : vector<8xf32> to vector<8x1xf32>
    %154 = arith.mulf %151, %151 : vector<8x32xf32>
    %cst_98 = arith.constant dense<0.000000e+00> : vector<8xf32>
    %155 = vector.multi_reduction <add>, %154, %cst_98 [1] : vector<8x32xf32> to vector<8xf32>
    %156 = vector.shape_cast %155 : vector<8xf32> to vector<8x1xf32>
    %cst_99 = arith.constant 3.125000e-02 : f32
    %157 = vector.broadcast %cst_99 : f32 to vector<8x1xf32>
    %158 = arith.mulf %153, %157 : vector<8x1xf32>
    %159 = arith.mulf %153, %158 : vector<8x1xf32>
    %160 = arith.subf %156, %159 : vector<8x1xf32>
    %cst_100 = arith.constant 0.0322580636 : f32
    %161 = vector.broadcast %cst_100 : f32 to vector<8x1xf32>
    %162 = arith.mulf %160, %161 : vector<8x1xf32>
    %cst_101 = arith.constant 0.000000e+00 : f32
    %163 = vector.broadcast %cst_101 : f32 to vector<8x1xf32>
    %164 = arith.maximumf %162, %163 : vector<8x1xf32>
    %165 = math.sqrt %164 : vector<8x1xf32>
    %cst_102 = arith.constant 9.99999997E-7 : f32
    %166 = vector.broadcast %cst_102 : f32 to vector<8x1xf32>
    %167 = arith.addf %165, %166 : vector<8x1xf32>
    %168 = tpu.reciprocal %167 {approx = true} : vector<8x1xf32> -> vector<8x1xf32>
    %169 = vector.broadcast %158 : vector<8x1xf32> to vector<8x32xf32>
    %170 = arith.subf %151, %169 : vector<8x32xf32>
    %171 = vector.broadcast %168 : vector<8x1xf32> to vector<8x32xf32>
    %172 = arith.mulf %170, %171 : vector<8x32xf32>
    %173 = vector.broadcast %30 : vector<1x32xf32> to vector<8x32xf32>
    %174 = arith.mulf %173, %172 : vector<8x32xf32>
    %175 = vector.broadcast %31 : vector<1x32xf32> to vector<8x32xf32>
    %176 = arith.addf %174, %175 : vector<8x32xf32>
    %cst_103 = arith.constant dense<0.000000e+00> : vector<8x32xf32>
    %177 = tpu.matmul %176, %16, %cst_103 {dimension_numbers = #tpu.dot_dimension_numbers<[1], [0], [0], [1], [0, 0, 1, 1], [], []>} : vector<8x32xf32>, vector<32x32xf32>, vector<8x32xf32> -> vector<8x32xf32>
    %178 = vector.broadcast %17 : vector<1x32xf32> to vector<8x32xf32>
    %179 = arith.addf %177, %178 : vector<8x32xf32>
    %cst_104 = arith.constant 0.353553385 : f32
    %180 = vector.broadcast %cst_104 : f32 to vector<8x32xf32>
    %181 = arith.mulf %179, %180 : vector<8x32xf32>
    %cst_105 = arith.constant dense<0.000000e+00> : vector<8x32xf32>
    %182 = tpu.matmul %3, %18, %cst_105 {dimension_numbers = #tpu.dot_dimension_numbers<[1], [0], [0], [1], [0, 0, 1, 1], [], []>} : vector<8x32xf32>, vector<32x32xf32>, vector<8x32xf32> -> vector<8x32xf32>
    %183 = vector.broadcast %19 : vector<1x32xf32> to vector<8x32xf32>
    %184 = arith.addf %182, %183 : vector<8x32xf32>
    %cst_106 = arith.constant dense<0.000000e+00> : vector<8x32xf32>
    %185 = tpu.matmul %3, %20, %cst_106 {dimension_numbers = #tpu.dot_dimension_numbers<[1], [0], [0], [1], [0, 0, 1, 1], [], []>} : vector<8x32xf32>, vector<32x32xf32>, vector<8x32xf32> -> vector<8x32xf32>
    %186 = vector.broadcast %21 : vector<1x32xf32> to vector<8x32xf32>
    %187 = arith.addf %185, %186 : vector<8x32xf32>
    %cst_107 = arith.constant 0.000000e+00 : f32
    %188 = vector.broadcast %cst_107 : f32 to vector<8x32xf32>
    %189 = vector.extract_strided_slice %181 {offsets = [0, 0], sizes = [8, 8], strides = [1, 1]} : vector<8x32xf32> to vector<8x8xf32>
    %190 = vector.extract_strided_slice %184 {offsets = [0, 0], sizes = [8, 8], strides = [1, 1]} : vector<8x32xf32> to vector<8x8xf32>
    %191 = vector.extract_strided_slice %187 {offsets = [0, 0], sizes = [8, 8], strides = [1, 1]} : vector<8x32xf32> to vector<8x8xf32>
    "tpu.trace_start"() <{level = 10 : i32, message = "qc,kc->qk"}> : () -> ()
    %cst_108 = arith.constant dense<0.000000e+00> : vector<8x8xf32>
    %192 = tpu.matmul %189, %190, %cst_108 {dimension_numbers = #tpu.dot_dimension_numbers<[1], [1], [0], [0], [0, 0, 1, 0], [], []>} : vector<8x8xf32>, vector<8x8xf32>, vector<8x8xf32> -> vector<8x8xf32>
    "tpu.trace_stop"() : () -> ()
    %193 = arith.addf %192, %7 : vector<8x8xf32>
    %cst_109 = arith.constant dense<0xFF800000> : vector<8xf32>
    %194 = vector.multi_reduction <maximumf>, %193, %cst_109 [1] : vector<8x8xf32> to vector<8xf32>
    %195 = vector.shape_cast %194 : vector<8xf32> to vector<8x1xf32>
    %196 = vector.broadcast %195 : vector<8x1xf32> to vector<8x8xf32>
    %197 = arith.subf %193, %196 : vector<8x8xf32>
    %198 = math.exp %197 : vector<8x8xf32>
    %cst_110 = arith.constant dense<0.000000e+00> : vector<8xf32>
    %199 = vector.multi_reduction <add>, %198, %cst_110 [1] : vector<8x8xf32> to vector<8xf32>
    %200 = vector.shape_cast %199 : vector<8xf32> to vector<8x1xf32>
    %201 = tpu.reciprocal %200 {approx = true} : vector<8x1xf32> -> vector<8x1xf32>
    %202 = vector.broadcast %201 : vector<8x1xf32> to vector<8x8xf32>
    %203 = arith.mulf %198, %202 : vector<8x8xf32>
    %cst_111 = arith.constant dense<0.000000e+00> : vector<8x8xf32>
    %204 = tpu.matmul %203, %191, %cst_111 {dimension_numbers = #tpu.dot_dimension_numbers<[1], [0], [0], [1], [0, 0, 1, 1], [], []>} : vector<8x8xf32>, vector<8x8xf32>, vector<8x8xf32> -> vector<8x8xf32>
    %205 = vector.extract_strided_slice %22 {offsets = [0, 0], sizes = [8, 32], strides = [1, 1]} : vector<32x32xf32> to vector<8x32xf32>
    %cst_112 = arith.constant dense<0.000000e+00> : vector<8x32xf32>
    %206 = tpu.matmul %204, %205, %cst_112 {dimension_numbers = #tpu.dot_dimension_numbers<[1], [0], [0], [1], [0, 0, 1, 1], [], []>} : vector<8x8xf32>, vector<8x32xf32>, vector<8x32xf32> -> vector<8x32xf32>
    %207 = arith.addf %188, %206 : vector<8x32xf32>
    %208 = vector.extract_strided_slice %181 {offsets = [0, 8], sizes = [8, 8], strides = [1, 1]} : vector<8x32xf32> to vector<8x8xf32>
    %209 = vector.extract_strided_slice %184 {offsets = [0, 8], sizes = [8, 8], strides = [1, 1]} : vector<8x32xf32> to vector<8x8xf32>
    %210 = vector.extract_strided_slice %187 {offsets = [0, 8], sizes = [8, 8], strides = [1, 1]} : vector<8x32xf32> to vector<8x8xf32>
    "tpu.trace_start"() <{level = 10 : i32, message = "qc,kc->qk"}> : () -> ()
    %cst_113 = arith.constant dense<0.000000e+00> : vector<8x8xf32>
    %211 = tpu.matmul %208, %209, %cst_113 {dimension_numbers = #tpu.dot_dimension_numbers<[1], [1], [0], [0], [0, 0, 1, 0], [], []>} : vector<8x8xf32>, vector<8x8xf32>, vector<8x8xf32> -> vector<8x8xf32>
    "tpu.trace_stop"() : () -> ()
    %212 = arith.addf %211, %7 : vector<8x8xf32>
    %cst_114 = arith.constant dense<0xFF800000> : vector<8xf32>
    %213 = vector.multi_reduction <maximumf>, %212, %cst_114 [1] : vector<8x8xf32> to vector<8xf32>
    %214 = vector.shape_cast %213 : vector<8xf32> to vector<8x1xf32>
    %215 = vector.broadcast %214 : vector<8x1xf32> to vector<8x8xf32>
    %216 = arith.subf %212, %215 : vector<8x8xf32>
    %217 = math.exp %216 : vector<8x8xf32>
    %cst_115 = arith.constant dense<0.000000e+00> : vector<8xf32>
    %218 = vector.multi_reduction <add>, %217, %cst_115 [1] : vector<8x8xf32> to vector<8xf32>
    %219 = vector.shape_cast %218 : vector<8xf32> to vector<8x1xf32>
    %220 = tpu.reciprocal %219 {approx = true} : vector<8x1xf32> -> vector<8x1xf32>
    %221 = vector.broadcast %220 : vector<8x1xf32> to vector<8x8xf32>
    %222 = arith.mulf %217, %221 : vector<8x8xf32>
    %cst_116 = arith.constant dense<0.000000e+00> : vector<8x8xf32>
    %223 = tpu.matmul %222, %210, %cst_116 {dimension_numbers = #tpu.dot_dimension_numbers<[1], [0], [0], [1], [0, 0, 1, 1], [], []>} : vector<8x8xf32>, vector<8x8xf32>, vector<8x8xf32> -> vector<8x8xf32>
    %224 = vector.extract_strided_slice %22 {offsets = [8, 0], sizes = [8, 32], strides = [1, 1]} : vector<32x32xf32> to vector<8x32xf32>
    %cst_117 = arith.constant dense<0.000000e+00> : vector<8x32xf32>
    %225 = tpu.matmul %223, %224, %cst_117 {dimension_numbers = #tpu.dot_dimension_numbers<[1], [0], [0], [1], [0, 0, 1, 1], [], []>} : vector<8x8xf32>, vector<8x32xf32>, vector<8x32xf32> -> vector<8x32xf32>
    %226 = arith.addf %207, %225 : vector<8x32xf32>
    %227 = vector.extract_strided_slice %181 {offsets = [0, 16], sizes = [8, 8], strides = [1, 1]} : vector<8x32xf32> to vector<8x8xf32>
    %228 = vector.extract_strided_slice %184 {offsets = [0, 16], sizes = [8, 8], strides = [1, 1]} : vector<8x32xf32> to vector<8x8xf32>
    %229 = vector.extract_strided_slice %187 {offsets = [0, 16], sizes = [8, 8], strides = [1, 1]} : vector<8x32xf32> to vector<8x8xf32>
    "tpu.trace_start"() <{level = 10 : i32, message = "qc,kc->qk"}> : () -> ()
    %cst_118 = arith.constant dense<0.000000e+00> : vector<8x8xf32>
    %230 = tpu.matmul %227, %228, %cst_118 {dimension_numbers = #tpu.dot_dimension_numbers<[1], [1], [0], [0], [0, 0, 1, 0], [], []>} : vector<8x8xf32>, vector<8x8xf32>, vector<8x8xf32> -> vector<8x8xf32>
    "tpu.trace_stop"() : () -> ()
    %231 = arith.addf %230, %7 : vector<8x8xf32>
    %cst_119 = arith.constant dense<0xFF800000> : vector<8xf32>
    %232 = vector.multi_reduction <maximumf>, %231, %cst_119 [1] : vector<8x8xf32> to vector<8xf32>
    %233 = vector.shape_cast %232 : vector<8xf32> to vector<8x1xf32>
    %234 = vector.broadcast %233 : vector<8x1xf32> to vector<8x8xf32>
    %235 = arith.subf %231, %234 : vector<8x8xf32>
    %236 = math.exp %235 : vector<8x8xf32>
    %cst_120 = arith.constant dense<0.000000e+00> : vector<8xf32>
    %237 = vector.multi_reduction <add>, %236, %cst_120 [1] : vector<8x8xf32> to vector<8xf32>
    %238 = vector.shape_cast %237 : vector<8xf32> to vector<8x1xf32>
    %239 = tpu.reciprocal %238 {approx = true} : vector<8x1xf32> -> vector<8x1xf32>
    %240 = vector.broadcast %239 : vector<8x1xf32> to vector<8x8xf32>
    %241 = arith.mulf %236, %240 : vector<8x8xf32>
    %cst_121 = arith.constant dense<0.000000e+00> : vector<8x8xf32>
    %242 = tpu.matmul %241, %229, %cst_121 {dimension_numbers = #tpu.dot_dimension_numbers<[1], [0], [0], [1], [0, 0, 1, 1], [], []>} : vector<8x8xf32>, vector<8x8xf32>, vector<8x8xf32> -> vector<8x8xf32>
    %243 = vector.extract_strided_slice %22 {offsets = [16, 0], sizes = [8, 32], strides = [1, 1]} : vector<32x32xf32> to vector<8x32xf32>
    %cst_122 = arith.constant dense<0.000000e+00> : vector<8x32xf32>
    %244 = tpu.matmul %242, %243, %cst_122 {dimension_numbers = #tpu.dot_dimension_numbers<[1], [0], [0], [1], [0, 0, 1, 1], [], []>} : vector<8x8xf32>, vector<8x32xf32>, vector<8x32xf32> -> vector<8x32xf32>
    %245 = arith.addf %226, %244 : vector<8x32xf32>
    %246 = vector.extract_strided_slice %181 {offsets = [0, 24], sizes = [8, 8], strides = [1, 1]} : vector<8x32xf32> to vector<8x8xf32>
    %247 = vector.extract_strided_slice %184 {offsets = [0, 24], sizes = [8, 8], strides = [1, 1]} : vector<8x32xf32> to vector<8x8xf32>
    %248 = vector.extract_strided_slice %187 {offsets = [0, 24], sizes = [8, 8], strides = [1, 1]} : vector<8x32xf32> to vector<8x8xf32>
    "tpu.trace_start"() <{level = 10 : i32, message = "qc,kc->qk"}> : () -> ()
    %cst_123 = arith.constant dense<0.000000e+00> : vector<8x8xf32>
    %249 = tpu.matmul %246, %247, %cst_123 {dimension_numbers = #tpu.dot_dimension_numbers<[1], [1], [0], [0], [0, 0, 1, 0], [], []>} : vector<8x8xf32>, vector<8x8xf32>, vector<8x8xf32> -> vector<8x8xf32>
    "tpu.trace_stop"() : () -> ()
    %250 = arith.addf %249, %7 : vector<8x8xf32>
    %cst_124 = arith.constant dense<0xFF800000> : vector<8xf32>
    %251 = vector.multi_reduction <maximumf>, %250, %cst_124 [1] : vector<8x8xf32> to vector<8xf32>
    %252 = vector.shape_cast %251 : vector<8xf32> to vector<8x1xf32>
    %253 = vector.broadcast %252 : vector<8x1xf32> to vector<8x8xf32>
    %254 = arith.subf %250, %253 : vector<8x8xf32>
    %255 = math.exp %254 : vector<8x8xf32>
    %cst_125 = arith.constant dense<0.000000e+00> : vector<8xf32>
    %256 = vector.multi_reduction <add>, %255, %cst_125 [1] : vector<8x8xf32> to vector<8xf32>
    %257 = vector.shape_cast %256 : vector<8xf32> to vector<8x1xf32>
    %258 = tpu.reciprocal %257 {approx = true} : vector<8x1xf32> -> vector<8x1xf32>
    %259 = vector.broadcast %258 : vector<8x1xf32> to vector<8x8xf32>
    %260 = arith.mulf %255, %259 : vector<8x8xf32>
    %cst_126 = arith.constant dense<0.000000e+00> : vector<8x8xf32>
    %261 = tpu.matmul %260, %248, %cst_126 {dimension_numbers = #tpu.dot_dimension_numbers<[1], [0], [0], [1], [0, 0, 1, 1], [], []>} : vector<8x8xf32>, vector<8x8xf32>, vector<8x8xf32> -> vector<8x8xf32>
    %262 = vector.extract_strided_slice %22 {offsets = [24, 0], sizes = [8, 32], strides = [1, 1]} : vector<32x32xf32> to vector<8x32xf32>
    %cst_127 = arith.constant dense<0.000000e+00> : vector<8x32xf32>
    %263 = tpu.matmul %261, %262, %cst_127 {dimension_numbers = #tpu.dot_dimension_numbers<[1], [0], [0], [1], [0, 0, 1, 1], [], []>} : vector<8x8xf32>, vector<8x32xf32>, vector<8x32xf32> -> vector<8x32xf32>
    %264 = arith.addf %245, %263 : vector<8x32xf32>
    %265 = vector.broadcast %23 : vector<1x32xf32> to vector<8x32xf32>
    %266 = arith.addf %264, %265 : vector<8x32xf32>
    %267 = arith.addf %151, %266 : vector<8x32xf32>
    %cst_128 = arith.constant dense<0.000000e+00> : vector<8xf32>
    %268 = vector.multi_reduction <add>, %267, %cst_128 [1] : vector<8x32xf32> to vector<8xf32>
    %269 = vector.shape_cast %268 : vector<8xf32> to vector<8x1xf32>
    %270 = arith.mulf %267, %267 : vector<8x32xf32>
    %cst_129 = arith.constant dense<0.000000e+00> : vector<8xf32>
    %271 = vector.multi_reduction <add>, %270, %cst_129 [1] : vector<8x32xf32> to vector<8xf32>
    %272 = vector.shape_cast %271 : vector<8xf32> to vector<8x1xf32>
    %cst_130 = arith.constant 3.125000e-02 : f32
    %273 = vector.broadcast %cst_130 : f32 to vector<8x1xf32>
    %274 = arith.mulf %269, %273 : vector<8x1xf32>
    %275 = arith.mulf %269, %274 : vector<8x1xf32>
    %276 = arith.subf %272, %275 : vector<8x1xf32>
    %cst_131 = arith.constant 0.0322580636 : f32
    %277 = vector.broadcast %cst_131 : f32 to vector<8x1xf32>
    %278 = arith.mulf %276, %277 : vector<8x1xf32>
    %cst_132 = arith.constant 0.000000e+00 : f32
    %279 = vector.broadcast %cst_132 : f32 to vector<8x1xf32>
    %280 = arith.maximumf %278, %279 : vector<8x1xf32>
    %281 = math.sqrt %280 : vector<8x1xf32>
    %cst_133 = arith.constant 9.99999997E-7 : f32
    %282 = vector.broadcast %cst_133 : f32 to vector<8x1xf32>
    %283 = arith.addf %281, %282 : vector<8x1xf32>
    %284 = tpu.reciprocal %283 {approx = true} : vector<8x1xf32> -> vector<8x1xf32>
    %285 = vector.broadcast %274 : vector<8x1xf32> to vector<8x32xf32>
    %286 = arith.subf %267, %285 : vector<8x32xf32>
    %287 = vector.broadcast %284 : vector<8x1xf32> to vector<8x32xf32>
    %288 = arith.mulf %286, %287 : vector<8x32xf32>
    %289 = vector.broadcast %32 : vector<1x32xf32> to vector<8x32xf32>
    %290 = arith.mulf %289, %288 : vector<8x32xf32>
    %291 = vector.broadcast %33 : vector<1x32xf32> to vector<8x32xf32>
    %292 = arith.addf %290, %291 : vector<8x32xf32>
    %cst_134 = arith.constant dense<0.000000e+00> : vector<8x64xf32>
    %293 = tpu.matmul %292, %24, %cst_134 {dimension_numbers = #tpu.dot_dimension_numbers<[1], [0], [0], [1], [0, 0, 1, 1], [], []>} : vector<8x32xf32>, vector<32x64xf32>, vector<8x64xf32> -> vector<8x64xf32>
    %294 = vector.broadcast %25 : vector<1x64xf32> to vector<8x64xf32>
    %295 = arith.addf %293, %294 : vector<8x64xf32>
    %cst_135 = arith.constant 0.000000e+00 : f32
    %296 = vector.broadcast %cst_135 : f32 to vector<8x64xf32>
    %297 = arith.maximumf %295, %296 : vector<8x64xf32>
    %cst_136 = arith.constant dense<0.000000e+00> : vector<8x32xf32>
    %298 = tpu.matmul %297, %26, %cst_136 {dimension_numbers = #tpu.dot_dimension_numbers<[1], [0], [0], [1], [0, 0, 1, 1], [], []>} : vector<8x64xf32>, vector<64x32xf32>, vector<8x32xf32> -> vector<8x32xf32>
    %299 = vector.broadcast %27 : vector<1x32xf32> to vector<8x32xf32>
    %300 = arith.addf %298, %299 : vector<8x32xf32>
    %301 = arith.addf %267, %300 : vector<8x32xf32>
    %cst_137 = arith.constant dense<0.000000e+00> : vector<8xf32>
    %302 = vector.multi_reduction <add>, %301, %cst_137 [1] : vector<8x32xf32> to vector<8xf32>
    %303 = vector.shape_cast %302 : vector<8xf32> to vector<8x1xf32>
    %304 = arith.mulf %301, %301 : vector<8x32xf32>
    %cst_138 = arith.constant dense<0.000000e+00> : vector<8xf32>
    %305 = vector.multi_reduction <add>, %304, %cst_138 [1] : vector<8x32xf32> to vector<8xf32>
    %306 = vector.shape_cast %305 : vector<8xf32> to vector<8x1xf32>
    %cst_139 = arith.constant 3.125000e-02 : f32
    %307 = vector.broadcast %cst_139 : f32 to vector<8x1xf32>
    %308 = arith.mulf %303, %307 : vector<8x1xf32>
    %309 = arith.mulf %303, %308 : vector<8x1xf32>
    %310 = arith.subf %306, %309 : vector<8x1xf32>
    %cst_140 = arith.constant 0.0322580636 : f32
    %311 = vector.broadcast %cst_140 : f32 to vector<8x1xf32>
    %312 = arith.mulf %310, %311 : vector<8x1xf32>
    %cst_141 = arith.constant 0.000000e+00 : f32
    %313 = vector.broadcast %cst_141 : f32 to vector<8x1xf32>
    %314 = arith.maximumf %312, %313 : vector<8x1xf32>
    %315 = math.sqrt %314 : vector<8x1xf32>
    %cst_142 = arith.constant 9.99999997E-7 : f32
    %316 = vector.broadcast %cst_142 : f32 to vector<8x1xf32>
    %317 = arith.addf %315, %316 : vector<8x1xf32>
    %318 = tpu.reciprocal %317 {approx = true} : vector<8x1xf32> -> vector<8x1xf32>
    %319 = vector.broadcast %308 : vector<8x1xf32> to vector<8x32xf32>
    %320 = arith.subf %301, %319 : vector<8x32xf32>
    %321 = vector.broadcast %318 : vector<8x1xf32> to vector<8x32xf32>
    %322 = arith.mulf %320, %321 : vector<8x32xf32>
    %323 = vector.broadcast %28 : vector<1x32xf32> to vector<8x32xf32>
    %324 = arith.mulf %323, %322 : vector<8x32xf32>
    %325 = vector.broadcast %29 : vector<1x32xf32> to vector<8x32xf32>
    %326 = arith.addf %324, %325 : vector<8x32xf32>
    %cst_143 = arith.constant dense<0.000000e+00> : vector<8x32xf32>
    %327 = tpu.matmul %326, %8, %cst_143 {dimension_numbers = #tpu.dot_dimension_numbers<[1], [0], [0], [1], [0, 0, 1, 1], [], []>} : vector<8x32xf32>, vector<32x32xf32>, vector<8x32xf32> -> vector<8x32xf32>
    %328 = vector.broadcast %9 : vector<1x32xf32> to vector<8x32xf32>
    %329 = arith.addf %327, %328 : vector<8x32xf32>
    %cst_144 = arith.constant 0.353553385 : f32
    %330 = vector.broadcast %cst_144 : f32 to vector<8x32xf32>
    %331 = arith.mulf %329, %330 : vector<8x32xf32>
    %cst_145 = arith.constant dense<0.000000e+00> : vector<8x32xf32>
    %332 = tpu.matmul %326, %10, %cst_145 {dimension_numbers = #tpu.dot_dimension_numbers<[1], [0], [0], [1], [0, 0, 1, 1], [], []>} : vector<8x32xf32>, vector<32x32xf32>, vector<8x32xf32> -> vector<8x32xf32>
    %333 = vector.broadcast %11 : vector<1x32xf32> to vector<8x32xf32>
    %334 = arith.addf %332, %333 : vector<8x32xf32>
    %cst_146 = arith.constant dense<0.000000e+00> : vector<8x32xf32>
    %335 = tpu.matmul %326, %12, %cst_146 {dimension_numbers = #tpu.dot_dimension_numbers<[1], [0], [0], [1], [0, 0, 1, 1], [], []>} : vector<8x32xf32>, vector<32x32xf32>, vector<8x32xf32> -> vector<8x32xf32>
    %336 = vector.broadcast %13 : vector<1x32xf32> to vector<8x32xf32>
    %337 = arith.addf %335, %336 : vector<8x32xf32>
    %cst_147 = arith.constant 0.000000e+00 : f32
    %338 = vector.broadcast %cst_147 : f32 to vector<8x32xf32>
    %339 = vector.extract_strided_slice %331 {offsets = [0, 0], sizes = [8, 8], strides = [1, 1]} : vector<8x32xf32> to vector<8x8xf32>
    %340 = vector.extract_strided_slice %334 {offsets = [0, 0], sizes = [8, 8], strides = [1, 1]} : vector<8x32xf32> to vector<8x8xf32>
    %341 = vector.extract_strided_slice %337 {offsets = [0, 0], sizes = [8, 8], strides = [1, 1]} : vector<8x32xf32> to vector<8x8xf32>
    "tpu.trace_start"() <{level = 10 : i32, message = "qc,kc->qk"}> : () -> ()
    %cst_148 = arith.constant dense<0.000000e+00> : vector<8x8xf32>
    %342 = tpu.matmul %339, %340, %cst_148 {dimension_numbers = #tpu.dot_dimension_numbers<[1], [1], [0], [0], [0, 0, 1, 0], [], []>} : vector<8x8xf32>, vector<8x8xf32>, vector<8x8xf32> -> vector<8x8xf32>
    "tpu.trace_stop"() : () -> ()
    %343 = arith.addf %342, %5 : vector<8x8xf32>
    %cst_149 = arith.constant dense<0xFF800000> : vector<8xf32>
    %344 = vector.multi_reduction <maximumf>, %343, %cst_149 [1] : vector<8x8xf32> to vector<8xf32>
    %345 = vector.shape_cast %344 : vector<8xf32> to vector<8x1xf32>
    %346 = vector.broadcast %345 : vector<8x1xf32> to vector<8x8xf32>
    %347 = arith.subf %343, %346 : vector<8x8xf32>
    %348 = math.exp %347 : vector<8x8xf32>
    %cst_150 = arith.constant dense<0.000000e+00> : vector<8xf32>
    %349 = vector.multi_reduction <add>, %348, %cst_150 [1] : vector<8x8xf32> to vector<8xf32>
    %350 = vector.shape_cast %349 : vector<8xf32> to vector<8x1xf32>
    %351 = tpu.reciprocal %350 {approx = true} : vector<8x1xf32> -> vector<8x1xf32>
    %352 = vector.broadcast %351 : vector<8x1xf32> to vector<8x8xf32>
    %353 = arith.mulf %348, %352 : vector<8x8xf32>
    %cst_151 = arith.constant dense<0.000000e+00> : vector<8x8xf32>
    %354 = tpu.matmul %353, %341, %cst_151 {dimension_numbers = #tpu.dot_dimension_numbers<[1], [0], [0], [1], [0, 0, 1, 1], [], []>} : vector<8x8xf32>, vector<8x8xf32>, vector<8x8xf32> -> vector<8x8xf32>
    %355 = vector.extract_strided_slice %14 {offsets = [0, 0], sizes = [8, 32], strides = [1, 1]} : vector<32x32xf32> to vector<8x32xf32>
    %cst_152 = arith.constant dense<0.000000e+00> : vector<8x32xf32>
    %356 = tpu.matmul %354, %355, %cst_152 {dimension_numbers = #tpu.dot_dimension_numbers<[1], [0], [0], [1], [0, 0, 1, 1], [], []>} : vector<8x8xf32>, vector<8x32xf32>, vector<8x32xf32> -> vector<8x32xf32>
    %357 = arith.addf %338, %356 : vector<8x32xf32>
    %358 = vector.extract_strided_slice %331 {offsets = [0, 8], sizes = [8, 8], strides = [1, 1]} : vector<8x32xf32> to vector<8x8xf32>
    %359 = vector.extract_strided_slice %334 {offsets = [0, 8], sizes = [8, 8], strides = [1, 1]} : vector<8x32xf32> to vector<8x8xf32>
    %360 = vector.extract_strided_slice %337 {offsets = [0, 8], sizes = [8, 8], strides = [1, 1]} : vector<8x32xf32> to vector<8x8xf32>
    "tpu.trace_start"() <{level = 10 : i32, message = "qc,kc->qk"}> : () -> ()
    %cst_153 = arith.constant dense<0.000000e+00> : vector<8x8xf32>
    %361 = tpu.matmul %358, %359, %cst_153 {dimension_numbers = #tpu.dot_dimension_numbers<[1], [1], [0], [0], [0, 0, 1, 0], [], []>} : vector<8x8xf32>, vector<8x8xf32>, vector<8x8xf32> -> vector<8x8xf32>
    "tpu.trace_stop"() : () -> ()
    %362 = arith.addf %361, %5 : vector<8x8xf32>
    %cst_154 = arith.constant dense<0xFF800000> : vector<8xf32>
    %363 = vector.multi_reduction <maximumf>, %362, %cst_154 [1] : vector<8x8xf32> to vector<8xf32>
    %364 = vector.shape_cast %363 : vector<8xf32> to vector<8x1xf32>
    %365 = vector.broadcast %364 : vector<8x1xf32> to vector<8x8xf32>
    %366 = arith.subf %362, %365 : vector<8x8xf32>
    %367 = math.exp %366 : vector<8x8xf32>
    %cst_155 = arith.constant dense<0.000000e+00> : vector<8xf32>
    %368 = vector.multi_reduction <add>, %367, %cst_155 [1] : vector<8x8xf32> to vector<8xf32>
    %369 = vector.shape_cast %368 : vector<8xf32> to vector<8x1xf32>
    %370 = tpu.reciprocal %369 {approx = true} : vector<8x1xf32> -> vector<8x1xf32>
    %371 = vector.broadcast %370 : vector<8x1xf32> to vector<8x8xf32>
    %372 = arith.mulf %367, %371 : vector<8x8xf32>
    %cst_156 = arith.constant dense<0.000000e+00> : vector<8x8xf32>
    %373 = tpu.matmul %372, %360, %cst_156 {dimension_numbers = #tpu.dot_dimension_numbers<[1], [0], [0], [1], [0, 0, 1, 1], [], []>} : vector<8x8xf32>, vector<8x8xf32>, vector<8x8xf32> -> vector<8x8xf32>
    %374 = vector.extract_strided_slice %14 {offsets = [8, 0], sizes = [8, 32], strides = [1, 1]} : vector<32x32xf32> to vector<8x32xf32>
    %cst_157 = arith.constant dense<0.000000e+00> : vector<8x32xf32>
    %375 = tpu.matmul %373, %374, %cst_157 {dimension_numbers = #tpu.dot_dimension_numbers<[1], [0], [0], [1], [0, 0, 1, 1], [], []>} : vector<8x8xf32>, vector<8x32xf32>, vector<8x32xf32> -> vector<8x32xf32>
    %376 = arith.addf %357, %375 : vector<8x32xf32>
    %377 = vector.extract_strided_slice %331 {offsets = [0, 16], sizes = [8, 8], strides = [1, 1]} : vector<8x32xf32> to vector<8x8xf32>
    %378 = vector.extract_strided_slice %334 {offsets = [0, 16], sizes = [8, 8], strides = [1, 1]} : vector<8x32xf32> to vector<8x8xf32>
    %379 = vector.extract_strided_slice %337 {offsets = [0, 16], sizes = [8, 8], strides = [1, 1]} : vector<8x32xf32> to vector<8x8xf32>
    "tpu.trace_start"() <{level = 10 : i32, message = "qc,kc->qk"}> : () -> ()
    %cst_158 = arith.constant dense<0.000000e+00> : vector<8x8xf32>
    %380 = tpu.matmul %377, %378, %cst_158 {dimension_numbers = #tpu.dot_dimension_numbers<[1], [1], [0], [0], [0, 0, 1, 0], [], []>} : vector<8x8xf32>, vector<8x8xf32>, vector<8x8xf32> -> vector<8x8xf32>
    "tpu.trace_stop"() : () -> ()
    %381 = arith.addf %380, %5 : vector<8x8xf32>
    %cst_159 = arith.constant dense<0xFF800000> : vector<8xf32>
    %382 = vector.multi_reduction <maximumf>, %381, %cst_159 [1] : vector<8x8xf32> to vector<8xf32>
    %383 = vector.shape_cast %382 : vector<8xf32> to vector<8x1xf32>
    %384 = vector.broadcast %383 : vector<8x1xf32> to vector<8x8xf32>
    %385 = arith.subf %381, %384 : vector<8x8xf32>
    %386 = math.exp %385 : vector<8x8xf32>
    %cst_160 = arith.constant dense<0.000000e+00> : vector<8xf32>
    %387 = vector.multi_reduction <add>, %386, %cst_160 [1] : vector<8x8xf32> to vector<8xf32>
    %388 = vector.shape_cast %387 : vector<8xf32> to vector<8x1xf32>
    %389 = tpu.reciprocal %388 {approx = true} : vector<8x1xf32> -> vector<8x1xf32>
    %390 = vector.broadcast %389 : vector<8x1xf32> to vector<8x8xf32>
    %391 = arith.mulf %386, %390 : vector<8x8xf32>
    %cst_161 = arith.constant dense<0.000000e+00> : vector<8x8xf32>
    %392 = tpu.matmul %391, %379, %cst_161 {dimension_numbers = #tpu.dot_dimension_numbers<[1], [0], [0], [1], [0, 0, 1, 1], [], []>} : vector<8x8xf32>, vector<8x8xf32>, vector<8x8xf32> -> vector<8x8xf32>
    %393 = vector.extract_strided_slice %14 {offsets = [16, 0], sizes = [8, 32], strides = [1, 1]} : vector<32x32xf32> to vector<8x32xf32>
    %cst_162 = arith.constant dense<0.000000e+00> : vector<8x32xf32>
    %394 = tpu.matmul %392, %393, %cst_162 {dimension_numbers = #tpu.dot_dimension_numbers<[1], [0], [0], [1], [0, 0, 1, 1], [], []>} : vector<8x8xf32>, vector<8x32xf32>, vector<8x32xf32> -> vector<8x32xf32>
    %395 = arith.addf %376, %394 : vector<8x32xf32>
    %396 = vector.extract_strided_slice %331 {offsets = [0, 24], sizes = [8, 8], strides = [1, 1]} : vector<8x32xf32> to vector<8x8xf32>
    %397 = vector.extract_strided_slice %334 {offsets = [0, 24], sizes = [8, 8], strides = [1, 1]} : vector<8x32xf32> to vector<8x8xf32>
    %398 = vector.extract_strided_slice %337 {offsets = [0, 24], sizes = [8, 8], strides = [1, 1]} : vector<8x32xf32> to vector<8x8xf32>
    "tpu.trace_start"() <{level = 10 : i32, message = "qc,kc->qk"}> : () -> ()
    %cst_163 = arith.constant dense<0.000000e+00> : vector<8x8xf32>
    %399 = tpu.matmul %396, %397, %cst_163 {dimension_numbers = #tpu.dot_dimension_numbers<[1], [1], [0], [0], [0, 0, 1, 0], [], []>} : vector<8x8xf32>, vector<8x8xf32>, vector<8x8xf32> -> vector<8x8xf32>
    "tpu.trace_stop"() : () -> ()
    %400 = arith.addf %399, %5 : vector<8x8xf32>
    %cst_164 = arith.constant dense<0xFF800000> : vector<8xf32>
    %401 = vector.multi_reduction <maximumf>, %400, %cst_164 [1] : vector<8x8xf32> to vector<8xf32>
    %402 = vector.shape_cast %401 : vector<8xf32> to vector<8x1xf32>
    %403 = vector.broadcast %402 : vector<8x1xf32> to vector<8x8xf32>
    %404 = arith.subf %400, %403 : vector<8x8xf32>
    %405 = math.exp %404 : vector<8x8xf32>
    %cst_165 = arith.constant dense<0.000000e+00> : vector<8xf32>
    %406 = vector.multi_reduction <add>, %405, %cst_165 [1] : vector<8x8xf32> to vector<8xf32>
    %407 = vector.shape_cast %406 : vector<8xf32> to vector<8x1xf32>
    %408 = tpu.reciprocal %407 {approx = true} : vector<8x1xf32> -> vector<8x1xf32>
    %409 = vector.broadcast %408 : vector<8x1xf32> to vector<8x8xf32>
    %410 = arith.mulf %405, %409 : vector<8x8xf32>
    %cst_166 = arith.constant dense<0.000000e+00> : vector<8x8xf32>
    %411 = tpu.matmul %410, %398, %cst_166 {dimension_numbers = #tpu.dot_dimension_numbers<[1], [0], [0], [1], [0, 0, 1, 1], [], []>} : vector<8x8xf32>, vector<8x8xf32>, vector<8x8xf32> -> vector<8x8xf32>
    %412 = vector.extract_strided_slice %14 {offsets = [24, 0], sizes = [8, 32], strides = [1, 1]} : vector<32x32xf32> to vector<8x32xf32>
    %cst_167 = arith.constant dense<0.000000e+00> : vector<8x32xf32>
    %413 = tpu.matmul %411, %412, %cst_167 {dimension_numbers = #tpu.dot_dimension_numbers<[1], [0], [0], [1], [0, 0, 1, 1], [], []>} : vector<8x8xf32>, vector<8x32xf32>, vector<8x32xf32> -> vector<8x32xf32>
    %414 = arith.addf %395, %413 : vector<8x32xf32>
    %415 = vector.broadcast %15 : vector<1x32xf32> to vector<8x32xf32>
    %416 = arith.addf %414, %415 : vector<8x32xf32>
    %417 = arith.addf %301, %416 : vector<8x32xf32>
    %cst_168 = arith.constant dense<0.000000e+00> : vector<8xf32>
    %418 = vector.multi_reduction <add>, %417, %cst_168 [1] : vector<8x32xf32> to vector<8xf32>
    %419 = vector.shape_cast %418 : vector<8xf32> to vector<8x1xf32>
    %420 = arith.mulf %417, %417 : vector<8x32xf32>
    %cst_169 = arith.constant dense<0.000000e+00> : vector<8xf32>
    %421 = vector.multi_reduction <add>, %420, %cst_169 [1] : vector<8x32xf32> to vector<8xf32>
    %422 = vector.shape_cast %421 : vector<8xf32> to vector<8x1xf32>
    %cst_170 = arith.constant 3.125000e-02 : f32
    %423 = vector.broadcast %cst_170 : f32 to vector<8x1xf32>
    %424 = arith.mulf %419, %423 : vector<8x1xf32>
    %425 = arith.mulf %419, %424 : vector<8x1xf32>
    %426 = arith.subf %422, %425 : vector<8x1xf32>
    %cst_171 = arith.constant 0.0322580636 : f32
    %427 = vector.broadcast %cst_171 : f32 to vector<8x1xf32>
    %428 = arith.mulf %426, %427 : vector<8x1xf32>
    %cst_172 = arith.constant 0.000000e+00 : f32
    %429 = vector.broadcast %cst_172 : f32 to vector<8x1xf32>
    %430 = arith.maximumf %428, %429 : vector<8x1xf32>
    %431 = math.sqrt %430 : vector<8x1xf32>
    %cst_173 = arith.constant 9.99999997E-7 : f32
    %432 = vector.broadcast %cst_173 : f32 to vector<8x1xf32>
    %433 = arith.addf %431, %432 : vector<8x1xf32>
    %434 = tpu.reciprocal %433 {approx = true} : vector<8x1xf32> -> vector<8x1xf32>
    %435 = vector.broadcast %424 : vector<8x1xf32> to vector<8x32xf32>
    %436 = arith.subf %417, %435 : vector<8x32xf32>
    %437 = vector.broadcast %434 : vector<8x1xf32> to vector<8x32xf32>
    %438 = arith.mulf %436, %437 : vector<8x32xf32>
    %439 = vector.broadcast %30 : vector<1x32xf32> to vector<8x32xf32>
    %440 = arith.mulf %439, %438 : vector<8x32xf32>
    %441 = vector.broadcast %31 : vector<1x32xf32> to vector<8x32xf32>
    %442 = arith.addf %440, %441 : vector<8x32xf32>
    %cst_174 = arith.constant dense<0.000000e+00> : vector<8x32xf32>
    %443 = tpu.matmul %442, %16, %cst_174 {dimension_numbers = #tpu.dot_dimension_numbers<[1], [0], [0], [1], [0, 0, 1, 1], [], []>} : vector<8x32xf32>, vector<32x32xf32>, vector<8x32xf32> -> vector<8x32xf32>
    %444 = vector.broadcast %17 : vector<1x32xf32> to vector<8x32xf32>
    %445 = arith.addf %443, %444 : vector<8x32xf32>
    %cst_175 = arith.constant 0.353553385 : f32
    %446 = vector.broadcast %cst_175 : f32 to vector<8x32xf32>
    %447 = arith.mulf %445, %446 : vector<8x32xf32>
    %cst_176 = arith.constant dense<0.000000e+00> : vector<8x32xf32>
    %448 = tpu.matmul %3, %18, %cst_176 {dimension_numbers = #tpu.dot_dimension_numbers<[1], [0], [0], [1], [0, 0, 1, 1], [], []>} : vector<8x32xf32>, vector<32x32xf32>, vector<8x32xf32> -> vector<8x32xf32>
    %449 = vector.broadcast %19 : vector<1x32xf32> to vector<8x32xf32>
    %450 = arith.addf %448, %449 : vector<8x32xf32>
    %cst_177 = arith.constant dense<0.000000e+00> : vector<8x32xf32>
    %451 = tpu.matmul %3, %20, %cst_177 {dimension_numbers = #tpu.dot_dimension_numbers<[1], [0], [0], [1], [0, 0, 1, 1], [], []>} : vector<8x32xf32>, vector<32x32xf32>, vector<8x32xf32> -> vector<8x32xf32>
    %452 = vector.broadcast %21 : vector<1x32xf32> to vector<8x32xf32>
    %453 = arith.addf %451, %452 : vector<8x32xf32>
    %cst_178 = arith.constant 0.000000e+00 : f32
    %454 = vector.broadcast %cst_178 : f32 to vector<8x32xf32>
    %455 = vector.extract_strided_slice %447 {offsets = [0, 0], sizes = [8, 8], strides = [1, 1]} : vector<8x32xf32> to vector<8x8xf32>
    %456 = vector.extract_strided_slice %450 {offsets = [0, 0], sizes = [8, 8], strides = [1, 1]} : vector<8x32xf32> to vector<8x8xf32>
    %457 = vector.extract_strided_slice %453 {offsets = [0, 0], sizes = [8, 8], strides = [1, 1]} : vector<8x32xf32> to vector<8x8xf32>
    "tpu.trace_start"() <{level = 10 : i32, message = "qc,kc->qk"}> : () -> ()
    %cst_179 = arith.constant dense<0.000000e+00> : vector<8x8xf32>
    %458 = tpu.matmul %455, %456, %cst_179 {dimension_numbers = #tpu.dot_dimension_numbers<[1], [1], [0], [0], [0, 0, 1, 0], [], []>} : vector<8x8xf32>, vector<8x8xf32>, vector<8x8xf32> -> vector<8x8xf32>
    "tpu.trace_stop"() : () -> ()
    %459 = arith.addf %458, %7 : vector<8x8xf32>
    %cst_180 = arith.constant dense<0xFF800000> : vector<8xf32>
    %460 = vector.multi_reduction <maximumf>, %459, %cst_180 [1] : vector<8x8xf32> to vector<8xf32>
    %461 = vector.shape_cast %460 : vector<8xf32> to vector<8x1xf32>
    %462 = vector.broadcast %461 : vector<8x1xf32> to vector<8x8xf32>
    %463 = arith.subf %459, %462 : vector<8x8xf32>
    %464 = math.exp %463 : vector<8x8xf32>
    %cst_181 = arith.constant dense<0.000000e+00> : vector<8xf32>
    %465 = vector.multi_reduction <add>, %464, %cst_181 [1] : vector<8x8xf32> to vector<8xf32>
    %466 = vector.shape_cast %465 : vector<8xf32> to vector<8x1xf32>
    %467 = tpu.reciprocal %466 {approx = true} : vector<8x1xf32> -> vector<8x1xf32>
    %468 = vector.broadcast %467 : vector<8x1xf32> to vector<8x8xf32>
    %469 = arith.mulf %464, %468 : vector<8x8xf32>
    %cst_182 = arith.constant dense<0.000000e+00> : vector<8x8xf32>
    %470 = tpu.matmul %469, %457, %cst_182 {dimension_numbers = #tpu.dot_dimension_numbers<[1], [0], [0], [1], [0, 0, 1, 1], [], []>} : vector<8x8xf32>, vector<8x8xf32>, vector<8x8xf32> -> vector<8x8xf32>
    %471 = vector.extract_strided_slice %22 {offsets = [0, 0], sizes = [8, 32], strides = [1, 1]} : vector<32x32xf32> to vector<8x32xf32>
    %cst_183 = arith.constant dense<0.000000e+00> : vector<8x32xf32>
    %472 = tpu.matmul %470, %471, %cst_183 {dimension_numbers = #tpu.dot_dimension_numbers<[1], [0], [0], [1], [0, 0, 1, 1], [], []>} : vector<8x8xf32>, vector<8x32xf32>, vector<8x32xf32> -> vector<8x32xf32>
    %473 = arith.addf %454, %472 : vector<8x32xf32>
    %474 = vector.extract_strided_slice %447 {offsets = [0, 8], sizes = [8, 8], strides = [1, 1]} : vector<8x32xf32> to vector<8x8xf32>
    %475 = vector.extract_strided_slice %450 {offsets = [0, 8], sizes = [8, 8], strides = [1, 1]} : vector<8x32xf32> to vector<8x8xf32>
    %476 = vector.extract_strided_slice %453 {offsets = [0, 8], sizes = [8, 8], strides = [1, 1]} : vector<8x32xf32> to vector<8x8xf32>
    "tpu.trace_start"() <{level = 10 : i32, message = "qc,kc->qk"}> : () -> ()
    %cst_184 = arith.constant dense<0.000000e+00> : vector<8x8xf32>
    %477 = tpu.matmul %474, %475, %cst_184 {dimension_numbers = #tpu.dot_dimension_numbers<[1], [1], [0], [0], [0, 0, 1, 0], [], []>} : vector<8x8xf32>, vector<8x8xf32>, vector<8x8xf32> -> vector<8x8xf32>
    "tpu.trace_stop"() : () -> ()
    %478 = arith.addf %477, %7 : vector<8x8xf32>
    %cst_185 = arith.constant dense<0xFF800000> : vector<8xf32>
    %479 = vector.multi_reduction <maximumf>, %478, %cst_185 [1] : vector<8x8xf32> to vector<8xf32>
    %480 = vector.shape_cast %479 : vector<8xf32> to vector<8x1xf32>
    %481 = vector.broadcast %480 : vector<8x1xf32> to vector<8x8xf32>
    %482 = arith.subf %478, %481 : vector<8x8xf32>
    %483 = math.exp %482 : vector<8x8xf32>
    %cst_186 = arith.constant dense<0.000000e+00> : vector<8xf32>
    %484 = vector.multi_reduction <add>, %483, %cst_186 [1] : vector<8x8xf32> to vector<8xf32>
    %485 = vector.shape_cast %484 : vector<8xf32> to vector<8x1xf32>
    %486 = tpu.reciprocal %485 {approx = true} : vector<8x1xf32> -> vector<8x1xf32>
    %487 = vector.broadcast %486 : vector<8x1xf32> to vector<8x8xf32>
    %488 = arith.mulf %483, %487 : vector<8x8xf32>
    %cst_187 = arith.constant dense<0.000000e+00> : vector<8x8xf32>
    %489 = tpu.matmul %488, %476, %cst_187 {dimension_numbers = #tpu.dot_dimension_numbers<[1], [0], [0], [1], [0, 0, 1, 1], [], []>} : vector<8x8xf32>, vector<8x8xf32>, vector<8x8xf32> -> vector<8x8xf32>
    %490 = vector.extract_strided_slice %22 {offsets = [8, 0], sizes = [8, 32], strides = [1, 1]} : vector<32x32xf32> to vector<8x32xf32>
    %cst_188 = arith.constant dense<0.000000e+00> : vector<8x32xf32>
    %491 = tpu.matmul %489, %490, %cst_188 {dimension_numbers = #tpu.dot_dimension_numbers<[1], [0], [0], [1], [0, 0, 1, 1], [], []>} : vector<8x8xf32>, vector<8x32xf32>, vector<8x32xf32> -> vector<8x32xf32>
    %492 = arith.addf %473, %491 : vector<8x32xf32>
    %493 = vector.extract_strided_slice %447 {offsets = [0, 16], sizes = [8, 8], strides = [1, 1]} : vector<8x32xf32> to vector<8x8xf32>
    %494 = vector.extract_strided_slice %450 {offsets = [0, 16], sizes = [8, 8], strides = [1, 1]} : vector<8x32xf32> to vector<8x8xf32>
    %495 = vector.extract_strided_slice %453 {offsets = [0, 16], sizes = [8, 8], strides = [1, 1]} : vector<8x32xf32> to vector<8x8xf32>
    "tpu.trace_start"() <{level = 10 : i32, message = "qc,kc->qk"}> : () -> ()
    %cst_189 = arith.constant dense<0.000000e+00> : vector<8x8xf32>
    %496 = tpu.matmul %493, %494, %cst_189 {dimension_numbers = #tpu.dot_dimension_numbers<[1], [1], [0], [0], [0, 0, 1, 0], [], []>} : vector<8x8xf32>, vector<8x8xf32>, vector<8x8xf32> -> vector<8x8xf32>
    "tpu.trace_stop"() : () -> ()
    %497 = arith.addf %496, %7 : vector<8x8xf32>
    %cst_190 = arith.constant dense<0xFF800000> : vector<8xf32>
    %498 = vector.multi_reduction <maximumf>, %497, %cst_190 [1] : vector<8x8xf32> to vector<8xf32>
    %499 = vector.shape_cast %498 : vector<8xf32> to vector<8x1xf32>
    %500 = vector.broadcast %499 : vector<8x1xf32> to vector<8x8xf32>
    %501 = arith.subf %497, %500 : vector<8x8xf32>
    %502 = math.exp %501 : vector<8x8xf32>
    %cst_191 = arith.constant dense<0.000000e+00> : vector<8xf32>
    %503 = vector.multi_reduction <add>, %502, %cst_191 [1] : vector<8x8xf32> to vector<8xf32>
    %504 = vector.shape_cast %503 : vector<8xf32> to vector<8x1xf32>
    %505 = tpu.reciprocal %504 {approx = true} : vector<8x1xf32> -> vector<8x1xf32>
    %506 = vector.broadcast %505 : vector<8x1xf32> to vector<8x8xf32>
    %507 = arith.mulf %502, %506 : vector<8x8xf32>
    %cst_192 = arith.constant dense<0.000000e+00> : vector<8x8xf32>
    %508 = tpu.matmul %507, %495, %cst_192 {dimension_numbers = #tpu.dot_dimension_numbers<[1], [0], [0], [1], [0, 0, 1, 1], [], []>} : vector<8x8xf32>, vector<8x8xf32>, vector<8x8xf32> -> vector<8x8xf32>
    %509 = vector.extract_strided_slice %22 {offsets = [16, 0], sizes = [8, 32], strides = [1, 1]} : vector<32x32xf32> to vector<8x32xf32>
    %cst_193 = arith.constant dense<0.000000e+00> : vector<8x32xf32>
    %510 = tpu.matmul %508, %509, %cst_193 {dimension_numbers = #tpu.dot_dimension_numbers<[1], [0], [0], [1], [0, 0, 1, 1], [], []>} : vector<8x8xf32>, vector<8x32xf32>, vector<8x32xf32> -> vector<8x32xf32>
    %511 = arith.addf %492, %510 : vector<8x32xf32>
    %512 = vector.extract_strided_slice %447 {offsets = [0, 24], sizes = [8, 8], strides = [1, 1]} : vector<8x32xf32> to vector<8x8xf32>
    %513 = vector.extract_strided_slice %450 {offsets = [0, 24], sizes = [8, 8], strides = [1, 1]} : vector<8x32xf32> to vector<8x8xf32>
    %514 = vector.extract_strided_slice %453 {offsets = [0, 24], sizes = [8, 8], strides = [1, 1]} : vector<8x32xf32> to vector<8x8xf32>
    "tpu.trace_start"() <{level = 10 : i32, message = "qc,kc->qk"}> : () -> ()
    %cst_194 = arith.constant dense<0.000000e+00> : vector<8x8xf32>
    %515 = tpu.matmul %512, %513, %cst_194 {dimension_numbers = #tpu.dot_dimension_numbers<[1], [1], [0], [0], [0, 0, 1, 0], [], []>} : vector<8x8xf32>, vector<8x8xf32>, vector<8x8xf32> -> vector<8x8xf32>
    "tpu.trace_stop"() : () -> ()
    %516 = arith.addf %515, %7 : vector<8x8xf32>
    %cst_195 = arith.constant dense<0xFF800000> : vector<8xf32>
    %517 = vector.multi_reduction <maximumf>, %516, %cst_195 [1] : vector<8x8xf32> to vector<8xf32>
    %518 = vector.shape_cast %517 : vector<8xf32> to vector<8x1xf32>
    %519 = vector.broadcast %518 : vector<8x1xf32> to vector<8x8xf32>
    %520 = arith.subf %516, %519 : vector<8x8xf32>
    %521 = math.exp %520 : vector<8x8xf32>
    %cst_196 = arith.constant dense<0.000000e+00> : vector<8xf32>
    %522 = vector.multi_reduction <add>, %521, %cst_196 [1] : vector<8x8xf32> to vector<8xf32>
    %523 = vector.shape_cast %522 : vector<8xf32> to vector<8x1xf32>
    %524 = tpu.reciprocal %523 {approx = true} : vector<8x1xf32> -> vector<8x1xf32>
    %525 = vector.broadcast %524 : vector<8x1xf32> to vector<8x8xf32>
    %526 = arith.mulf %521, %525 : vector<8x8xf32>
    %cst_197 = arith.constant dense<0.000000e+00> : vector<8x8xf32>
    %527 = tpu.matmul %526, %514, %cst_197 {dimension_numbers = #tpu.dot_dimension_numbers<[1], [0], [0], [1], [0, 0, 1, 1], [], []>} : vector<8x8xf32>, vector<8x8xf32>, vector<8x8xf32> -> vector<8x8xf32>
    %528 = vector.extract_strided_slice %22 {offsets = [24, 0], sizes = [8, 32], strides = [1, 1]} : vector<32x32xf32> to vector<8x32xf32>
    %cst_198 = arith.constant dense<0.000000e+00> : vector<8x32xf32>
    %529 = tpu.matmul %527, %528, %cst_198 {dimension_numbers = #tpu.dot_dimension_numbers<[1], [0], [0], [1], [0, 0, 1, 1], [], []>} : vector<8x8xf32>, vector<8x32xf32>, vector<8x32xf32> -> vector<8x32xf32>
    %530 = arith.addf %511, %529 : vector<8x32xf32>
    %531 = vector.broadcast %23 : vector<1x32xf32> to vector<8x32xf32>
    %532 = arith.addf %530, %531 : vector<8x32xf32>
    %533 = arith.addf %417, %532 : vector<8x32xf32>
    %cst_199 = arith.constant dense<0.000000e+00> : vector<8xf32>
    %534 = vector.multi_reduction <add>, %533, %cst_199 [1] : vector<8x32xf32> to vector<8xf32>
    %535 = vector.shape_cast %534 : vector<8xf32> to vector<8x1xf32>
    %536 = arith.mulf %533, %533 : vector<8x32xf32>
    %cst_200 = arith.constant dense<0.000000e+00> : vector<8xf32>
    %537 = vector.multi_reduction <add>, %536, %cst_200 [1] : vector<8x32xf32> to vector<8xf32>
    %538 = vector.shape_cast %537 : vector<8xf32> to vector<8x1xf32>
    %cst_201 = arith.constant 3.125000e-02 : f32
    %539 = vector.broadcast %cst_201 : f32 to vector<8x1xf32>
    %540 = arith.mulf %535, %539 : vector<8x1xf32>
    %541 = arith.mulf %535, %540 : vector<8x1xf32>
    %542 = arith.subf %538, %541 : vector<8x1xf32>
    %cst_202 = arith.constant 0.0322580636 : f32
    %543 = vector.broadcast %cst_202 : f32 to vector<8x1xf32>
    %544 = arith.mulf %542, %543 : vector<8x1xf32>
    %cst_203 = arith.constant 0.000000e+00 : f32
    %545 = vector.broadcast %cst_203 : f32 to vector<8x1xf32>
    %546 = arith.maximumf %544, %545 : vector<8x1xf32>
    %547 = math.sqrt %546 : vector<8x1xf32>
    %cst_204 = arith.constant 9.99999997E-7 : f32
    %548 = vector.broadcast %cst_204 : f32 to vector<8x1xf32>
    %549 = arith.addf %547, %548 : vector<8x1xf32>
    %550 = tpu.reciprocal %549 {approx = true} : vector<8x1xf32> -> vector<8x1xf32>
    %551 = vector.broadcast %540 : vector<8x1xf32> to vector<8x32xf32>
    %552 = arith.subf %533, %551 : vector<8x32xf32>
    %553 = vector.broadcast %550 : vector<8x1xf32> to vector<8x32xf32>
    %554 = arith.mulf %552, %553 : vector<8x32xf32>
    %555 = vector.broadcast %32 : vector<1x32xf32> to vector<8x32xf32>
    %556 = arith.mulf %555, %554 : vector<8x32xf32>
    %557 = vector.broadcast %33 : vector<1x32xf32> to vector<8x32xf32>
    %558 = arith.addf %556, %557 : vector<8x32xf32>
    %cst_205 = arith.constant dense<0.000000e+00> : vector<8x64xf32>
    %559 = tpu.matmul %558, %24, %cst_205 {dimension_numbers = #tpu.dot_dimension_numbers<[1], [0], [0], [1], [0, 0, 1, 1], [], []>} : vector<8x32xf32>, vector<32x64xf32>, vector<8x64xf32> -> vector<8x64xf32>
    %560 = vector.broadcast %25 : vector<1x64xf32> to vector<8x64xf32>
    %561 = arith.addf %559, %560 : vector<8x64xf32>
    %cst_206 = arith.constant 0.000000e+00 : f32
    %562 = vector.broadcast %cst_206 : f32 to vector<8x64xf32>
    %563 = arith.maximumf %561, %562 : vector<8x64xf32>
    %cst_207 = arith.constant dense<0.000000e+00> : vector<8x32xf32>
    %564 = tpu.matmul %563, %26, %cst_207 {dimension_numbers = #tpu.dot_dimension_numbers<[1], [0], [0], [1], [0, 0, 1, 1], [], []>} : vector<8x64xf32>, vector<64x32xf32>, vector<8x32xf32> -> vector<8x32xf32>
    %565 = vector.broadcast %27 : vector<1x32xf32> to vector<8x32xf32>
    %566 = arith.addf %564, %565 : vector<8x32xf32>
    %567 = arith.addf %533, %566 : vector<8x32xf32>
    %cst_208 = arith.constant dense<0.000000e+00> : vector<8xf32>
    %568 = vector.multi_reduction <add>, %567, %cst_208 [1] : vector<8x32xf32> to vector<8xf32>
    %569 = vector.shape_cast %568 : vector<8xf32> to vector<8x1xf32>
    %570 = arith.mulf %567, %567 : vector<8x32xf32>
    %cst_209 = arith.constant dense<0.000000e+00> : vector<8xf32>
    %571 = vector.multi_reduction <add>, %570, %cst_209 [1] : vector<8x32xf32> to vector<8xf32>
    %572 = vector.shape_cast %571 : vector<8xf32> to vector<8x1xf32>
    %cst_210 = arith.constant 3.125000e-02 : f32
    %573 = vector.broadcast %cst_210 : f32 to vector<8x1xf32>
    %574 = arith.mulf %569, %573 : vector<8x1xf32>
    %575 = arith.mulf %569, %574 : vector<8x1xf32>
    %576 = arith.subf %572, %575 : vector<8x1xf32>
    %cst_211 = arith.constant 0.0322580636 : f32
    %577 = vector.broadcast %cst_211 : f32 to vector<8x1xf32>
    %578 = arith.mulf %576, %577 : vector<8x1xf32>
    %cst_212 = arith.constant 0.000000e+00 : f32
    %579 = vector.broadcast %cst_212 : f32 to vector<8x1xf32>
    %580 = arith.maximumf %578, %579 : vector<8x1xf32>
    %581 = math.sqrt %580 : vector<8x1xf32>
    %cst_213 = arith.constant 9.99999997E-7 : f32
    %582 = vector.broadcast %cst_213 : f32 to vector<8x1xf32>
    %583 = arith.addf %581, %582 : vector<8x1xf32>
    %584 = tpu.reciprocal %583 {approx = true} : vector<8x1xf32> -> vector<8x1xf32>
    %585 = vector.broadcast %574 : vector<8x1xf32> to vector<8x32xf32>
    %586 = arith.subf %567, %585 : vector<8x32xf32>
    %587 = vector.broadcast %584 : vector<8x1xf32> to vector<8x32xf32>
    %588 = arith.mulf %586, %587 : vector<8x32xf32>
    %589 = vector.broadcast %34 : vector<1x32xf32> to vector<8x32xf32>
    %590 = arith.mulf %589, %588 : vector<8x32xf32>
    %591 = vector.broadcast %35 : vector<1x32xf32> to vector<8x32xf32>
    %592 = arith.addf %590, %591 : vector<8x32xf32>
    %c0_214 = arith.constant 0 : index
    %c0_215 = arith.constant 0 : index
    %c0_216 = arith.constant 0 : index
    %593 = vector.load %arg33[%c0_214, %c0_215, %c0_216] : memref<1x8x32xf32, #tpu.memory_space<vmem>>, vector<1x8x32xf32>
    %594 = vector.shape_cast %593 : vector<1x8x32xf32> to vector<8x32xf32>
    %595 = vector.shape_cast %592 : vector<8x32xf32> to vector<1x8x32xf32>
    tpu.vector_store %arg33[%c0_214, %c0_215, %c0_216], %595 {strides = array<i32>} : memref<1x8x32xf32, #tpu.memory_space<vmem>>, vector<1x8x32xf32>,
    return
  }
  func.func @transform_0(%arg0: i32) -> (i32, i32, i32) {
    %c0_i32 = arith.constant 0 : i32
    %c0_i32_0 = arith.constant 0 : i32
    %c0_i32_1 = arith.constant 0 : i32
    return %arg0, %c0_i32, %c0_i32_0 : i32, i32, i32
  }
  func.func @transform_1(%arg0: i32) -> (i32, i32, i32) {
    %c0_i32 = arith.constant 0 : i32
    %c0_i32_0 = arith.constant 0 : i32
    %c0_i32_1 = arith.constant 0 : i32
    return %arg0, %c0_i32, %c0_i32_0 : i32, i32, i32
  }
  func.func @transform_2(%arg0: i32) -> (i32, i32, i32) {
    %c0_i32 = arith.constant 0 : i32
    %c0_i32_0 = arith.constant 0 : i32
    %c0_i32_1 = arith.constant 0 : i32
    return %arg0, %c0_i32, %c0_i32_0 : i32, i32, i32
  }
  func.func @transform_3(%arg0: i32) -> (i32, i32, i32) {
    %c0_i32 = arith.constant 0 : i32
    %c0_i32_0 = arith.constant 0 : i32
    %c0_i32_1 = arith.constant 0 : i32
    return %arg0, %c0_i32, %c0_i32_0 : i32, i32, i32
  }
  func.func @transform_4(%arg0: i32) -> (i32, i32) {
    %c0_i32 = arith.constant 0 : i32
    %c0_i32_0 = arith.constant 0 : i32
    %c0_i32_1 = arith.constant 0 : i32
    return %c0_i32, %c0_i32_0 : i32, i32
  }
  func.func @transform_5(%arg0: i32) -> (i32, i32) {
    %c0_i32 = arith.constant 0 : i32
    %c0_i32_0 = arith.constant 0 : i32
    %c0_i32_1 = arith.constant 0 : i32
    return %c0_i32, %c0_i32_0 : i32, i32
  }
  func.func @transform_6(%arg0: i32) -> (i32, i32) {
    %c0_i32 = arith.constant 0 : i32
    %c0_i32_0 = arith.constant 0 : i32
    %c0_i32_1 = arith.constant 0 : i32
    return %c0_i32, %c0_i32_0 : i32, i32
  }
  func.func @transform_7(%arg0: i32) -> (i32, i32) {
    %c0_i32 = arith.constant 0 : i32
    %c0_i32_0 = arith.constant 0 : i32
    %c0_i32_1 = arith.constant 0 : i32
    return %c0_i32, %c0_i32_0 : i32, i32
  }
  func.func @transform_8(%arg0: i32) -> (i32, i32) {
    %c0_i32 = arith.constant 0 : i32
    %c0_i32_0 = arith.constant 0 : i32
    %c0_i32_1 = arith.constant 0 : i32
    return %c0_i32, %c0_i32_0 : i32, i32
  }
  func.func @transform_9(%arg0: i32) -> (i32, i32) {
    %c0_i32 = arith.constant 0 : i32
    %c0_i32_0 = arith.constant 0 : i32
    %c0_i32_1 = arith.constant 0 : i32
    return %c0_i32, %c0_i32_0 : i32, i32
  }
  func.func @transform_10(%arg0: i32) -> (i32, i32) {
    %c0_i32 = arith.constant 0 : i32
    %c0_i32_0 = arith.constant 0 : i32
    %c0_i32_1 = arith.constant 0 : i32
    return %c0_i32, %c0_i32_0 : i32, i32
  }
  func.func @transform_11(%arg0: i32) -> (i32, i32) {
    %c0_i32 = arith.constant 0 : i32
    %c0_i32_0 = arith.constant 0 : i32
    %c0_i32_1 = arith.constant 0 : i32
    return %c0_i32, %c0_i32_0 : i32, i32
  }
  func.func @transform_12(%arg0: i32) -> (i32, i32) {
    %c0_i32 = arith.constant 0 : i32
    %c0_i32_0 = arith.constant 0 : i32
    %c0_i32_1 = arith.constant 0 : i32
    return %c0_i32, %c0_i32_0 : i32, i32
  }
  func.func @transform_13(%arg0: i32) -> (i32, i32) {
    %c0_i32 = arith.constant 0 : i32
    %c0_i32_0 = arith.constant 0 : i32
    %c0_i32_1 = arith.constant 0 : i32
    return %c0_i32, %c0_i32_0 : i32, i32
  }
  func.func @transform_14(%arg0: i32) -> (i32, i32) {
    %c0_i32 = arith.constant 0 : i32
    %c0_i32_0 = arith.constant 0 : i32
    %c0_i32_1 = arith.constant 0 : i32
    return %c0_i32, %c0_i32_0 : i32, i32
  }
  func.func @transform_15(%arg0: i32) -> (i32, i32) {
    %c0_i32 = arith.constant 0 : i32
    %c0_i32_0 = arith.constant 0 : i32
    %c0_i32_1 = arith.constant 0 : i32
    return %c0_i32, %c0_i32_0 : i32, i32
  }
  func.func @transform_16(%arg0: i32) -> (i32, i32) {
    %c0_i32 = arith.constant 0 : i32
    %c0_i32_0 = arith.constant 0 : i32
    %c0_i32_1 = arith.constant 0 : i32
    return %c0_i32, %c0_i32_0 : i32, i32
  }
  func.func @transform_17(%arg0: i32) -> (i32, i32) {
    %c0_i32 = arith.constant 0 : i32
    %c0_i32_0 = arith.constant 0 : i32
    %c0_i32_1 = arith.constant 0 : i32
    return %c0_i32, %c0_i32_0 : i32, i32
  }
  func.func @transform_18(%arg0: i32) -> (i32, i32) {
    %c0_i32 = arith.constant 0 : i32
    %c0_i32_0 = arith.constant 0 : i32
    %c0_i32_1 = arith.constant 0 : i32
    return %c0_i32, %c0_i32_0 : i32, i32
  }
  func.func @transform_19(%arg0: i32) -> (i32, i32) {
    %c0_i32 = arith.constant 0 : i32
    %c0_i32_0 = arith.constant 0 : i32
    %c0_i32_1 = arith.constant 0 : i32
    return %c0_i32, %c0_i32_0 : i32, i32
  }
  func.func @transform_20(%arg0: i32) -> (i32, i32) {
    %c0_i32 = arith.constant 0 : i32
    %c0_i32_0 = arith.constant 0 : i32
    %c0_i32_1 = arith.constant 0 : i32
    return %c0_i32, %c0_i32_0 : i32, i32
  }
  func.func @transform_21(%arg0: i32) -> (i32, i32) {
    %c0_i32 = arith.constant 0 : i32
    %c0_i32_0 = arith.constant 0 : i32
    %c0_i32_1 = arith.constant 0 : i32
    return %c0_i32, %c0_i32_0 : i32, i32
  }
  func.func @transform_22(%arg0: i32) -> (i32, i32) {
    %c0_i32 = arith.constant 0 : i32
    %c0_i32_0 = arith.constant 0 : i32
    %c0_i32_1 = arith.constant 0 : i32
    return %c0_i32, %c0_i32_0 : i32, i32
  }
  func.func @transform_23(%arg0: i32) -> (i32, i32) {
    %c0_i32 = arith.constant 0 : i32
    %c0_i32_0 = arith.constant 0 : i32
    %c0_i32_1 = arith.constant 0 : i32
    return %c0_i32, %c0_i32_0 : i32, i32
  }
  func.func @transform_24(%arg0: i32) -> (i32, i32) {
    %c0_i32 = arith.constant 0 : i32
    %c0_i32_0 = arith.constant 0 : i32
    %c0_i32_1 = arith.constant 0 : i32
    return %c0_i32, %c0_i32_0 : i32, i32
  }
  func.func @transform_25(%arg0: i32) -> (i32, i32) {
    %c0_i32 = arith.constant 0 : i32
    %c0_i32_0 = arith.constant 0 : i32
    %c0_i32_1 = arith.constant 0 : i32
    return %c0_i32, %c0_i32_0 : i32, i32
  }
  func.func @transform_26(%arg0: i32) -> (i32, i32) {
    %c0_i32 = arith.constant 0 : i32
    %c0_i32_0 = arith.constant 0 : i32
    %c0_i32_1 = arith.constant 0 : i32
    return %c0_i32, %c0_i32_0 : i32, i32
  }
  func.func @transform_27(%arg0: i32) -> (i32, i32) {
    %c0_i32 = arith.constant 0 : i32
    %c0_i32_0 = arith.constant 0 : i32
    %c0_i32_1 = arith.constant 0 : i32
    return %c0_i32, %c0_i32_0 : i32, i32
  }
  func.func @transform_28(%arg0: i32) -> (i32, i32) {
    %c0_i32 = arith.constant 0 : i32
    %c0_i32_0 = arith.constant 0 : i32
    %c0_i32_1 = arith.constant 0 : i32
    return %c0_i32, %c0_i32_0 : i32, i32
  }
  func.func @transform_29(%arg0: i32) -> (i32, i32) {
    %c0_i32 = arith.constant 0 : i32
    %c0_i32_0 = arith.constant 0 : i32
    %c0_i32_1 = arith.constant 0 : i32
    return %c0_i32, %c0_i32_0 : i32, i32
  }
  func.func @transform_30(%arg0: i32) -> (i32, i32) {
    %c0_i32 = arith.constant 0 : i32
    %c0_i32_0 = arith.constant 0 : i32
    %c0_i32_1 = arith.constant 0 : i32
    return %c0_i32, %c0_i32_0 : i32, i32
  }
  func.func @transform_31(%arg0: i32) -> (i32, i32) {
    %c0_i32 = arith.constant 0 : i32
    %c0_i32_0 = arith.constant 0 : i32
    %c0_i32_1 = arith.constant 0 : i32
    return %c0_i32, %c0_i32_0 : i32, i32
  }
  func.func @transform_32(%arg0: i32) -> (i32, i32, i32) {
    %c0_i32 = arith.constant 0 : i32
    %c0_i32_0 = arith.constant 0 : i32
    %c0_i32_1 = arith.constant 0 : i32
    return %arg0, %c0_i32, %c0_i32_0 : i32, i32, i32
  }
}

</mosaic_0001>

<bundles_post_ra>
// kernel: tpu_custom_call.1
= control target key start
LH: loop header
LB: loop body
LE: loop exit
PB: predicated region body
PF: predicated region fallthrough
CT: control target
= control target key end

     0   :  { %s8352_s6 = smov 1   ;;  %s8353_s10 = smov 2   ;;  %s9671_s0 = inlined_call_operand.smem [shape: u32[33], index: -1, kind: input, shape index: {}] }
   0x1   :  { %s8416_s5 = sld [smem:[%s9671_s0]]   ;;  %s8354_s14 = smov 3  }
   0x2   :  { %s8421_s9 = sld [smem:[%s9671_s0 + %s8352_s6]]   ;;  %s8355_s18 = smov 4  }
   0x3   :  { %s8426_s13 = sld [smem:[%s9671_s0 + %s8353_s10]]   ;;  %s8356_s22 = smov 5  }
   0x4   :  { %s8431_s17 = sld [smem:[%s9671_s0 + %s8354_s14]]   ;;  %s8357_s26 = smov 6  }
   0x5   :  { %s8436_s21 = sld [smem:[%s9671_s0 + %s8355_s18]]   ;;  %s8358_s30 = smov 7  }
   0x6   :  { %s8441_s25 = sld [smem:[%s9671_s0 + %s8356_s22]]   ;;  %s8359_s4 = smov 8  }
   0x7   :  { %9711 = sst [smem:[#allocation37_spill]] %s8416_s5  ;;  %s8360_s10 = smov 9  }
   0x8   :  { %9712 = sst [smem:[#allocation38_spill]] %s8421_s9  ;;  %s8361_s15 = smov 10  }
   0x9   :  { %s8446_s29 = sld [smem:[%s9671_s0 + %s8357_s26]]   ;;  %s8362_s20 = smov 11  }
   0xa   :  { %9713 = sst [smem:[#allocation39_spill]] %s8431_s17  ;;  %s8363_s26 = smov 12  }
   0xb   :  { %9714 = sst [smem:[#allocation40_spill]] %s8436_s21  ;;  %s8364_s1 = smov 13  }
   0xc   :  { %9715 = sst [smem:[#allocation41_spill]] %s8441_s25  ;;  %s8365_s7 = smov 14  }
   0xd   :  { %s8451_s3 = sld [smem:[%s9671_s0 + %s8358_s30]]   ;;  %s8367_s22 = smov 16  }
   0xe   :  { %s8456_s8 = sld [smem:[%s9671_s0 + %s8359_s4]]   ;;  %s8368_s28 = smov 17  }
   0xf   :  { %9716 = sst [smem:[#allocation42_spill]] %s8446_s29 }
  0x10   :  { %s8461_s14 = sld [smem:[%s9671_s0 + %s8360_s10]]  }
  0x11   :  { %s8466_s19 = sld [smem:[%s9671_s0 + %s8361_s15]]   ;;  %s8366_s15 = smov 15  }
  0x12   :  { %s8471_s24 = sld [smem:[%s9671_s0 + %s8362_s20]]  }
  0x13   :  { %9717 = sst [smem:[#allocation43_spill]] %s8451_s3 }
  0x14   :  { %9718 = sst [smem:[#allocation44_spill]] %s8456_s8 }
  0x15   :  { %s8476_s30 = sld [smem:[%s9671_s0 + %s8363_s26]]  }
  0x16   :  { %s8481_s6 = sld [smem:[%s9671_s0 + %s8364_s1]]  }
  0x17   :  { %9719 = sst [smem:[#allocation45_spill]] %s8466_s19 }
  0x18   :  { %9720 = sst [smem:[#allocation46_spill]] %s8471_s24 }
  0x19   :  { %s8486_s12 = sld [smem:[%s9671_s0 + %s8365_s7]]   ;;  %s8369_s7 = smov 18  }
  0x1a   :  { %s8491_s20 = sld [smem:[%s9671_s0 + %s8366_s15]]   ;;  %s8370_s15 = smov 19  }
  0x1b   :  { %s8496_s27 = sld [smem:[%s9671_s0 + %s8367_s22]]   ;;  %s8371_s22 = smov 20  }
  0x1c   :  { %9721 = sst [smem:[#allocation47_spill]] %s8481_s6 }
  0x1d   :  { %s8501_s4 = sld [smem:[%s9671_s0 + %s8368_s28]]   ;;  %s8372_s28 = smov 21  }
  0x1e   :  { %s8506_s19 = sld [smem:[%s9671_s0 + %s8369_s7]]   ;;  %s8373_s7 = smov 22  }
  0x1f   :  { %s8511_s8 = sld [smem:[%s9671_s0 + %s8370_s15]]   ;;  %s8374_s15 = smov 23  }
  0x20   :  { %9722 = sst [smem:[#allocation48_spill]] %s8491_s20 }
  0x21   :  { %s8516_s29 = sld [smem:[%s9671_s0 + %s8371_s22]]   ;;  %s8375_s22 = smov 24  }
  0x22   :  { %s8521_s21 = sld [smem:[%s9671_s0 + %s8372_s28]]   ;;  %s8376_s28 = smov 25  }
  0x23   :  { %9723 = sst [smem:[#allocation49_spill]] %s8501_s4 }
  0x24   :  { %9724 = sst [smem:[#allocation50_spill]] %s8506_s19 }
  0x25   :  { %9725 = sst [smem:[#allocation51_spill]] %s8511_s8 }
  0x26   :  { %s8526_s19 = sld [smem:[%s9671_s0 + %s8373_s7]]   ;;  %s8377_s7 = smov 26  }
  0x27   :  { %s8531_s8 = sld [smem:[%s9671_s0 + %s8374_s15]]   ;;  %s8378_s15 = smov 27  }
  0x28   :  { %9726 = sst [smem:[#allocation52_spill]] %s8521_s21 }
  0x29   :  { %s8536_s17 = sld [smem:[%s9671_s0 + %s8375_s22]]   ;;  %s8379_s22 = smov 28  }
  0x2a   :  { %s8541_s21 = sld [smem:[%s9671_s0 + %s8376_s28]]   ;;  %s8380_s28 = smov 29  }
  0x2c   :  { %9727 = sst [smem:[#allocation53_spill]] %s8526_s19 }
  0x2d   :  { %9728 = sst [smem:[#allocation54_spill]] %s8531_s8 }
  0x2e   :  { %s8546_s19 = sld [smem:[%s9671_s0 + %s8377_s7]]   ;;  %s8381_s7 = smov 30  }
  0x2f   :  { %9729 = sst [smem:[#allocation55_spill]] %s8536_s17 }
  0x30   :  { %9730 = sst [smem:[#allocation56_spill]] %s8541_s21 }
  0x31   :  { %s8551_s8 = sld [smem:[%s9671_s0 + %s8378_s15]]   ;;  %s8382_s15 = smov 31  }
  0x32   :  { %s8556_s17 = sld [smem:[%s9671_s0 + %s8379_s22]]   ;;  %s8383_s22 = smov 32  }
  0x33   :  { %s8561_s21 = sld [smem:[%s9671_s0 + %s8380_s28]]  }
  0x34   :  { %9731 = sst [smem:[#allocation57_spill]] %s8546_s19 }
  0x35   :  { %s8566_s19 = sld [smem:[%s9671_s0 + %s8381_s7]]  }
  0x37   :  { %9732 = sst [smem:[#allocation58_spill]] %s8551_s8 }
  0x38   :  { %9733 = sst [smem:[#allocation59_spill]] %s8556_s17 }
  0x39   :  { %s8571_s8 = sld [smem:[%s9671_s0 + %s8382_s15]]  }
  0x3a   :  { %s8576_s17 = sld [smem:[%s9671_s0 + %s8383_s22]]  }
  0x3f   :  { %9734 = sst [smem:[#allocation60_spill]] %s8571_s8 }
  0x40   :  { %9735 = sst [smem:[#allocation61_spill]] %s8576_s17 }
  0x41   :  { %70 = vsyncpa [#allocation3], 0 }
  0x42   :  { %72 = vsyncpa [#allocation3 + $0x1], 0 }
  0x43   :  { %73 = vsyncpa [#allocation6], 0 }
  0x44   :  { %75 = vsyncpa [#allocation6 + $0x1], 0 }
  0x45   :  { %76 = vsyncpa [#allocation9], 0 }
  0x46   :  { %78 = vsyncpa [#allocation9 + $0x1], 0 }
  0x47   :  { %79 = vsyncpa [#allocation12], 0 }
  0x48   :  { %80 = vsyncpa [#allocation15], 0 }
  0x49   :  { %81 = vsyncpa [#allocation18], 0 }
  0x4a   :  { %82 = vsyncpa [#allocation21], 0 }
  0x4b   :  { %83 = vsyncpa [#allocation24], 0 }
  0x4c   :  { %84 = vsyncpa [#allocation4], 0 }
  0x4d   :  { %86 = vsyncpa [#allocation4 + $0x1], 0  ;;  %s8578_s28 = smov 0   ;;  %s8580_s1 = smov 0  }
  0x4e   :  { %s8582_s2 = smov 0   ;;  %s8584_s0 = smov 0  }
  0x4f LB: > { %s9736_s5 = sld [smem:[#allocation37_spill]]  ;;  %s9737_s9 = sld [smem:[#allocation38_spill]]  ;;  %s8350_s0 = sphi %s8584_s0, %s9803_s0   ;;  %s8346_s2 = sphi %s8582_s2, %s9807_s2   ;;  %s8342_s1 = sphi %s8580_s1, %s9806_s1   ;;  %s8338_s28 = sphi %s8578_s28, %s9805_s28  }
  0x50   : > { %s9738_s25 = sld [smem:[#allocation41_spill]]  ;;  %s9739_s24 = sld [smem:[#allocation46_spill]] }
  0x51   : > { %s9740_s20 = sld [smem:[#allocation48_spill]]  ;;  %s9741_s6 = sld [smem:[#allocation47_spill]] }
  0x52   : > { %s9742_s4 = sld [smem:[#allocation49_spill]]  ;;  %s9743_s3 = sld [smem:[#allocation43_spill]] }
  0x53   : > { %9744 = sst [smem:[#allocation62_spill]] %s8338_s28  ;;  %s8384_s7 = smov [#allocation10]  }
  0x54   : > { %s831_s10 = sshll.u32 %s8384_s7, 4  ;;  %s8599_s11 = sadd.s32 4294967295, %s8350_s0   ;;  %s8604_s10 = int_to_ptr.vmem [resolvable:$true] %s831_s10 }
  0x55   : > { %p6693_p0 = scmp.ge.s32.totalorder %s8350_s0, 1  ;;  %p9682_p1 = scmp.eq.s32.totalorder %s8599_s11, 0 }
  0x56   : > { %p815_p2 = scmp.lt.s32.totalorder %s8350_s0, 3  ;;  %s8385_s16 = smov [#allocation11]  }
  0x57   : > { %s845_s18 = sshll.u32 %s8385_s16, 4  ;;  %s8386_s22 = smov [#allocation14]   ;;  %s8613_s18 = int_to_ptr.vmem [resolvable:$true] %s845_s18 }
  0x58   : > { %p8606_p3 = pnand %p6693_p0, %p815_p2  ;;  %s873_s23 = sshll.u32 %s8386_s22, 4  ;;  %s8621_s23 = int_to_ptr.vmem [resolvable:$true] %s873_s23 }
  0x59   : > { %s8387_s7 = smov [#allocation17]   ;;  %s7824_s8 = scalar_lea.hbm %s9738_s25, 16 }
  0x5a   : > { %s9745_s15 = scalar_select %p8606_p3, 1, 0 }
  0x5b   : > { %p7565_p5 = pneg %p8606_p3  ;;  %s8623_s17 = sshll.u32 %s8387_s7, 4  ;;  %s898_s17 = int_to_ptr.vmem [resolvable:$true] %s8623_s17 }
  0x5c   : > { %p7825_p7 = scmp.ne.s32.totalorder %s9738_s25, %s7824_s8  ;;  %p7831_p11 = scmp.lt.u32.totalorder %s7824_s8, %s9738_s25 }
  0x5d   : > { %p8617_p6 = pnand %p7565_p5, %p9682_p1 }
  0x5f   : > { %s9746_s26 = scalar_select %p8617_p6, 1, 0 }
  0x60   : > { %p8629_p8 = pneg %p8617_p6 }
  0x62   : > { %s9747_s16 = scalar_select %p8629_p8, 1, 0 }
  0x63   : > { %p7827_p9 = pnand %p8629_p8, %p7825_p7 }
  0x65   : > { %p7828_p10 = pneg %p7827_p9 }
  0x67   : > { %p7833_p12 = pnand %p7831_p11, %p7828_p10 }
  0x69   : > { %7836 = shalt.err (!%p7833_p12)
}
  0x6a   : > { %s7837_s22 = scalar_lea.vmem %s8604_s10, 16  ;;  %s7844_s7 = scalar_lea.vmem %s8604_s10, 32 }
  0x6b   : > { %p7838_p13 = scmp.ne.s32.totalorder %s8604_s10, %s7837_s22  ;;  %p7845_p5 = scmp.lt.s32.totalorder %s8604_s10, %s8604_s10 }
  0x6c   : > { %p7846_p4 = scmp.lt.s32.totalorder %s7844_s7, %s7837_s22 }
  0x6d   : > { %p7840_p0 = pnand %p7838_p13, %p8629_p8 }
  0x6e   : > { %p7847_p1 = por %p7846_p4, %p7845_p5 }
  0x6f   : > { %p7841_p2 = pneg %p7840_p0 }
  0x71   : > { %p7848_p7 = pnand %p7847_p1, %p7841_p2 }
  0x73   : > { %7851 = shalt.err (!%p7848_p7)
}
  0x74   : > { %7568 = dma.hbm_to_vmem [thread:$0]  (!%p8617_p6), %s9738_s25, 16, %s8604_s10, [#allocation9]  }
  0x75   : > { %s7852_s8 = scalar_lea.hbm %s9743_s3, 16 }
  0x76   : > { %p7853_p9 = scmp.ne.s32.totalorder %s9743_s3, %s7852_s8  ;;  %p7859_p12 = scmp.lt.u32.totalorder %s7852_s8, %s9743_s3 }
  0x78   : > { %p7855_p10 = pnand %p7853_p9, %p8629_p8 }
  0x7a   : > { %p7856_p11 = pneg %p7855_p10 }
  0x7c   : > { %p7861_p13 = pnand %p7859_p12, %p7856_p11 }
  0x7e   : > { %7864 = shalt.err (!%p7861_p13)
}
  0x7f   : > { %s7865_s22 = scalar_lea.vmem %s8613_s18, 16  ;;  %s7872_s7 = scalar_lea.vmem %s8613_s18, 32 }
  0x80   : > { %p7866_p1 = scmp.ne.s32.totalorder %s8613_s18, %s7865_s22  ;;  %p7873_p2 = scmp.lt.s32.totalorder %s8613_s18, %s8613_s18 }
  0x81   : > { %p7874_p5 = scmp.lt.s32.totalorder %s7872_s7, %s7865_s22 }
  0x82   : > { %p7868_p4 = pnand %p7866_p1, %p8629_p8 }
  0x83   : > { %p7875_p7 = por %p7874_p5, %p7873_p2 }
  0x84   : > { %p7869_p0 = pneg %p7868_p4 }
  0x86   : > { %p7876_p9 = pnand %p7875_p7, %p7869_p0 }
  0x88   : > { %7879 = shalt.err (!%p7876_p9)
}
  0x89   : > { %7571 = dma.hbm_to_vmem [thread:$0]  (!%p8617_p6), %s9743_s3, 16, %s8613_s18, [#allocation12]  }
  0x8a   : > { %s7880_s10 = scalar_lea.hbm %s9739_s24, 16 }
  0x8b   : > { %p7881_p10 = scmp.ne.s32.totalorder %s9739_s24, %s7880_s10  ;;  %p7887_p13 = scmp.lt.u32.totalorder %s7880_s10, %s9739_s24 }
  0x8d   : > { %p7883_p11 = pnand %p7881_p10, %p8629_p8 }
  0x8f   : > { %p7884_p12 = pneg %p7883_p11 }
  0x91   : > { %p7889_p1 = pnand %p7887_p13, %p7884_p12 }
  0x93   : > { %7892 = shalt.err (!%p7889_p1)
}
  0x94   : > { %s7893_s8 = scalar_lea.vmem %s8621_s23, 16  ;;  %s7900_s22 = scalar_lea.vmem %s8621_s23, 32 }
  0x95   : > { %p7894_p4 = scmp.ne.s32.totalorder %s8621_s23, %s7893_s8  ;;  %p7901_p5 = scmp.lt.s32.totalorder %s8621_s23, %s8621_s23 }
  0x96   : > { %p7902_p7 = scmp.lt.s32.totalorder %s7900_s22, %s7893_s8 }
  0x97   : > { %p7896_p0 = pnand %p7894_p4, %p8629_p8 }
  0x98   : > { %p7903_p9 = por %p7902_p7, %p7901_p5 }
  0x99   : > { %p7897_p2 = pneg %p7896_p0 }
  0x9b   : > { %p7904_p10 = pnand %p7903_p9, %p7897_p2 }
  0x9d   : > { %7907 = shalt.err (!%p7904_p10)
}
  0x9e   : > { %7577 = dma.hbm_to_vmem [thread:$0]  (!%p8617_p6), %s9739_s24, 16, %s8621_s23, [#allocation15]  }
  0x9f   : > { %s8388_s18 = smov [#allocation20]   ;;  %s7908_s10 = scalar_lea.hbm %s9741_s6, 16 }
  0xa0   : > { %s921_s7 = sshll.u32 %s8388_s18, 4  ;;  %p7909_p11 = scmp.ne.s32.totalorder %s9741_s6, %s7908_s10  ;;  %s922_s7 = int_to_ptr.vmem [resolvable:$true] %s921_s7 }
  0xa1   : > { %p7915_p1 = scmp.lt.u32.totalorder %s7908_s10, %s9741_s6 }
  0xa2   : > { %p7911_p12 = pnand %p7909_p11, %p8629_p8 }
  0xa4   : > { %p7912_p13 = pneg %p7911_p12 }
  0xa6   : > { %p7917_p4 = pnand %p7915_p1, %p7912_p13 }
  0xa8   : > { %7920 = shalt.err (!%p7917_p4)
}
  0xa9   : > { %s7921_s8 = scalar_lea.vmem %s898_s17, 16  ;;  %s7928_s22 = scalar_lea.vmem %s898_s17, 32 }
  0xaa   : > { %p7922_p0 = scmp.ne.s32.totalorder %s898_s17, %s7921_s8  ;;  %p7929_p7 = scmp.lt.s32.totalorder %s898_s17, %s898_s17 }
  0xab   : > { %p7930_p9 = scmp.lt.s32.totalorder %s7928_s22, %s7921_s8 }
  0xac   : > { %p7924_p2 = pnand %p7922_p0, %p8629_p8 }
  0xad   : > { %p7931_p10 = por %p7930_p9, %p7929_p7 }
  0xae   : > { %p7925_p5 = pneg %p7924_p2 }
  0xb0   : > { %p7932_p3 = pnand %p7931_p10, %p7925_p5 }
  0xb2   : > { %7935 = shalt.err (!%p7932_p3)
}
  0xb3   : > { %7583 = dma.hbm_to_vmem [thread:$0]  (!%p8617_p6), %s9741_s6, 16, %s898_s17, [#allocation18]  }
  0xb4   : > { %s7936_s23 = scalar_lea.hbm %s9740_s20, 16 }
  0xb5   : > { %p7937_p11 = scmp.ne.s32.totalorder %s9740_s20, %s7936_s23  ;;  %p7943_p1 = scmp.lt.u32.totalorder %s7936_s23, %s9740_s20 }
  0xb7   : > { %p7939_p12 = pnand %p7937_p11, %p8629_p8 }
  0xb9   : > { %p7940_p13 = pneg %p7939_p12 }
  0xbb   : > { %p7945_p4 = pnand %p7943_p1, %p7940_p13 }
  0xbd   : > { %7948 = shalt.err (!%p7945_p4)
}
  0xbe   : > { %s7949_s18 = scalar_lea.vmem %s922_s7, 16  ;;  %s7956_s10 = scalar_lea.vmem %s922_s7, 32 }
  0xbf   : > { %p7950_p3 = scmp.ne.s32.totalorder %s922_s7, %s7949_s18  ;;  %p7957_p5 = scmp.lt.s32.totalorder %s922_s7, %s922_s7 }
  0xc0   : > { %p7958_p7 = scmp.lt.s32.totalorder %s7956_s10, %s7949_s18 }
  0xc1   : > { %p7952_p0 = pnand %p7950_p3, %p8629_p8 }
  0xc2   : > { %p7959_p9 = por %p7958_p7, %p7957_p5 }
  0xc3   : > { %p7953_p2 = pneg %p7952_p0 }
  0xc5   : > { %p7960_p10 = pnand %p7959_p9, %p7953_p2 }
  0xc7   : > { %7963 = shalt.err (!%p7960_p10)
}
  0xc8   : > { %7589 = dma.hbm_to_vmem [thread:$0]  (!%p8617_p6), %s9740_s20, 16, %s922_s7, [#allocation21]  }
  0xc9   : > { %s8389_s17 = smov [#allocation23]   ;;  %s7964_s22 = scalar_lea.hbm %s9742_s4, 16 }
  0xca   : > { %s945_s8 = sshll.u32 %s8389_s17, 4  ;;  %p7965_p11 = scmp.ne.s32.totalorder %s9742_s4, %s7964_s22  ;;  %s946_s8 = int_to_ptr.vmem [resolvable:$true] %s945_s8 }
  0xcb   : > { %p7971_p1 = scmp.lt.u32.totalorder %s7964_s22, %s9742_s4 }
  0xcc   : > { %p7967_p12 = pnand %p7965_p11, %p8629_p8 }
  0xce   : > { %p7968_p13 = pneg %p7967_p12 }
  0xd0   : > { %p7973_p4 = pnand %p7971_p1, %p7968_p13 }
  0xd2   : > { %7976 = shalt.err (!%p7973_p4)
}
  0xd3   : > { %s7977_s23 = scalar_lea.vmem %s946_s8, 16  ;;  %s7984_s18 = scalar_lea.vmem %s946_s8, 32 }
  0xd4   : > { %p7978_p3 = scmp.ne.s32.totalorder %s946_s8, %s7977_s23  ;;  %p7985_p5 = scmp.lt.s32.totalorder %s946_s8, %s946_s8 }
  0xd5   : > { %p7986_p7 = scmp.lt.s32.totalorder %s7984_s18, %s7977_s23 }
  0xd6   : > { %p7980_p0 = pnand %p7978_p3, %p8629_p8 }
  0xd7   : > { %p7987_p9 = por %p7986_p7, %p7985_p5 }
  0xd8   : > { %p7981_p2 = pneg %p7980_p0 }
  0xda   : > { %p7988_p10 = pnand %p7987_p9, %p7981_p2 }
  0xdc   : > { %7991 = shalt.err (!%p7988_p10)
}
  0xdd   : > { %7595 = dma.hbm_to_vmem [thread:$0]  (!%p8617_p6), %s9742_s4, 16, %s946_s8, [#allocation24]  }
  0xde   : > { %s6692_s7 = sadd.s32 4294967294, %s8350_s0   ;;  %s8712_s10 = sadd.s32 1, %s8350_s0  }
  0xdf   : > { %9748 = sst [smem:[#allocation63_spill]] %s8712_s10  ;;  %s96_s17 = ssub.s32 %s8350_s0, %s8712_s10 }
  0xe0   : > { %s99_s22 = sadd.s32 1, %s8346_s2  ;;  %p97_p11 = scmp.eq.s32.totalorder %s96_s17, 0 }
  0xe1   : > { %p106_p12 = scmp.ne.s32.totalorder %s8346_s2, %s8342_s1  ;;  %p107_p13 = scmp.eq.s32.totalorder %s8350_s0, 0 }
  0xe2   : > { %p112_p1 = scmp.ne.s32.totalorder %s8342_s1, %s8338_s28  ;;  %p9750_p3 = scmp.eq.s32.totalorder %s8599_s11, 0 }
  0xe3   : > { %s8723_s23 = scalar_select %p97_p11, %s8346_s2, %s99_s22  }
  0xe4   : > { %p108_p4 = por %p107_p13, %p106_p12  ;;  %p8727_p0 = por %p9750_p3, %p112_p1 }
  0xe5   : > { %9749 = sst [smem:[#allocation64_spill]] %s8723_s23  ;;  %p802_p2 = scmp.eq.s32.totalorder %s8599_s11, 1 }
  0xe6   : > { %s9751_s8 = scalar_select %p8727_p0, 1, 0 }
  0xe7   : > { %p808_p5 = scmp.eq.s32.totalorder %s6692_s7, 1  ;;  %p7627_p7 = scmp.lt.s32.totalorder %s8350_s0, 2 }
  0xe8   : > { %s9690_s18 = sand.u32 1, %s8346_s2   ;;  %p8734_p9 = por %p802_p2, %p106_p12 }
  0xe9   : > { %p8738_p10 = por %p808_p5, %p112_p1  ;;  %s8744_s22 = sshll.u32 %s9690_s18, 3 }
  0xea   : > { %s9752_s17 = scalar_select %p8734_p9, 1, 0 }
  0xeb   : > { %s9754_s3 = scalar_select %p8738_p10, 1, 0 }
  0xec   : > { %9753 = sst [smem:[#allocation65_spill]] %s9752_s17  ;;  %s8747_s4 = sshll.u32 %s8350_s0, 7 }
  0xed   : > { %9755 = sst [smem:[#allocation66_spill]] %s9754_s3  ;;  %p8749_p11 = pnand %p7627_p7, %p108_p4 }
  0xee   : > { %s9700_s6 = sand.u32 1, %s8350_s0   ;;  %s8756_s20 = scalar_lea.hbm %s9737_s9, %s8747_s4 }
  0xef   : > { %s9756_s7 = scalar_select %p8749_p11, 1, 0 }
  0xf0   : > { %s1030_s24 = scalar_lea.vmem [#allocation5], %s8744_s22  ;;  %s8763_s18 = scalar_lea.sflag [#allocation6], %s9700_s6 }
  0xf1   : > { %s1037_s25 = sshll.u32 %s1030_s24, 4  ;;  %s7992_s23 = scalar_lea.hbm %s8756_s20, 128  ;;  %s8759_s25 = int_to_ptr.vmem [resolvable:$true] %s1037_s25 }
  0xf2   : > { %p7993_p12 = scmp.ne.s32.totalorder %s8756_s20, %s7992_s23  ;;  %p8769_p13 = pneg %p8749_p11 }
  0xf3   : > { %s7997_s3 = scalar_lea.hbm %s9737_s9, 256  ;;  %p7998_p3 = scmp.lt.u32.totalorder %s8756_s20, %s9737_s9 }
  0xf4   : > { %s9757_s10 = scalar_select %p8769_p13, 1, 0 }
  0xf5   : > { %p7995_p1 = pnand %p8769_p13, %p7993_p12  ;;  %p7999_p2 = scmp.lt.u32.totalorder %s7997_s3, %s7992_s23 }
  0xf6   : > { %p8001_p7 = scmp.lt.u32.totalorder %s7992_s23, %s8756_s20 }
  0xf7   : > { %p7996_p4 = pneg %p7995_p1  ;;  %p8000_p5 = por %p7999_p2, %p7998_p3 }
  0xf9   : > { %p8002_p10 = por %p8001_p7, %p8000_p5 }
  0xfb   : > { %p8003_p9 = pnand %p8002_p10, %p7996_p4 }
  0xfd   : > { %8006 = shalt.err (!%p8003_p9)
}
  0xfe   : > { %s8007_s24 = scalar_lea.vmem %s8759_s25, 128  ;;  %s8390_s6 = smov [#allocation5]  }
  0xff   : > { %p8008_p0 = scmp.ne.s32.totalorder %s8759_s25, %s8007_s24  ;;  %s8012_s28 = sshll.u32 %s8390_s6, 4  ;;  %s8013_s28 = int_to_ptr.vmem [resolvable:$false] %s8012_s28 }
 0x100   : > { %s8014_s17 = scalar_lea.vmem %s8013_s28, 256  ;;  %p8015_p12 = scmp.lt.s32.totalorder %s8759_s25, %s8013_s28 }
 0x101   : > { %p8010_p6 = pnand %p8008_p0, %p8769_p13  ;;  %p8016_p1 = scmp.lt.s32.totalorder %s8014_s17, %s8007_s24 }
 0x103   : > { %p8011_p8 = pneg %p8010_p6  ;;  %p8017_p3 = por %p8016_p1, %p8015_p12 }
 0x105   : > { %p8018_p2 = pnand %p8017_p3, %p8011_p8 }
 0x107   : > { %8021 = shalt.err (!%p8018_p2)
}
 0x108   : > { %7605 = dma.hbm_to_vmem [thread:$0]  (!%p8749_p11), %s8756_s20, 128, %s8759_s25, %s8763_s18  }
 0x109   : > { %s8391_s3 = smov [#allocation13]   ;;  %s8392_s6 = smov [#allocation16]  }
 0x10a   : > { %s859_s23 = sshll.u32 %s8391_s3, 4  ;;  %s883_s9 = sshll.u32 %s8392_s6, 4  ;;  %s860_s23 = int_to_ptr.vmem [resolvable:$true] %s859_s23  ;;  %s884_s9 = int_to_ptr.vmem [resolvable:$true] %s883_s9 }
 0x10b   : > { %s8022_s28 = scalar_lea.hbm %s8461_s14, 16  ;;  %p9758_p0 = scmp.ne.s32.totalorder %s9747_s16, 0 }
 0x10c   : > { %p8023_p6 = scmp.ne.s32.totalorder %s8461_s14, %s8022_s28  ;;  %p8029_p10 = scmp.lt.u32.totalorder %s8022_s28, %s8461_s14 }
 0x10e   : > { %p8025_p8 = pnand %p8023_p6, %p9758_p0 }
 0x110   : > { %p8026_p9 = pneg %p8025_p8 }
 0x112   : > { %p8031_p4 = pnand %p8029_p10, %p8026_p9 }
 0x114   : > { %8034 = shalt.err (!%p8031_p4)
}
 0x115   : > { %s8035_s17 = scalar_lea.vmem %s860_s23, 16  ;;  %s8042_s25 = scalar_lea.vmem %s860_s23, 32 }
 0x116   : > { %p8036_p5 = scmp.ne.s32.totalorder %s860_s23, %s8035_s17  ;;  %p8043_p1 = scmp.lt.s32.totalorder %s860_s23, %s860_s23 }
 0x117   : > { %p8044_p3 = scmp.lt.s32.totalorder %s8042_s25, %s8035_s17 }
 0x118   : > { %p8038_p7 = pnand %p8036_p5, %p9758_p0 }
 0x119   : > { %p8045_p2 = por %p8044_p3, %p8043_p1 }
 0x11a   : > { %p8039_p12 = pneg %p8038_p7 }
 0x11c   : > { %p8046_p11 = pnand %p8045_p2, %p8039_p12 }
 0x11e   : > { %8049 = shalt.err (!%p8046_p11)
}
 0x11f   : > { %p9759_p13 = scmp.ne.s32.totalorder %s9746_s26, 0  ;;  %s8050_s20 = scalar_lea.hbm %s8476_s30, 512 }
 0x120   : > { %p8051_p6 = scmp.ne.s32.totalorder %s8476_s30, %s8050_s20  ;;  %p8057_p10 = scmp.lt.u32.totalorder %s8050_s20, %s8476_s30 }
 0x121   : > { %7574 = dma.hbm_to_vmem [thread:$0]  (!%p9759_p13), %s8461_s14, 16, %s860_s23, [#allocation12]  }
 0x122   : > { %p8053_p8 = pnand %p8051_p6, %p9758_p0 }
 0x124   : > { %p8054_p9 = pneg %p8053_p8 }
 0x126   : > { %p8059_p4 = pnand %p8057_p10, %p8054_p9 }
 0x128   : > { %8062 = shalt.err (!%p8059_p4)
}
 0x129   : > { %s8063_s24 = scalar_lea.vmem %s884_s9, 512  ;;  %p8071_p12 = scmp.lt.s32.totalorder %s884_s9, %s884_s9 }
 0x12a   : > { %p8064_p11 = scmp.ne.s32.totalorder %s884_s9, %s8063_s24  ;;  %p8072_p1 = scmp.lt.s32.totalorder %s8063_s24, %s8063_s24 }
 0x12c   : > { %p8066_p5 = pnand %p8064_p11, %p9758_p0  ;;  %p8073_p3 = por %p8072_p1, %p8071_p12 }
 0x12e   : > { %p8067_p7 = pneg %p8066_p5 }
 0x130   : > { %p8074_p2 = pnand %p8073_p3, %p8067_p7 }
 0x132   : > { %8077 = shalt.err (!%p8074_p2)
}
 0x133   : > { %s8393_s3 = smov 128   ;;  %s8394_s23 = smov 8  }
 0x134   : > { %7580 = dma.hbm_to_vmem [thread:$0]  (!%p9759_p13), %s8476_s30, 512, %s884_s9, [#allocation15], %s8393_s3, %s8393_s3, %s8394_s23  }
 0x135   : > { %s8395_s6 = smov [#allocation19]   ;;  %s8396_s17 = smov [#allocation22]  }
 0x136   : > { %s907_s28 = sshll.u32 %s8395_s6, 4  ;;  %s931_s25 = sshll.u32 %s8396_s17, 4  ;;  %s908_s28 = int_to_ptr.vmem [resolvable:$true] %s907_s28  ;;  %s932_s25 = int_to_ptr.vmem [resolvable:$true] %s931_s25 }
 0x137   : > { %s8078_s20 = scalar_lea.hbm %s8486_s12, 512 }
 0x138   : > { %p8079_p6 = scmp.ne.s32.totalorder %s8486_s12, %s8078_s20  ;;  %p8085_p10 = scmp.lt.u32.totalorder %s8078_s20, %s8486_s12 }
 0x13a   : > { %p8081_p8 = pnand %p8079_p6, %p9758_p0 }
 0x13c   : > { %p8082_p9 = pneg %p8081_p8 }
 0x13e   : > { %p8087_p4 = pnand %p8085_p10, %p8082_p9 }
 0x140   : > { %8090 = shalt.err (!%p8087_p4)
}
 0x141   : > { %s8091_s24 = scalar_lea.vmem %s908_s28, 512  ;;  %p8099_p12 = scmp.lt.s32.totalorder %s908_s28, %s908_s28 }
 0x142   : > { %p8092_p11 = scmp.ne.s32.totalorder %s908_s28, %s8091_s24  ;;  %p8100_p1 = scmp.lt.s32.totalorder %s8091_s24, %s8091_s24 }
 0x144   : > { %p8094_p5 = pnand %p8092_p11, %p9758_p0  ;;  %p8101_p3 = por %p8100_p1, %p8099_p12 }
 0x146   : > { %p8095_p7 = pneg %p8094_p5 }
 0x148   : > { %p8102_p2 = pnand %p8101_p3, %p8095_p7 }
 0x14a   : > { %8105 = shalt.err (!%p8102_p2)
}
 0x14b   : > { %7586 = dma.hbm_to_vmem [thread:$0]  (!%p9759_p13), %s8486_s12, 512, %s908_s28, [#allocation18], %s8393_s3, %s8393_s3, %s8394_s23  }
 0x14c   : > { %s8106_s9 = scalar_lea.hbm %s8496_s27, 512 }
 0x14d   : > { %p8107_p6 = scmp.ne.s32.totalorder %s8496_s27, %s8106_s9  ;;  %p8113_p10 = scmp.lt.u32.totalorder %s8106_s9, %s8496_s27 }
 0x14f   : > { %p8109_p8 = pnand %p8107_p6, %p9758_p0 }
 0x151   : > { %p8110_p9 = pneg %p8109_p8 }
 0x153   : > { %p8115_p4 = pnand %p8113_p10, %p8110_p9 }
 0x155   : > { %8118 = shalt.err (!%p8115_p4)
}
 0x156   : > { %s8119_s6 = scalar_lea.vmem %s932_s25, 512  ;;  %p8127_p12 = scmp.lt.s32.totalorder %s932_s25, %s932_s25 }
 0x157   : > { %p8120_p11 = scmp.ne.s32.totalorder %s932_s25, %s8119_s6  ;;  %p8128_p1 = scmp.lt.s32.totalorder %s8119_s6, %s8119_s6 }
 0x159   : > { %p8122_p5 = pnand %p8120_p11, %p9758_p0  ;;  %p8129_p3 = por %p8128_p1, %p8127_p12 }
 0x15b   : > { %p8123_p7 = pneg %p8122_p5 }
 0x15d   : > { %p8130_p2 = pnand %p8129_p3, %p8123_p7 }
 0x15f   : > { %8133 = shalt.err (!%p8130_p2)
}
 0x160   : > { %7592 = dma.hbm_to_vmem [thread:$0]  (!%p9759_p13), %s8496_s27, 512, %s932_s25, [#allocation21], %s8393_s3, %s8393_s3, %s8394_s23  }
 0x161   : > { %s8397_s28 = smov [#allocation25]   ;;  %s8134_s20 = scalar_lea.hbm %s8516_s29, 512 }
 0x162   : > { %s961_s17 = sshll.u32 %s8397_s28, 4  ;;  %p8135_p6 = scmp.ne.s32.totalorder %s8516_s29, %s8134_s20  ;;  %s962_s17 = int_to_ptr.vmem [resolvable:$true] %s961_s17 }
 0x163   : > { %p8141_p10 = scmp.lt.u32.totalorder %s8134_s20, %s8516_s29 }
 0x164   : > { %p8137_p8 = pnand %p8135_p6, %p9758_p0 }
 0x166   : > { %p8138_p9 = pneg %p8137_p8 }
 0x168   : > { %p8143_p4 = pnand %p8141_p10, %p8138_p9 }
 0x16a   : > { %8146 = shalt.err (!%p8143_p4)
}
 0x16b   : > { %s8147_s24 = scalar_lea.vmem %s962_s17, 512  ;;  %p8155_p12 = scmp.lt.s32.totalorder %s962_s17, %s962_s17 }
 0x16c   : > { %p8148_p11 = scmp.ne.s32.totalorder %s962_s17, %s8147_s24  ;;  %p8156_p1 = scmp.lt.s32.totalorder %s8147_s24, %s8147_s24 }
 0x16e   : > { %p8150_p5 = pnand %p8148_p11, %p9758_p0  ;;  %p8157_p3 = por %p8156_p1, %p8155_p12 }
 0x170   : > { %p8151_p7 = pneg %p8150_p5 }
 0x172   : > { %p8158_p2 = pnand %p8157_p3, %p8151_p7 }
 0x174   : > { %8161 = shalt.err (!%p8158_p2)
}
 0x175   : > { %7598 = dma.hbm_to_vmem [thread:$0]  (!%p9759_p13), %s8516_s29, 512, %s962_s17, [#allocation24], %s8393_s3, %s8393_s3, %s8394_s23  }
 0x176   : > { %s8853_s16 = scalar_lea.hbm %s9736_s5, %s8747_s4  ;;  %s1012_s25 = scalar_lea.vmem [#allocation2], %s8744_s22 }
 0x177   : > { %s1019_s26 = sshll.u32 %s1012_s25, 4  ;;  %s9760_s9 = sand.u32 1, %s8346_s2   ;;  %s1020_s26 = int_to_ptr.vmem [resolvable:$true] %s1019_s26 }
 0x178   : > { %s1009_s6 = scalar_lea.sflag [#allocation3], %s9760_s9  ;;  %s8162_s28 = scalar_lea.hbm %s8853_s16, 128 }
 0x179   : > { %p8163_p0 = scmp.ne.s32.totalorder %s8853_s16, %s8162_s28  ;;  %p9761_p6 = scmp.ne.s32.totalorder %s9757_s10, 0 }
 0x17a   : > { %s8167_s20 = scalar_lea.hbm %s9736_s5, 256  ;;  %p8168_p10 = scmp.lt.u32.totalorder %s8853_s16, %s9736_s5 }
 0x17b   : > { %p8165_p8 = pnand %p8163_p0, %p9761_p6  ;;  %p8169_p4 = scmp.lt.u32.totalorder %s8167_s20, %s8162_s28 }
 0x17c   : > { %p8171_p11 = scmp.lt.u32.totalorder %s8162_s28, %s8853_s16 }
 0x17d   : > { %p8166_p9 = pneg %p8165_p8  ;;  %p8170_p13 = por %p8169_p4, %p8168_p10 }
 0x17f   : > { %p8172_p5 = por %p8171_p11, %p8170_p13 }
 0x181   : > { %p8173_p7 = pnand %p8172_p5, %p8166_p9 }
 0x183   : > { %8176 = shalt.err (!%p8173_p7)
}
 0x184   : > { %s8177_s3 = scalar_lea.vmem %s1020_s26, 128  ;;  %s8398_s23 = smov [#allocation2]  }
 0x185   : > { %p8178_p12 = scmp.ne.s32.totalorder %s1020_s26, %s8177_s3  ;;  %s8182_s17 = sshll.u32 %s8398_s23, 4  ;;  %s8183_s17 = int_to_ptr.vmem [resolvable:$false] %s8182_s17 }
 0x186   : > { %s8184_s24 = scalar_lea.vmem %s8183_s17, 256  ;;  %p8185_p2 = scmp.lt.s32.totalorder %s1020_s26, %s8183_s17 }
 0x187   : > { %p8180_p1 = pnand %p8178_p12, %p9761_p6  ;;  %p8186_p0 = scmp.lt.s32.totalorder %s8184_s24, %s8177_s3 }
 0x189   : > { %p8181_p3 = pneg %p8180_p1  ;;  %p8187_p8 = por %p8186_p0, %p8185_p2 }
 0x18b   : > { %p8188_p4 = pnand %p8187_p8, %p8181_p3 }
 0x18d   : > { %8191 = shalt.err (!%p8188_p4)
}
 0x18e   : > { %p9762_p10 = scmp.ne.s32.totalorder %s9756_s7, 0  ;;  %s8873_s25 = scalar_lea.hbm %s8426_s13, %s8747_s4 }
 0x18f   : > { %s1048_s9 = scalar_lea.vmem [#allocation7], %s8744_s22  ;;  %s8192_s20 = scalar_lea.hbm %s8873_s25, 128 }
 0x190   : > { %7602 = dma.hbm_to_vmem [thread:$0]  (!%p9762_p10), %s8853_s16, 128, %s1020_s26, %s1009_s6  }
 0x191   : > { %s1055_s28 = sshll.u32 %s1048_s9, 4  ;;  %p8193_p9 = scmp.ne.s32.totalorder %s8873_s25, %s8192_s20  ;;  %s1056_s28 = int_to_ptr.vmem [resolvable:$true] %s1055_s28 }
 0x192   : > { %s8197_s3 = scalar_lea.hbm %s8426_s13, 256  ;;  %p8198_p5 = scmp.lt.u32.totalorder %s8873_s25, %s8426_s13 }
 0x193   : > { %p8195_p13 = pnand %p8193_p9, %p9761_p6  ;;  %p8199_p7 = scmp.lt.u32.totalorder %s8197_s3, %s8192_s20 }
 0x194   : > { %p8201_p1 = scmp.lt.u32.totalorder %s8192_s20, %s8873_s25 }
 0x195   : > { %p8196_p11 = pneg %p8195_p13  ;;  %p8200_p12 = por %p8199_p7, %p8198_p5 }
 0x197   : > { %p8202_p3 = por %p8201_p1, %p8200_p12 }
 0x199   : > { %p8203_p2 = pnand %p8202_p3, %p8196_p11 }
 0x19b   : > { %8206 = shalt.err (!%p8203_p2)
}
 0x19c   : > { %s8207_s16 = scalar_lea.vmem %s1056_s28, 128  ;;  %s8399_s26 = smov [#allocation7]  }
 0x19d   : > { %p8208_p0 = scmp.ne.s32.totalorder %s1056_s28, %s8207_s16  ;;  %s8212_s6 = sshll.u32 %s8399_s26, 4  ;;  %s8213_s6 = int_to_ptr.vmem [resolvable:$false] %s8212_s6 }
 0x19e   : > { %s8214_s23 = scalar_lea.vmem %s8213_s6, 256  ;;  %p8215_p9 = scmp.lt.s32.totalorder %s1056_s28, %s8213_s6 }
 0x19f   : > { %p8210_p8 = pnand %p8208_p0, %p9761_p6  ;;  %p8216_p13 = scmp.lt.s32.totalorder %s8214_s23, %s8207_s16 }
 0x1a1   : > { %p8211_p4 = pneg %p8210_p8  ;;  %p8217_p10 = por %p8216_p13, %p8215_p9 }
 0x1a3   : > { %p8218_p5 = pnand %p8217_p10, %p8211_p4 }
 0x1a5   : > { %8221 = shalt.err (!%p8218_p5)
}
 0x1a6   : > { %p9763_p7 = scmp.ne.s32.totalorder %s9756_s7, 0  ;;  %s9764_s17 = sld [smem:[#allocation39_spill]] }
 0x1a7   : > { %s1066_s9 = scalar_lea.vmem [#allocation8], %s8744_s22  ;;  %s9765_s3 = sand.u32 1, %s8350_s0  }
 0x1a8   : > { %7608 = dma.hbm_to_vmem [thread:$0]  (!%p9763_p7), %s8873_s25, 128, %s1056_s28, %s8763_s18  }
 0x1a9   : > { %s1073_s20 = sshll.u32 %s1066_s9, 4  ;;  %s1063_s16 = scalar_lea.sflag [#allocation9], %s9765_s3  ;;  %s1074_s20 = int_to_ptr.vmem [resolvable:$true] %s1073_s20 }
 0x1ac   : > { %s8892_s24 = scalar_lea.hbm %s9764_s17, %s8747_s4  ;;  %s8227_s6 = scalar_lea.hbm %s9764_s17, 256 }
 0x1ad   : > { %s8222_s26 = scalar_lea.hbm %s8892_s24, 128  ;;  %p8228_p1 = scmp.lt.u32.totalorder %s8892_s24, %s9764_s17 }
 0x1ae   : > { %p8223_p10 = scmp.ne.s32.totalorder %s8892_s24, %s8222_s26  ;;  %p8229_p3 = scmp.lt.u32.totalorder %s8227_s6, %s8222_s26 }
 0x1af   : > { %p8231_p0 = scmp.lt.u32.totalorder %s8222_s26, %s8892_s24 }
 0x1b0   : > { %p8225_p11 = pnand %p8223_p10, %p9761_p6  ;;  %p8230_p2 = por %p8229_p3, %p8228_p1 }
 0x1b2   : > { %p8226_p12 = pneg %p8225_p11  ;;  %p8232_p8 = por %p8231_p0, %p8230_p2 }
 0x1b4   : > { %p8233_p4 = pnand %p8232_p8, %p8226_p12 }
 0x1b6   : > { %8236 = shalt.err (!%p8233_p4)
}
 0x1b7   : > { %s8237_s4 = scalar_lea.vmem %s1074_s20, 128  ;;  %s8400_s18 = smov [#allocation8]  }
 0x1b8   : > { %p8238_p9 = scmp.ne.s32.totalorder %s1074_s20, %s8237_s4  ;;  %s8242_s22 = sshll.u32 %s8400_s18, 4  ;;  %s8243_s22 = int_to_ptr.vmem [resolvable:$false] %s8242_s22 }
 0x1b9   : > { %s8244_s25 = scalar_lea.vmem %s8243_s22, 256  ;;  %p8245_p10 = scmp.lt.s32.totalorder %s1074_s20, %s8243_s22 }
 0x1ba   : > { %p8240_p13 = pnand %p8238_p9, %p9761_p6  ;;  %p8246_p11 = scmp.lt.s32.totalorder %s8244_s25, %s8237_s4 }
 0x1bc   : > { %p8241_p5 = pneg %p8240_p13  ;;  %p8247_p7 = por %p8246_p11, %p8245_p10 }
 0x1be   : > { %p8248_p1 = pnand %p8247_p7, %p8241_p5 }
 0x1c0   : > { %8251 = shalt.err (!%p8248_p1)
}
 0x1c1   : > { %p9766_p3 = scmp.ne.s32.totalorder %s9756_s7, 0  ;;  %p9767_p12 = scmp.ne.s32.totalorder %s9745_s15, 0 }
 0x1c2   : > { %s8913_s10 = sand.u32 (!%p9767_p12), 1, %s8342_s1   ;;  %p9768_p6 = scmp.ne.s32.totalorder (!%p9767_p12), %s9751_s8, 0 }
 0x1c3   : > { %7611 = dma.hbm_to_vmem [thread:$0]  (!%p9766_p3), %s8892_s24, 128, %s1074_s20, %s1063_s16  }
 0x1c4   : > { %1082 = sbr.rel (%p9767_p12) target bundleno = 12944 (0x3290), region = 148  ;;  %s8916_s28 = sshll.u32 (!%p9767_p12), %s8913_s10, 3 }
 0x1c5   : > { %s1085_s23 = scalar_lea.sflag (!%p9767_p12), [#allocation3], %s8913_s10  ;;  %s1088_s9 = scalar_lea.vmem (!%p9767_p12), [#allocation2], %s8916_s28 }
 0x1cb   : > { %8297 = dma.done.wait (%p9768_p6), %s1085_s23, 128  }
 0x1cc   : > { %8299 = vsyncadd (%p9768_p6), %s1085_s23, 4294967168  ;;  %s1093_s15 = sand.u32 1, %s8599_s11   ;;  %s1097_s24 = scalar_lea.vmem [#allocation5], %s8916_s28 }
 0x1cd   : > { %s1094_s7 = scalar_lea.sflag [#allocation6], %s1093_s15 }
 0x1ce   : > { %8301 = dma.done.wait (%p9768_p6), %s1094_s7, 256  }
 0x1cf   : > { %8303 = vsyncadd (%p9768_p6), %s1094_s7, 4294967040  ;;  %s1106_s20 = scalar_lea.vmem [#allocation7], %s8916_s28  ;;  %s1112_s3 = scalar_lea.sflag [#allocation9], %s1093_s15 }
 0x1d0   : > { %s1115_s16 = scalar_lea.vmem [#allocation8], %s8916_s28 }
 0x1d1   : > { %8305 = dma.done.wait (%p9768_p6), %s1112_s3, 128  }
 0x1d2   : > { %8307 = vsyncadd (%p9768_p6), %s1112_s3, 4294967168  ;;  %p9769_p7 = scmp.eq.s32.totalorder %s8599_s11, 0 }
 0x1d4   : > { %8309 = dma.done.wait (%p9769_p7), [#allocation9], 16   ;;  %p9770_p2 = pmov %p9769_p7 }
 0x1d6   : > { %8311 = vsyncadd (%p9770_p2), [#allocation9], 4294967280  ;;  %p9771_p0 = pmov %p9770_p2 }
 0x1d8   : > { %8313 = dma.done.wait (%p9771_p0), [#allocation12], 32   ;;  %p9772_p8 = pmov %p9771_p0 }
 0x1d9   : > { %p9773_p4 = pmov %p9771_p0 }
 0x1da   : > { %8315 = vsyncadd (%p9772_p8), [#allocation12], 4294967264 }
 0x1db   : > { %8317 = dma.done.wait (%p9773_p4), [#allocation15], 528   ;;  %p9774_p9 = pmov %p9771_p0 }
 0x1dc   : > { %p9775_p13 = pmov %p9771_p0 }
 0x1dd   : > { %8319 = vsyncadd (%p9774_p9), [#allocation15], 4294966768 }
 0x1de   : > { %8321 = dma.done.wait (%p9775_p13), [#allocation18], 528   ;;  %p9776_p5 = pmov %p9771_p0 }
 0x1df   : > { %p9777_p10 = pmov %p9771_p0 }
 0x1e0   : > { %8323 = vsyncadd (%p9776_p5), [#allocation18], 4294966768 }
 0x1e1   : > { %8325 = dma.done.wait (%p9777_p10), [#allocation21], 528   ;;  %p9778_p11 = pmov %p9771_p0 }
 0x1e2   : > { %p9779_p1 = pmov %p9771_p0 }
 0x1e3   : > { %8327 = vsyncadd (%p9778_p11), [#allocation21], 4294966768 }
 0x1e4   : > { %8329 = dma.done.wait (%p9779_p1), [#allocation24], 528   ;;  %p9780_p3 = pmov %p9771_p0 }
 0x1e5   : > { %s9781_s8 = sld [smem:[#allocation40_spill]]  ;;  %s9782_s26 = sld [smem:[#allocation42_spill]]  ;;  %vm1321_vm0 = vcmask 261120   ;;  %v8960_v0 = vld [vmem:[%s1088_s9] sm:$0xff]  ;;  %v8401_v7 = vmov 0.0|0.0   ;;  %vm8402_vm1 = vmmov 0  }
 0x1e6   : > { %8331 = vsyncadd (%p9780_p3), [#allocation24], 4294966768  ;;  %v1322_v1 = vsel %vm1321_vm0, %v8960_v0, 0.0  ;;  %v1325_v2 = vmul.f32 %v8960_v0, %v8960_v0  ;;  %7415 = vmatprep.subr.bf16.mxu0 %v8401_v7  ;;  %7421 = vmatprep.subr.bf16.mxu1 %v8401_v7  ;;  %v8403_v15 = vmov 0.0   ;;  %s9783_s6 = sld [smem:[#allocation55_spill]]  ;;  %s9784_s4 = sld [smem:[#allocation44_spill]] }
 0x1e7   : > { %1323 = vadd.xlane.f32.xlu0 %v1322_v1  ;;  %7013 = vmatprep.mubr.msk.f32.mxu0 %vm8402_vm1, %v8403_v15  ;;  %s9785_s18 = sld [smem:[#allocation56_spill]]  ;;  %v6733_v44 = vld [vmem:[#allocation10] ss:$0 sm:$0xff]  ;;  %v6735_v45 = vld [vmem:[#allocation11] ss:$0 sm:$0xff]  ;;  %vm1591_vm4 = vcmask 64512  }
 0x1e8   : > { %v1326_v3 = vsel %vm1321_vm0, %v1325_v2, 0.0  ;;  %7024 = vmatprep.mubr.msk.f32.mxu1 %vm8402_vm1, %v8403_v15  ;;  %s8404_s22 = smov 120   ;;  %v6737_v53 = vld [vmem:[#allocation13] ss:$0 sm:$0xff]  ;;  %s8405_s25 = smov 112   ;;  %vm3903_vm9 = vcmask 523264  }
 0x1e9   : > { %v9047_v59 = vld [vmem:[%s1106_s20] sm:$0xff]  ;;  %s9786_s23 = sld [smem:[#allocation45_spill]]  ;;  %s8406_s9 = smov 104  }
 0x1ea   : > { %s9787_s15 = sld [smem:[#allocation57_spill]]  ;;  %s9788_s7 = sld [smem:[#allocation58_spill]] }
 0x1eb   : > { %1327 = vadd.xlane.f32.xlu0 %v1326_v3  ;;  %v1259_v4 = vld [vmem:[%s9781_s8] sm:$0xff]  ;;  %v1260_v5 = vld [vmem:[%s9781_s8 + $0x8] sm:$0xff]  ;;  %v1261_v10 = vld [vmem:[%s9781_s8 + $0x10] sm:$0xff]  ;;  %s9790_s3 = sld [smem:[#allocation51_spill]] }
 0x1ec   : > { %v1264_v6 = vld [vmem:[%s9782_s26] sm:$0xff]  ;;  %v8971_v8 = vpack.c.bf16 %v1260_v5, %v1259_v4  ;;  %v1265_v9 = vld [vmem:[%s9782_s26 + $0x8] sm:$0xff]  ;;  %v1262_v11 = vld [vmem:[%s9781_s8 + $0x18] sm:$0xff] }
 0x1ed   : > { %v8977_v12 = vpack.c.bf16 %v1265_v9, %v1264_v6  ;;  %v1266_v13 = vld [vmem:[%s9782_s26 + $0x10] sm:$0xff]  ;;  %v1267_v14 = vld [vmem:[%s9782_s26 + $0x18] sm:$0xff]  ;;  %v8986_v16 = vpack.c.bf16 %v1262_v11, %v1261_v10  ;;  %v6731_v33 = vld [vmem:[%s9783_s6] ss:$0 sm:$0xff] }
 0x1ee   : > { %7417 = vmatpush3.bf16.msra.mxu0 %v8971_v8  ;;  %v8990_v17 = vpack.c.bf16 %v1267_v14, %v1266_v13  ;;  %v1269_v35 = vld [vmem:[%s9784_s4] sm:$0xff]  ;;  %v1270_v36 = vld [vmem:[%s9784_s4 + $0x8] sm:$0xff]  ;;  %v1271_v41 = vld [vmem:[%s9784_s4 + $0x10] sm:$0xff] }
 0x1ef   : > { %7423 = vmatpush3.bf16.msra.mxu1 %v8977_v12  ;;  %7418 = vmatprep.subr.bf16.mxu0 %v8401_v7  ;;  %v6732_v37 = vld [vmem:[%s9785_s18] ss:$0 sm:$0xff]  ;;  %v9002_v39 = vpack.c.bf16 %v1270_v36, %v1269_v35  ;;  %v1272_v42 = vld [vmem:[%s9784_s4 + $0x18] sm:$0xff]  ;;  %s6407_s4 = scalar_lea.sflag [#allocation4], %s8913_s10 }
 0x1f0   : > { %7424 = vmatprep.subr.bf16.mxu1 %v8401_v7  ;;  %v9009_v43 = vpack.c.bf16 %v1272_v42, %v1271_v41 }
 0x1f2   : > { %7420 = vmatpush3.bf16.msra.mxu0 %v8986_v16 }
 0x1f3   : > { %7426 = vmatpush3.bf16.msra.mxu1 %v8990_v17  ;;  %7427 = vmatprep.subr.bf16.mxu0 %v8401_v7 }
 0x1f4   : > { %7043 = vmatprep.subr.mxu1 %v8403_v15 }
 0x274   : > { %v1324_v18 = vpop.xlane.xlu0 %1323 }
 0x275   : > { %v1329_v19 = vmul.f32 0.03125, %v1324_v18 }
 0x277   : > { %v1330_v20 = vmul.f32 %v1329_v19, %v1324_v18  ;;  %v1343_v31 = vsub.f32 %v8960_v0, %v1329_v19 }
 0x278   : > { %v1328_v21 = vpop.xlane.xlu0 %1327 }
 0x279   : > { %v1331_v22 = vsub.f32 %v1328_v21, %v1330_v20 }
 0x27b   : > { %v1332_v23 = vmul.f32 0.032258064, %v1331_v22 }
 0x27d   : > { %v1333_v24 = vmax.f32 %v1332_v23, 0.0 }
 0x27f   : > { %7723 = vrsqrt.f32 %v1333_v24  ;;  %vm1336_vm2 = vcmp.eq.f32.partialorder %v1333_v24, inf  ;;  %v1339_v27 = vand.u32 2147483648, %v1333_v24  ;;  %vm1338_vm3 = vcmp.eq.f32.partialorder %v1333_v24, 0.0 }
 0x289   : > { %v7724_v25 = vpop.eup %7723 }
 0x28a   : > { %v1335_v26 = vmul.f32 %v7724_v25, %v1333_v24 }
 0x28c   : > { %v1337_v28 = vsel %vm1336_vm2, %v1333_v24, %v1335_v26  ;;  %v9065_v24 = vld [vmem:[%s9786_s23 + $0x8] sm:$0xff] }
 0x28d   : > { %v1340_v29 = vsel %vm1338_vm3, %v1339_v27, %v1337_v28 }
 0x28e   : > { %v1341_v30 = vadd.f32 1e-06, %v1340_v29  ;;  %v1274_v29 = vld [vmem:[%s9786_s23] sm:$0xff] }
 0x290   : > { %7725 = vrcp.f32 %v1341_v30 }
 0x29a   : > { %v7726_v32 = vpop.eup %7725 }
 0x29b   : > { %v1344_v34 = vmul.f32 %v7726_v32, %v1343_v31 }
 0x29d   : > { %v1351_v38 = vmul.f32 %v6731_v33, %v1344_v34 }
 0x29f   : > { %v1358_v40 = vadd.f32 %v6732_v37, %v1351_v38 }
 0x2a1   : > { %7014 = vmatmul.mubr.msk.f32.vlgmr.msra.gmra.mrb[0].mxu0 %vm1321_vm0, %v1358_v40  ;;  %7025 = vmatmul.mubr.msk.f32.vlgmr.msra.gmra.mrb[0].mxu1 %vm1321_vm0, %v1358_v40 }
 0x2a2   : > { %7429 = vmatpush3.bf16.msra.mxu0 %v9002_v39  ;;  %7035 = vmatprep.mubr.msk.f32.mxu0 %vm8402_vm1, %v8403_v15 }
 0x2a3   : > { %7430 = vmatprep.subr.bf16.mxu0 %v8401_v7  ;;  %7045 = vmatprep.mubr.msk.f32.mxu1 %vm8402_vm1, %v8403_v15 }
 0x2a6   : > { %7432 = vmatpush3.bf16.msra.mxu0 %v9009_v43 }
 0x2a7   : > { %7038 = vmatprep.subr.mxu0 %v8403_v15 }
 0x2a9   : > { %7036 = vmatmul.mubr.msk.f32.vlgmr.msra.gmra.mrb[2].mxu0 %vm1321_vm0, %v1358_v40 }
 0x2aa   : > { %7040 = vmatprep.mubr.msk.f32.mxu0 %vm8402_vm1, %v8403_v15 }
 0x374   : > { %v1434_v46 = vpop.f32.mrb[0].mxu0  ;;  %v1511_v47 = vpop.f32.mrb[0].mxu1 }
 0x375   : > { %v1435_v48 = vadd.f32 %v6733_v44, %v1434_v46  ;;  %v9021_v49 = vadd.f32 %v6735_v45, %v1511_v47  ;;  %v7015_v50 = vpop.f32.mrb[1].mxu0  ;;  %v7026_v51 = vpop.f32.mrb[1].mxu1 }
 0x377   : > { %v9023_v52 = vmul.f32 0.35355338, %v1435_v48  ;;  %1754 = vrot.lane.b32.xlu1 %v9021_v49, %s8404_s22  ;;  %7039 = vmatpush3.xpose.msk.msra.mxu0 %vm1591_vm4, %v9021_v49 }
 0x378   : > { %7048 = vmatprep.subr.mxu0 %v8403_v15 }
 0x37a   : > { %7041 = vmatmul.mubr.msk.f32.vlgmr.msra.gmra.mrb[4].mxu0 %vm1591_vm4, %v9023_v52 }
 0x37b   : > { %1752 = vrot.lane.b32.xlu1 %v9023_v52, %s8404_s22  ;;  %7050 = vmatprep.mubr.msk.f32.mxu0 %vm8402_vm1, %v8403_v15 }
 0x37c   : > { %v1587_v54 = vpop.f32.mrb[2].mxu0 }
 0x37d   : > { %v9036_v55 = vadd.f32 %v6737_v53, %v1587_v54  ;;  %v7037_v56 = vpop.f32.mrb[3].mxu0 }
 0x37f   : > { %7044 = vmatpush3.msra.mxu1 %v9036_v55 }
 0x380   : > { %7053 = vmatprep.subr.mxu1 %v8403_v15 }
 0x3e9   : > { %v1755_v57 = vpop.permute.xlu1 %1754 }
 0x3ea   : > { %7049 = vmatpush3.xpose.msk.msra.mxu0 %vm1591_vm4, %v1755_v57 }
 0x3eb   : > { %7058 = vmatprep.subr.mxu0 %v8403_v15 }
 0x3ed   : > { %v1753_v58 = vpop.permute.xlu1 %1752 }
 0x3ee   : > { %7051 = vmatmul.mubr.msk.f32.vlgmr.msra.gmra.mrb[6].mxu0 %vm1591_vm4, %v1753_v58 }
 0x3ef   : > { %7060 = vmatprep.mubr.msk.f32.mxu0 %vm8402_vm1, %v8403_v15  ;;  %7059 = vmatpush3.msra.mxu0 %v9065_v24 }
 0x3f0   : > { %7068 = vmatprep.subr.mxu0 %v8403_v15 }
 0x44d   : > { %v1664_v60 = vpop.f32.mrb[4].mxu0 }
 0x44e   : > { %v1665_v61 = vadd.f32 %v1664_v60, %v9047_v59  ;;  %v7042_v62 = vpop.f32.mrb[5].mxu0 }
 0x450   : > { %v1668_v63 = vsel %vm1591_vm4, %v1665_v61, -inf }
 0x451   : > { %1669 = vmax.xlane.f32.xlu0 %v1668_v63 }
 0x4c1   : > { %v1826_v1 = vpop.f32.mrb[6].mxu0 }
 0x4c2   : > { %v1827_v2 = vadd.f32 %v1826_v1, %v9047_v59  ;;  %v7052_v3 = vpop.f32.mrb[7].mxu0 }
 0x4c4   : > { %v1830_v4 = vsel %vm1591_vm4, %v1827_v2, -inf }
 0x4c5   : > { %1831 = vmax.xlane.f32.xlu1 %v1830_v4 }
 0x4d6   : > { %2064 = vrot.lane.b32.xlu1 %v9023_v52, %s8405_s25 }
 0x4de   : > { %v1670_v5 = vpop.xlane.xlu0 %1669 }
 0x4df   : > { %v1671_v6 = vsub.f32 %v1665_v61, %v1670_v5 }
 0x4e1   : > { %v1672_v9 = vmul.f32 1.442695, %v1671_v6 }
 0x4e3   : > { %7727 = vpow2.f32 %v1672_v9 }
 0x4ed   : > { %v7728_v10 = vpop.eup %7727 }
 0x4ee   : > { %v1674_v11 = vsel %vm1591_vm4, %v7728_v10, 0.0 }
 0x4ef   : > { %1675 = vadd.xlane.f32.xlu0 %v1674_v11 }
 0x552   : > { %v1832_v13 = vpop.xlane.xlu1 %1831 }
 0x553   : > { %v1833_v14 = vsub.f32 %v1827_v2, %v1832_v13 }
 0x555   : > { %v1834_v18 = vmul.f32 1.442695, %v1833_v14 }
 0x556   : > { %v2065_v35 = vpop.permute.xlu1 %2064 }
 0x557   : > { %7729 = vpow2.f32 %v1834_v18 }
 0x561   : > { %v7730_v19 = vpop.eup %7729 }
 0x562   : > { %v1836_v20 = vsel %vm1591_vm4, %v7730_v19, 0.0 }
 0x563   : > { %1837 = vadd.xlane.f32.xlu0 %v1836_v20 }
 0x579   : > { %1842 = vrot.lane.b32.xlu0 %v9036_v55, %s8404_s22 }
 0x57c   : > { %v1676_v21 = vpop.xlane.xlu0 %1675 }
 0x57d   : > { %7731 = vrcp.f32 %v1676_v21  ;;  %2066 = vrot.lane.b32.xlu0 %v9021_v49, %s8405_s25 }
 0x587   : > { %v7732_v22 = vpop.eup %7731 }
 0x588   : > { %v1678_v23 = vmul.f32 %v7732_v22, %v7728_v10 }
 0x58a   : > { %7046 = vmatmul.mubr.msk.f32.vlgmr.msra.gmra.mrb[2].mxu1 %vm1591_vm4, %v1678_v23  ;;  %v6755_v23 = vld [vmem:[#allocation14] ss:$0 sm:$0xff] }
 0x58b   : > { %7055 = vmatprep.mubr.msk.f32.mxu1 %vm8402_vm1, %v8403_v15 }
 0x5f0   : > { %v1838_v25 = vpop.xlane.xlu0 %1837 }
 0x5f1   : > { %7733 = vrcp.f32 %v1838_v25 }
 0x5f4   : > { %v1843_v26 = vpop.permute.xlu0 %1842 }
 0x5f5   : > { %7054 = vmatpush3.msra.mxu1 %v1843_v26 }
 0x5f6   : > { %7063 = vmatprep.subr.mxu1 %v8403_v15 }
 0x5f8   : > { %v2067_v33 = vpop.permute.xlu0 %2066 }
 0x5fb   : > { %v7734_v27 = vpop.eup %7733 }
 0x5fc   : > { %v1840_v28 = vmul.f32 %v7734_v27, %v7730_v19 }
 0x5fe   : > { %7056 = vmatmul.mubr.msk.f32.vlgmr.msra.gmra.mrb[4].mxu1 %vm1591_vm4, %v1840_v28 }
 0x5ff   : > { %7064 = vmatpush3.msra.mxu1 %v1274_v29  ;;  %7065 = vmatprep.mubr.msk.f32.mxu1 %vm8402_vm1, %v8403_v15 }
 0x600   : > { %7073 = vmatprep.subr.mxu1 %v8403_v15 }
 0x65d   : > { %v1748_v30 = vpop.f32.mrb[2].mxu1 }
 0x65e   : > { %v7047_v31 = vpop.f32.mrb[3].mxu1  ;;  %7066 = vmatmul.mubr.msk.f32.vlgmr.msra.gmra.mrb[6].mxu1 %vm1591_vm4, %v1748_v30 }
 0x65f   : > { %7075 = vmatprep.mubr.msk.f32.mxu1 %vm8402_vm1, %v8403_v15 }
 0x6d1   : > { %v1914_v32 = vpop.f32.mrb[4].mxu1 }
 0x6d2   : > { %v7057_v34 = vpop.f32.mrb[5].mxu1  ;;  %7061 = vmatmul.mubr.msk.f32.vlgmr.msra.gmra.mrb[8].mxu0 %vm1591_vm4, %v1914_v32 }
 0x6d3   : > { %7069 = vmatpush3.xpose.msk.msra.mxu0 %vm1591_vm4, %v2067_v33  ;;  %7070 = vmatprep.mubr.msk.f32.mxu0 %vm8402_vm1, %v8403_v15  ;;  %v1284_v33 = vld [vmem:[#allocation19] sm:$0xff]  ;;  %v1285_v34 = vld [vmem:[#allocation19 + $0x8] sm:$0xff] }
 0x6d4   : > { %7078 = vmatprep.subr.mxu0 %v8403_v15 }
 0x6d6   : > { %7071 = vmatmul.mubr.msk.f32.vlgmr.msra.gmra.mrb[10].mxu0 %vm1591_vm4, %v2065_v35  ;;  %v1279_v35 = vld [vmem:[#allocation16] sm:$0xff] }
 0x6d7   : > { %7080 = vmatprep.mubr.msk.f32.mxu0 %vm8402_vm1, %v8403_v15 }
 0x731   : > { %v2060_v36 = vpop.f32.mrb[6].mxu1 }
 0x732   : > { %v7067_v37 = vpop.f32.mrb[7].mxu1 }
 0x733   : > { %v1280_v37 = vld [vmem:[#allocation16 + $0x8] sm:$0xff] }
 0x7a5   : > { %v1987_v38 = vpop.f32.mrb[8].mxu0 }
 0x7a6   : > { %v2061_v40 = vadd.f32 %v2060_v36, %v1987_v38  ;;  %v7062_v41 = vpop.f32.mrb[9].mxu0  ;;  %v7440_v36 = vpack.c.bf16 %v1285_v34, %v1284_v33  ;;  %v1286_v38 = vld [vmem:[#allocation19 + $0x10] sm:$0xff] }
 0x7a7   : > { %v1281_v41 = vld [vmem:[#allocation16 + $0x10] sm:$0xff] }
 0x7a9   : > { %v2138_v42 = vpop.f32.mrb[10].mxu0 }
 0x7aa   : > { %v2139_v44 = vadd.f32 %v2138_v42, %v9047_v59  ;;  %v7072_v45 = vpop.f32.mrb[11].mxu0  ;;  %v1282_v42 = vld [vmem:[#allocation16 + $0x18] sm:$0xff] }
 0x7ab   : > { %v9141_v45 = vpack.c.bf16 %v1282_v42, %v1281_v41 }
 0x7ac   : > { %v2142_v46 = vsel %vm1591_vm4, %v2139_v44, -inf }
 0x7ad   : > { %2143 = vmax.xlane.f32.xlu0 %v2142_v46  ;;  %v1256_v46 = vld [vmem:[%s1097_s24] sm:$0xff]  ;;  %s9789_s24 = sld [smem:[#allocation50_spill]] }
 0x7c3   : > { %2153 = vrot.lane.b32.xlu0 %v9036_v55, %s8405_s25 }
 0x7c7   : > { %2303 = vrot.lane.b32.xlu0 %v9023_v52, %s8406_s9 }
 0x83a   : > { %v2144_v47 = vpop.xlane.xlu0 %2143 }
 0x83b   : > { %v2145_v48 = vsub.f32 %v2139_v44, %v2144_v47 }
 0x83d   : > { %v2146_v50 = vmul.f32 1.442695, %v2145_v48 }
 0x83e   : > { %v2154_v51 = vpop.permute.xlu0 %2153 }
 0x83f   : > { %7735 = vpow2.f32 %v2146_v50  ;;  %7074 = vmatpush3.msra.mxu1 %v2154_v51 }
 0x840   : > { %7083 = vmatprep.subr.mxu1 %v8403_v15 }
 0x842   : > { %v2304_v60 = vpop.permute.xlu0 %2303 }
 0x849   : > { %v7736_v53 = vpop.eup %7735 }
 0x84a   : > { %v2148_v54 = vsel %vm1591_vm4, %v7736_v53, 0.0 }
 0x84b   : > { %2149 = vadd.xlane.f32.xlu1 %v2148_v54 }
 0x85c   : > { %2305 = vrot.lane.b32.xlu1 %v9021_v49, %s8406_s9  ;;  %v9105_v49 = vld [vmem:[%s9786_s23 + $0x10] sm:$0xff] }
 0x85d   : > { %7079 = vmatpush3.msra.mxu0 %v9105_v49 }
 0x85e   : > { %7088 = vmatprep.subr.mxu0 %v8403_v15 }
 0x8d8   : > { %v2150_v56 = vpop.xlane.xlu1 %2149 }
 0x8d9   : > { %7737 = vrcp.f32 %v2150_v56 }
 0x8dc   : > { %v2306_v58 = vpop.permute.xlu1 %2305 }
 0x8e3   : > { %v7738_v57 = vpop.eup %7737 }
 0x8e4   : > { %v2152_v52 = vmul.f32 %v7738_v57, %v7736_v53 }
 0x8e6   : > { %7076 = vmatmul.mubr.msk.f32.vlgmr.msra.gmra.mrb[8].mxu1 %vm1591_vm4, %v2152_v52 }
 0x8e7   : > { %7084 = vmatpush3.xpose.msk.msra.mxu1 %vm1591_vm4, %v2306_v58  ;;  %7085 = vmatprep.mubr.msk.f32.mxu1 %vm8402_vm1, %v8403_v15 }
 0x8e8   : > { %7093 = vmatprep.subr.mxu1 %v8403_v15 }
 0x8ea   : > { %7086 = vmatmul.mubr.msk.f32.vlgmr.msra.gmra.mrb[10].mxu1 %vm1591_vm4, %v2304_v60 }
 0x8eb   : > { %7095 = vmatprep.mubr.msk.f32.mxu1 %vm8402_vm1, %v8403_v15 }
 0x9b9   : > { %v2225_v61 = vpop.f32.mrb[8].mxu1 }
 0x9ba   : > { %v7077_v62 = vpop.f32.mrb[9].mxu1  ;;  %7081 = vmatmul.mubr.msk.f32.vlgmr.msra.gmra.mrb[12].mxu0 %vm1591_vm4, %v2225_v61 }
 0x9bb   : > { %7090 = vmatprep.mubr.msk.f32.mxu0 %vm8402_vm1, %v8403_v15 }
 0x9bd   : > { %v2377_v63 = vpop.f32.mrb[10].mxu1 }
 0x9be   : > { %v2378_v1 = vadd.f32 %v2377_v63, %v9047_v59  ;;  %v7087_v2 = vpop.f32.mrb[11].mxu1  ;;  %v9119_v59 = vld [vmem:[%s9786_s23 + $0x18] sm:$0xff] }
 0x9bf   : > { %7094 = vmatpush3.msra.mxu1 %v9119_v59  ;;  %v9154_v2 = vld [vmem:[%s9787_s15] ss:$0 sm:$0xff]  ;;  %s9791_s15 = sld [smem:[#allocation53_spill]] }
 0x9c0   : > { %v2381_v3 = vsel %vm1591_vm4, %v2378_v1, -inf  ;;  %7439 = vmatprep.subr.bf16.mxu1 %v8401_v7 }
 0x9c1   : > { %2382 = vmax.xlane.f32.xlu0 %v2381_v3 }
 0x9d7   : > { %2392 = vrot.lane.b32.xlu0 %v9036_v55, %s8406_s9 }
 0xa4e   : > { %v2383_v4 = vpop.xlane.xlu0 %2382 }
 0xa4f   : > { %v2384_v5 = vsub.f32 %v2378_v1, %v2383_v4  ;;  %v9157_v4 = vld [vmem:[%s9788_s7] ss:$0 sm:$0xff]  ;;  %s9792_s7 = sld [smem:[#allocation59_spill]] }
 0xa51   : > { %v2385_v6 = vmul.f32 1.442695, %v2384_v5 }
 0xa52   : > { %v2393_v9 = vpop.permute.xlu0 %2392 }
 0xa53   : > { %7739 = vpow2.f32 %v2385_v6  ;;  %7089 = vmatpush3.msra.mxu0 %v2393_v9  ;;  %v6760_v9 = vld [vmem:[#allocation20] ss:$0 sm:$0xff] }
 0xa54   : > { %7433 = vmatprep.subr.bf16.mxu0 %v8401_v7 }
 0xa5d   : > { %v7740_v10 = vpop.eup %7739 }
 0xa5e   : > { %v2387_v11 = vsel %vm1591_vm4, %v7740_v10, 0.0 }
 0xa5f   : > { %2388 = vadd.xlane.f32.xlu1 %v2387_v11 }
 0xa8d   : > { %v2298_v13 = vpop.f32.mrb[12].mxu0 }
 0xa8e   : > { %v2302_v55 = vadd.f32 %v2298_v13, %v2061_v40  ;;  %v7082_v14 = vpop.f32.mrb[13].mxu0  ;;  %v1287_v40 = vld [vmem:[#allocation19 + $0x18] sm:$0xff] }
 0xa8f   : > { %v7443_v44 = vpack.c.bf16 %v1287_v40, %v1286_v38  ;;  %v1290_v14 = vld [vmem:[#allocation22 + $0x8] sm:$0xff] }
 0xaec   : > { %v2389_v18 = vpop.xlane.xlu1 %2388 }
 0xaed   : > { %7741 = vrcp.f32 %v2389_v18  ;;  %v1291_v18 = vld [vmem:[#allocation22 + $0x10] sm:$0xff] }
 0xaf7   : > { %v7742_v19 = vpop.eup %7741 }
 0xaf8   : > { %v2391_v20 = vmul.f32 %v7742_v19, %v7740_v10 }
 0xafa   : > { %7091 = vmatmul.mubr.msk.f32.vlgmr.msra.gmra.mrb[14].mxu0 %vm1591_vm4, %v2391_v20  ;;  %v1292_v20 = vld [vmem:[#allocation22 + $0x18] sm:$0xff] }
 0xafb   : > { %7106 = vmatprep.mubr.msk.f32.mxu0 %vm8402_vm1, %v8403_v15 }
 0xbcd   : > { %v2464_v21 = vpop.f32.mrb[14].mxu0 }
 0xbce   : > { %v7092_v22 = vpop.f32.mrb[15].mxu0  ;;  %7096 = vmatmul.mubr.msk.f32.vlgmr.msra.gmra.mrb[12].mxu1 %vm1591_vm4, %v2464_v21  ;;  %v7449_v21 = vpack.c.bf16 %v1292_v20, %v1291_v18 }
 0xbcf   : > { %7117 = vmatprep.mubr.msk.f32.mxu1 %vm8402_vm1, %v8403_v15  ;;  %7441 = vmatpush3.bf16.msra.mxu1 %v7440_v36 }
 0xbd0   : > { %7442 = vmatprep.subr.bf16.mxu1 %v8401_v7 }
 0xbd3   : > { %7444 = vmatpush3.bf16.msra.mxu1 %v7443_v44 }
 0xbd4   : > { %7131 = vmatprep.subr.mxu1 %v8403_v15 }
 0xbd6   : > { %7118 = vmatmul.mubr.msk.f32.vlgmr.msra.gmra.mrb[14].mxu1 %vm1321_vm0, %v1256_v46 }
 0xbd7   : > { %7133 = vmatprep.mubr.msk.f32.mxu1 %vm8402_vm1, %v8403_v15 }
 0xca1   : > { %v2537_v25 = vpop.f32.mrb[12].mxu1 }
 0xca2   : > { %v2541_v26 = vadd.f32 %v2537_v25, %v2302_v55  ;;  %v7097_v27 = vpop.f32.mrb[13].mxu1  ;;  %v1289_v55 = vld [vmem:[#allocation22] sm:$0xff] }
 0xca3   : > { %v7446_v19 = vpack.c.bf16 %v1290_v14, %v1289_v55 }
 0xca4   : > { %v2548_v28 = vadd.f32 %v6755_v23, %v2541_v26  ;;  %v9181_v23 = vld [vmem:[#allocation17] ss:$0 sm:$0xff] }
 0xca6   : > { %v9130_v29 = vadd.f32 %v2548_v28, %v8960_v0  ;;  %v9137_v0 = vpack.c.bf16 %v1280_v37, %v1279_v35  ;;  %v9201_v35 = vld [vmem:[%s1115_s16] sm:$0xff] }
 0xca8   : > { %v2550_v30 = vsel %vm1321_vm0, %v9130_v29, 0.0  ;;  %v2553_v31 = vmul.f32 %v9130_v29, %v9130_v29  ;;  %7435 = vmatpush3.bf16.msra.mxu0 %v9137_v0 }
 0xca9   : > { %2551 = vadd.xlane.f32.xlu1 %v2550_v30  ;;  %7436 = vmatprep.subr.bf16.mxu0 %v8401_v7  ;;  %v2742_v10 = vpop.f32.mrb[14].mxu1  ;;  %v6762_v30 = vld [vmem:[#allocation23] ss:$0 sm:$0xff] }
 0xcaa   : > { %v2554_v32 = vsel %vm1321_vm0, %v2553_v31, 0.0  ;;  %v9164_v11 = vadd.f32 %v6760_v9, %v2742_v10  ;;  %v7119_v13 = vpop.f32.mrb[15].mxu1  ;;  %v9228_v9 = vld [vmem:[%s9789_s24] sm:$0xff] }
 0xcac   : > { %7438 = vmatpush3.bf16.msra.mxu0 %v9141_v45  ;;  %2984 = vrot.lane.b32.xlu0 %v9164_v11, %s8404_s22 }
 0xcad   : > { %2555 = vadd.xlane.f32.xlu1 %v2554_v32  ;;  %7445 = vmatprep.subr.bf16.mxu0 %v8401_v7 }
 0xcae   : > { %7132 = vmatpush3.xpose.msk.msra.mxu1 %vm1591_vm4, %v9164_v11 }
 0xcaf   : > { %7136 = vmatprep.subr.mxu1 %v8403_v15 }
 0xd1e   : > { %v9176_v22 = vpop.permute.xlu0 %2984 }
 0xd36   : > { %v2552_v47 = vpop.xlane.xlu1 %2551 }
 0xd37   : > { %v2557_v48 = vmul.f32 0.03125, %v2552_v47 }
 0xd39   : > { %v2558_v50 = vmul.f32 %v2557_v48, %v2552_v47  ;;  %v2571_v63 = vsub.f32 %v9130_v29, %v2557_v48 }
 0xd3a   : > { %v2556_v51 = vpop.xlane.xlu1 %2555 }
 0xd3b   : > { %v2559_v53 = vsub.f32 %v2556_v51, %v2558_v50 }
 0xd3d   : > { %v2560_v54 = vmul.f32 0.032258064, %v2559_v53 }
 0xd3f   : > { %v2561_v56 = vmax.f32 %v2560_v54, 0.0 }
 0xd41   : > { %7743 = vrsqrt.f32 %v2561_v56  ;;  %vm2564_vm5 = vcmp.eq.f32.partialorder %v2561_v56, inf  ;;  %v2567_v58 = vand.u32 2147483648, %v2561_v56  ;;  %vm2566_vm6 = vcmp.eq.f32.partialorder %v2561_v56, 0.0 }
 0xd4b   : > { %v7744_v57 = vpop.eup %7743 }
 0xd4c   : > { %v2563_v52 = vmul.f32 %v7744_v57, %v2561_v56 }
 0xd4e   : > { %v2565_v60 = vsel %vm2564_vm5, %v2561_v56, %v2563_v52 }
 0xd4f   : > { %v2568_v61 = vsel %vm2566_vm6, %v2567_v58, %v2565_v60 }
 0xd50   : > { %v2569_v62 = vadd.f32 1e-06, %v2568_v61 }
 0xd52   : > { %7745 = vrcp.f32 %v2569_v62 }
 0xd5c   : > { %v7746_v1 = vpop.eup %7745 }
 0xd5d   : > { %v2572_v3 = vmul.f32 %v7746_v1, %v2571_v63  ;;  %v9219_v63 = vld [vmem:[%s9789_s24 + $0x8] sm:$0xff] }
 0xd5f   : > { %v2579_v5 = vmul.f32 %v9154_v2, %v2572_v3 }
 0xd61   : > { %v2586_v6 = vadd.f32 %v9157_v4, %v2579_v5 }
 0xd63   : > { %7107 = vmatmul.mubr.msk.f32.vlgmr.msra.gmra.mrb[16].mxu0 %vm1321_vm0, %v2586_v6 }
 0xd64   : > { %7128 = vmatprep.mubr.msk.f32.mxu0 %vm8402_vm1, %v8403_v15  ;;  %7447 = vmatpush3.bf16.msra.mxu0 %v7446_v19 }
 0xd65   : > { %7448 = vmatprep.subr.bf16.mxu0 %v8401_v7 }
 0xd68   : > { %7450 = vmatpush3.bf16.msra.mxu0 %v7449_v21 }
 0xd69   : > { %7141 = vmatprep.subr.mxu0 %v8403_v15 }
 0xd6b   : > { %7129 = vmatmul.mubr.msk.f32.vlgmr.msra.gmra.mrb[18].mxu0 %vm1321_vm0, %v1256_v46 }
 0xd6c   : > { %7143 = vmatprep.mubr.msk.f32.mxu0 %vm8402_vm1, %v8403_v15 }
 0xd71   : > { %7142 = vmatpush3.xpose.msk.msra.mxu0 %vm1591_vm4, %v9176_v22 }
 0xd72   : > { %7151 = vmatprep.subr.mxu0 %v8403_v15 }
 0xe36   : > { %v2662_v25 = vpop.f32.mrb[16].mxu0 }
 0xe37   : > { %v2663_v26 = vadd.f32 %v9181_v23, %v2662_v25  ;;  %v7108_v27 = vpop.f32.mrb[17].mxu0 }
 0xe39   : > { %v9184_v28 = vmul.f32 0.35355338, %v2663_v26 }
 0xe3b   : > { %2982 = vrot.lane.b32.xlu1 %v9184_v28, %s8404_s22  ;;  %7134 = vmatmul.mubr.msk.f32.vlgmr.msra.gmra.mrb[16].mxu1 %vm1591_vm4, %v9184_v28 }
 0xe3c   : > { %7138 = vmatprep.mubr.msk.f32.mxu1 %vm8402_vm1, %v8403_v15 }
 0xe3e   : > { %v2818_v31 = vpop.f32.mrb[18].mxu0 }
 0xe3f   : > { %v9192_v32 = vadd.f32 %v6762_v30, %v2818_v31  ;;  %v7130_v33 = vpop.f32.mrb[19].mxu0 }
 0xe41   : > { %7137 = vmatpush3.msra.mxu1 %v9192_v32 }
 0xe42   : > { %7146 = vmatprep.subr.mxu1 %v8403_v15 }
 0xead   : > { %v2983_v34 = vpop.permute.xlu1 %2982 }
 0xeae   : > { %7144 = vmatmul.mubr.msk.f32.vlgmr.msra.gmra.mrb[20].mxu0 %vm1591_vm4, %v2983_v34 }
 0xeaf   : > { %7153 = vmatprep.mubr.msk.f32.mxu0 %vm8402_vm1, %v8403_v15  ;;  %7152 = vmatpush3.msra.mxu0 %v9219_v63 }
 0xeb0   : > { %7161 = vmatprep.subr.mxu0 %v8403_v15 }
 0xf0e   : > { %v2894_v36 = vpop.f32.mrb[16].mxu1 }
 0xf0f   : > { %v2895_v37 = vadd.f32 %v2894_v36, %v9201_v35  ;;  %v7135_v38 = vpop.f32.mrb[17].mxu1 }
 0xf11   : > { %v2898_v40 = vsel %vm1591_vm4, %v2895_v37, -inf }
 0xf12   : > { %2899 = vmax.xlane.f32.xlu0 %v2898_v40 }
 0xf81   : > { %v3056_v41 = vpop.f32.mrb[20].mxu0 }
 0xf82   : > { %v3057_v42 = vadd.f32 %v3056_v41, %v9201_v35  ;;  %v7145_v44 = vpop.f32.mrb[21].mxu0 }
 0xf84   : > { %v3060_v46 = vsel %vm1591_vm4, %v3057_v42, -inf }
 0xf85   : > { %3061 = vmax.xlane.f32.xlu1 %v3060_v46 }
 0xf96   : > { %3296 = vrot.lane.b32.xlu1 %v9164_v11, %s8405_s25 }
 0xf9f   : > { %v2900_v47 = vpop.xlane.xlu0 %2899 }
 0xfa0   : > { %v2901_v48 = vsub.f32 %v2895_v37, %v2900_v47 }
 0xfa2   : > { %v2902_v50 = vmul.f32 1.442695, %v2901_v48 }
 0xfa4   : > { %7747 = vpow2.f32 %v2902_v50  ;;  %v9274_v50 = vld [vmem:[%s9789_s24 + $0x10] sm:$0xff] }
 0xfae   : > { %v7748_v51 = vpop.eup %7747 }
 0xfaf   : > { %v2904_v53 = vsel %vm1591_vm4, %v7748_v51, 0.0 }
 0xfb0   : > { %2905 = vadd.xlane.f32.xlu0 %v2904_v53 }
0x1012   : > { %v3062_v54 = vpop.xlane.xlu1 %3061 }
0x1013   : > { %v3063_v56 = vsub.f32 %v3057_v42, %v3062_v54 }
0x1015   : > { %v3064_v57 = vmul.f32 1.442695, %v3063_v56 }
0x1016   : > { %v9238_v14 = vpop.permute.xlu1 %3296 }
0x1017   : > { %7749 = vpow2.f32 %v3064_v57 }
0x1021   : > { %v7750_v52 = vpop.eup %7749 }
0x1022   : > { %v3066_v58 = vsel %vm1591_vm4, %v7750_v52, 0.0 }
0x1023   : > { %3067 = vadd.xlane.f32.xlu0 %v3066_v58 }
0x1039   : > { %3072 = vrot.lane.b32.xlu0 %v9192_v32, %s8404_s22 }
0x103d   : > { %v2906_v60 = vpop.xlane.xlu0 %2905  ;;  %3294 = vrot.lane.b32.xlu0 %v9184_v28, %s8405_s25 }
0x103e   : > { %7751 = vrcp.f32 %v2906_v60 }
0x1048   : > { %v7752_v61 = vpop.eup %7751 }
0x1049   : > { %v2908_v62 = vmul.f32 %v7752_v61, %v7748_v51 }
0x104b   : > { %7139 = vmatmul.mubr.msk.f32.vlgmr.msra.gmra.mrb[18].mxu1 %vm1591_vm4, %v2908_v62 }
0x104c   : > { %7148 = vmatprep.mubr.msk.f32.mxu1 %vm8402_vm1, %v8403_v15 }
0x10b0   : > { %v3068_v1 = vpop.xlane.xlu0 %3067 }
0x10b1   : > { %7753 = vrcp.f32 %v3068_v1 }
0x10b4   : > { %v9223_v3 = vpop.permute.xlu0 %3072 }
0x10b5   : > { %7147 = vmatpush3.msra.mxu1 %v9223_v3 }
0x10b6   : > { %7156 = vmatprep.subr.mxu1 %v8403_v15 }
0x10b8   : > { %v3295_v19 = vpop.permute.xlu0 %3294 }
0x10bb   : > { %v7754_v5 = vpop.eup %7753 }
0x10bc   : > { %v3070_v6 = vmul.f32 %v7754_v5, %v7750_v52  ;;  %v9287_v5 = vld [vmem:[%s9789_s24 + $0x18] sm:$0xff] }
0x10be   : > { %7149 = vmatmul.mubr.msk.f32.vlgmr.msra.gmra.mrb[20].mxu1 %vm1591_vm4, %v3070_v6 }
0x10bf   : > { %7157 = vmatpush3.msra.mxu1 %v9228_v9  ;;  %7158 = vmatprep.mubr.msk.f32.mxu1 %vm8402_vm1, %v8403_v15 }
0x10c0   : > { %7166 = vmatprep.subr.mxu1 %v8403_v15 }
0x111e   : > { %v2978_v10 = vpop.f32.mrb[18].mxu1 }
0x111f   : > { %v7140_v13 = vpop.f32.mrb[19].mxu1  ;;  %7159 = vmatmul.mubr.msk.f32.vlgmr.msra.gmra.mrb[22].mxu1 %vm1591_vm4, %v2978_v10 }
0x1120   : > { %7168 = vmatprep.mubr.msk.f32.mxu1 %vm8402_vm1, %v8403_v15 }
0x1191   : > { %v3144_v55 = vpop.f32.mrb[20].mxu1 }
0x1192   : > { %v7150_v18 = vpop.f32.mrb[21].mxu1  ;;  %7154 = vmatmul.mubr.msk.f32.vlgmr.msra.gmra.mrb[22].mxu0 %vm1591_vm4, %v3144_v55 }
0x1193   : > { %7162 = vmatpush3.xpose.msk.msra.mxu0 %vm1591_vm4, %v9238_v14  ;;  %7163 = vmatprep.mubr.msk.f32.mxu0 %vm8402_vm1, %v8403_v15 }
0x1194   : > { %7171 = vmatprep.subr.mxu0 %v8403_v15 }
0x1196   : > { %7164 = vmatmul.mubr.msk.f32.vlgmr.msra.gmra.mrb[24].mxu0 %vm1591_vm4, %v3295_v19 }
0x1197   : > { %7173 = vmatprep.mubr.msk.f32.mxu0 %vm8402_vm1, %v8403_v15  ;;  %7172 = vmatpush3.msra.mxu0 %v9274_v50 }
0x1198   : > { %7181 = vmatprep.subr.mxu0 %v8403_v15 }
0x11f2   : > { %v3290_v20 = vpop.f32.mrb[22].mxu1 }
0x11f3   : > { %v7160_v21 = vpop.f32.mrb[23].mxu1 }
0x1265   : > { %v3217_v25 = vpop.f32.mrb[22].mxu0 }
0x1266   : > { %v3291_v26 = vadd.f32 %v3290_v20, %v3217_v25  ;;  %v7155_v27 = vpop.f32.mrb[23].mxu0 }
0x1269   : > { %v3368_v30 = vpop.f32.mrb[24].mxu0 }
0x126a   : > { %v3369_v31 = vadd.f32 %v3368_v30, %v9201_v35  ;;  %v7165_v33 = vpop.f32.mrb[25].mxu0 }
0x126c   : > { %v3372_v34 = vsel %vm1591_vm4, %v3369_v31, -inf }
0x126d   : > { %3373 = vmax.xlane.f32.xlu0 %v3372_v34 }
0x1283   : > { %3383 = vrot.lane.b32.xlu0 %v9192_v32, %s8405_s25 }
0x1287   : > { %3533 = vrot.lane.b32.xlu0 %v9184_v28, %s8406_s9 }
0x12fa   : > { %v3374_v36 = vpop.xlane.xlu0 %3373 }
0x12fb   : > { %v3375_v37 = vsub.f32 %v3369_v31, %v3374_v36 }
0x12fd   : > { %v3376_v38 = vmul.f32 1.442695, %v3375_v37 }
0x12fe   : > { %v9255_v40 = vpop.permute.xlu0 %3383 }
0x12ff   : > { %7755 = vpow2.f32 %v3376_v38  ;;  %7167 = vmatpush3.msra.mxu1 %v9255_v40 }
0x1300   : > { %7176 = vmatprep.subr.mxu1 %v8403_v15 }
0x1302   : > { %v3534_v48 = vpop.permute.xlu0 %3533 }
0x1309   : > { %v7756_v41 = vpop.eup %7755 }
0x130a   : > { %v3378_v42 = vsel %vm1591_vm4, %v7756_v41, 0.0 }
0x130b   : > { %3379 = vadd.xlane.f32.xlu1 %v3378_v42  ;;  %v1300_v42 = vld [vmem:[#allocation25 + $0x8] sm:$0xff] }
0x131c   : > { %3535 = vrot.lane.b32.xlu1 %v9164_v11, %s8406_s9 }
0x1398   : > { %v3380_v44 = vpop.xlane.xlu1 %3379 }
0x1399   : > { %7757 = vrcp.f32 %v3380_v44  ;;  %v1301_v44 = vld [vmem:[#allocation25 + $0x10] sm:$0xff] }
0x139c   : > { %v9262_v47 = vpop.permute.xlu1 %3535 }
0x13a3   : > { %v7758_v28 = vpop.eup %7757 }
0x13a4   : > { %v3382_v46 = vmul.f32 %v7758_v28, %v7756_v41  ;;  %v1299_v41 = vld [vmem:[#allocation25] sm:$0xff]  ;;  %v1302_v28 = vld [vmem:[#allocation25 + $0x18] sm:$0xff] }
0x13a6   : > { %7169 = vmatmul.mubr.msk.f32.vlgmr.msra.gmra.mrb[24].mxu1 %vm1591_vm4, %v3382_v46  ;;  %v9316_v46 = vpack.c.bf16 %v1302_v28, %v1301_v44  ;;  %v1310_v44 = vld [vmem:[%s9791_s15 + $0x30] sm:$0xff]  ;;  %v1311_v28 = vld [vmem:[%s9791_s15 + $0x38] sm:$0xff] }
0x13a7   : > { %7177 = vmatpush3.xpose.msk.msra.mxu1 %vm1591_vm4, %v9262_v47  ;;  %7178 = vmatprep.mubr.msk.f32.mxu1 %vm8402_vm1, %v8403_v15 }
0x13a8   : > { %7186 = vmatprep.subr.mxu1 %v8403_v15 }
0x13aa   : > { %7179 = vmatmul.mubr.msk.f32.vlgmr.msra.gmra.mrb[26].mxu1 %vm1591_vm4, %v3534_v48  ;;  %v1304_v48 = vld [vmem:[%s9791_s15] sm:$0xff] }
0x13ab   : > { %7188 = vmatprep.mubr.msk.f32.mxu1 %vm8402_vm1, %v8403_v15  ;;  %7187 = vmatpush3.msra.mxu1 %v9287_v5 }
0x13ac   : > { %7457 = vmatprep.subr.bf16.mxu1 %v8401_v7 }
0x1479   : > { %v3455_v51 = vpop.f32.mrb[24].mxu1 }
0x147a   : > { %v7170_v53 = vpop.f32.mrb[25].mxu1  ;;  %7174 = vmatmul.mubr.msk.f32.vlgmr.msra.gmra.mrb[26].mxu0 %vm1591_vm4, %v3455_v51  ;;  %v1305_v51 = vld [vmem:[%s9791_s15 + $0x8] sm:$0xff] }
0x147b   : > { %7183 = vmatprep.mubr.msk.f32.mxu0 %vm8402_vm1, %v8403_v15  ;;  %v1306_v53 = vld [vmem:[%s9791_s15 + $0x10] sm:$0xff] }
0x147d   : > { %v3607_v54 = vpop.f32.mrb[26].mxu1 }
0x147e   : > { %v3608_v56 = vadd.f32 %v3607_v54, %v9201_v35  ;;  %v7180_v57 = vpop.f32.mrb[27].mxu1  ;;  %v9324_v54 = vpack.c.bf16 %v1305_v51, %v1304_v48  ;;  %v9357_v48 = vpack.c.bf16 %v1311_v28, %v1310_v44  ;;  %v7815_v28 = vld [vmem:[%s9783_s6] ss:$0 sm:$0xff] }
0x1480   : > { %v3611_v52 = vsel %vm1591_vm4, %v3608_v56, -inf }
0x1481   : > { %3612 = vmax.xlane.f32.xlu1 %v3611_v52  ;;  %v1308_v52 = vld [vmem:[%s9791_s15 + $0x20] sm:$0xff] }
0x150e   : > { %v3613_v58 = vpop.xlane.xlu1 %3612 }
0x150f   : > { %v3614_v60 = vsub.f32 %v3608_v56, %v3613_v58  ;;  %v1307_v56 = vld [vmem:[%s9791_s15 + $0x18] sm:$0xff]  ;;  %v1309_v58 = vld [vmem:[%s9791_s15 + $0x28] sm:$0xff] }
0x1510   : > { %v9328_v57 = vpack.c.bf16 %v1307_v56, %v1306_v53 }
0x1511   : > { %v3615_v61 = vmul.f32 1.442695, %v3614_v60  ;;  %v9334_v60 = vpack.c.bf16 %v1309_v58, %v1308_v52 }
0x1513   : > { %7759 = vpow2.f32 %v3615_v61 }
0x151d   : > { %v7760_v62 = vpop.eup %7759 }
0x151e   : > { %v3617_v1 = vsel %vm1591_vm4, %v7760_v62, 0.0 }
0x151f   : > { %3618 = vadd.xlane.f32.xlu0 %v3617_v1 }
0x1535   : > { %3622 = vrot.lane.b32.xlu0 %v9192_v32, %s8406_s9 }
0x154d   : > { %v3528_v6 = vpop.f32.mrb[26].mxu0 }
0x154e   : > { %v3532_v10 = vadd.f32 %v3528_v6, %v3291_v26  ;;  %v7175_v13 = vpop.f32.mrb[27].mxu0  ;;  %v9302_v26 = vld [vmem:[%s9790_s3] ss:$0 sm:$0xff]  ;;  %s9793_s3 = sld [smem:[#allocation52_spill]] }
0x1554   : > { %v9362_v51 = vld [vmem:[%s9793_s3] ss:$0 sm:$0xff] }
0x15ac   : > { %v3619_v55 = vpop.xlane.xlu0 %3618 }
0x15ad   : > { %7761 = vrcp.f32 %v3619_v55 }
0x15b0   : > { %v9291_v18 = vpop.permute.xlu0 %3622 }
0x15b1   : > { %7182 = vmatpush3.msra.mxu0 %v9291_v18 }
0x15b2   : > { %7451 = vmatprep.subr.bf16.mxu0 %v8401_v7 }
0x15b7   : > { %v7762_v19 = vpop.eup %7761 }
0x15b8   : > { %v3621_v20 = vmul.f32 %v7762_v19, %v7760_v62 }
0x15ba   : > { %7184 = vmatmul.mubr.msk.f32.vlgmr.msra.gmra.mrb[28].mxu0 %vm1591_vm4, %v3621_v20 }
0x15bb   : > { %7199 = vmatprep.mubr.msk.f32.mxu0 %vm8402_vm1, %v8403_v15 }
0x168d   : > { %v3694_v21 = vpop.f32.mrb[28].mxu0 }
0x168e   : > { %v7185_v25 = vpop.f32.mrb[29].mxu0  ;;  %7189 = vmatmul.mubr.msk.f32.vlgmr.msra.gmra.mrb[28].mxu1 %vm1591_vm4, %v3694_v21 }
0x168f   : > { %7218 = vmatprep.mubr.msk.f32.mxu1 %vm8402_vm1, %v8403_v15  ;;  %7459 = vmatpush3.bf16.msra.mxu1 %v9324_v54 }
0x1690   : > { %7460 = vmatprep.subr.bf16.mxu1 %v8401_v7 }
0x1693   : > { %7462 = vmatpush3.bf16.msra.mxu1 %v9328_v57 }
0x1694   : > { %7463 = vmatprep.subr.bf16.mxu1 %v8401_v7 }
0x1697   : > { %7465 = vmatpush3.bf16.msra.mxu1 %v9334_v60 }
0x1698   : > { %7466 = vmatprep.subr.bf16.mxu1 %v8401_v7 }
0x169b   : > { %7468 = vmatpush3.bf16.msra.mxu1 %v9357_v48 }
0x169c   : > { %7481 = vmatprep.subr.bf16.mxu1 %v8401_v7 }
0x1761   : > { %v3767_v27 = vpop.f32.mrb[28].mxu1 }
0x1762   : > { %v3771_v30 = vadd.f32 %v3767_v27, %v3532_v10  ;;  %v7190_v31 = vpop.f32.mrb[29].mxu1 }
0x1764   : > { %v3778_v33 = vadd.f32 %v9302_v26, %v3771_v30 }
0x1766   : > { %v9306_v34 = vadd.f32 %v3778_v33, %v9130_v29  ;;  %v9313_v29 = vpack.c.bf16 %v1300_v42, %v1299_v41 }
0x1768   : > { %v3780_v36 = vsel %vm1321_vm0, %v9306_v34, 0.0  ;;  %v3783_v37 = vmul.f32 %v9306_v34, %v9306_v34  ;;  %7453 = vmatpush3.bf16.msra.mxu0 %v9313_v29 }
0x1769   : > { %3781 = vadd.xlane.f32.xlu1 %v3780_v36  ;;  %7454 = vmatprep.subr.bf16.mxu0 %v8401_v7  ;;  %v9341_v36 = vld [vmem:[%s9792_s7] ss:$0 sm:$0xff]  ;;  %s9794_s7 = sld [smem:[#allocation54_spill]] }
0x176a   : > { %v3784_v38 = vsel %vm1321_vm0, %v3783_v37, 0.0 }
0x176c   : > { %7456 = vmatpush3.bf16.msra.mxu0 %v9316_v46 }
0x176d   : > { %3785 = vadd.xlane.f32.xlu1 %v3784_v38  ;;  %7469 = vmatprep.subr.bf16.mxu0 %v8401_v7  ;;  %v9344_v38 = vld [vmem:[%s8561_s21] ss:$0 sm:$0xff] }
0x17f6   : > { %v3782_v61 = vpop.xlane.xlu1 %3781 }
0x17f7   : > { %v3787_v62 = vmul.f32 0.03125, %v3782_v61 }
0x17f9   : > { %v3788_v1 = vmul.f32 %v3787_v62, %v3782_v61  ;;  %v3801_v31 = vsub.f32 %v9306_v34, %v3787_v62 }
0x17fa   : > { %v3786_v6 = vpop.xlane.xlu1 %3785 }
0x17fb   : > { %v3789_v10 = vsub.f32 %v3786_v6, %v3788_v1 }
0x17fd   : > { %v3790_v13 = vmul.f32 0.032258064, %v3789_v10 }
0x17ff   : > { %v3791_v55 = vmax.f32 %v3790_v13, 0.0 }
0x1801   : > { %7763 = vrsqrt.f32 %v3791_v55  ;;  %vm3794_vm7 = vcmp.eq.f32.partialorder %v3791_v55, inf  ;;  %v3797_v21 = vand.u32 2147483648, %v3791_v55  ;;  %vm3796_vm8 = vcmp.eq.f32.partialorder %v3791_v55, 0.0 }
0x180b   : > { %v7764_v19 = vpop.eup %7763 }
0x180c   : > { %v3793_v20 = vmul.f32 %v7764_v19, %v3791_v55 }
0x180e   : > { %v3795_v25 = vsel %vm3794_vm7, %v3791_v55, %v3793_v20 }
0x180f   : > { %v3798_v27 = vsel %vm3796_vm8, %v3797_v21, %v3795_v25 }
0x1810   : > { %v3799_v30 = vadd.f32 1e-06, %v3798_v27 }
0x1812   : > { %7765 = vrcp.f32 %v3799_v30 }
0x181c   : > { %v7766_v33 = vpop.eup %7765 }
0x181d   : > { %v3802_v37 = vmul.f32 %v7766_v33, %v3801_v31 }
0x181f   : > { %v3809_v41 = vmul.f32 %v9341_v36, %v3802_v37 }
0x1821   : > { %v3816_v42 = vadd.f32 %v9344_v38, %v3809_v41 }
0x1823   : > { %7200 = vmatmul.mubr.msk.f32.vlgmr.msra.gmra.mrb[30].mxu0 %vm1321_vm0, %v3816_v42 }
0x1824   : > { %7471 = vmatpush3.bf16.msra.mxu0 %v8971_v8  ;;  %7229 = vmatprep.mubr.msk.f32.mxu0 %vm8402_vm1, %v8403_v15 }
0x1825   : > { %7472 = vmatprep.subr.bf16.mxu0 %v8401_v7 }
0x1828   : > { %7474 = vmatpush3.bf16.msra.mxu0 %v8986_v16  ;;  %v9373_v16 = vld [vmem:[%s9794_s7] ss:$0 sm:$0xff] }
0x1829   : > { %7475 = vmatprep.subr.bf16.mxu0 %v8401_v7 }
0x18f6   : > { %v3892_v8 = vpop.f32.mrb[30].mxu0 }
0x18f7   : > { %v3893_v53 = vadd.f32 %v9362_v51, %v3892_v8  ;;  %v7201_v56 = vpop.f32.mrb[31].mxu0 }
0x18f9   : > { %v3896_v52 = vmax.f32 %v3893_v53, 0.0  ;;  %v7816_v53 = vld [vmem:[%s9785_s18] ss:$0 sm:$0xff] }
0x18fb   : > { %7219 = vmatmul.mubr.msk.f32.vlgmr.msra.gmra.mrb[30].mxu1 %vm3903_vm9, %v3896_v52 }
0x18fc   : > { %7483 = vmatpush3.bf16.msra.mxu1 %v9002_v39  ;;  %7251 = vmatprep.mubr.msk.f32.mxu1 %vm8402_vm1, %v8403_v15 }
0x18fd   : > { %7484 = vmatprep.subr.bf16.mxu1 %v8401_v7 }
0x1900   : > { %7486 = vmatpush3.bf16.msra.mxu1 %v9009_v43 }
0x1901   : > { %7259 = vmatprep.subr.mxu1 %v8403_v15 }
0x19ce   : > { %v3973_v58 = vpop.f32.mrb[30].mxu1 }
0x19cf   : > { %v3974_v61 = vadd.f32 %v9373_v16, %v3973_v58  ;;  %v7220_v62 = vpop.f32.mrb[31].mxu1 }
0x19d0   : > { %v7818_v62 = vld [vmem:[#allocation13] ss:$0 sm:$0xff] }
0x19d1   : > { %v9377_v1 = vadd.f32 %v3974_v61, %v9306_v34 }
0x19d3   : > { %v3978_v39 = vsel %vm1321_vm0, %v9377_v1, 0.0  ;;  %v3981_v6 = vmul.f32 %v9377_v1, %v9377_v1 }
0x19d4   : > { %3979 = vadd.xlane.f32.xlu1 %v3978_v39 }
0x19d5   : > { %v3982_v43 = vsel %vm1321_vm0, %v3981_v6, 0.0 }
0x19d8   : > { %3983 = vadd.xlane.f32.xlu1 %v3982_v43 }
0x1a61   : > { %v3980_v10 = vpop.xlane.xlu1 %3979 }
0x1a62   : > { %v3985_v13 = vmul.f32 0.03125, %v3980_v10 }
0x1a64   : > { %v3986_v55 = vmul.f32 %v3985_v13, %v3980_v10  ;;  %v3999_v41 = vsub.f32 %v9377_v1, %v3985_v13  ;;  %v7819_v13 = vld [vmem:[#allocation11] ss:$0 sm:$0xff] }
0x1a65   : > { %v3984_v19 = vpop.xlane.xlu1 %3983 }
0x1a66   : > { %v3987_v20 = vsub.f32 %v3984_v19, %v3986_v55 }
0x1a68   : > { %v3988_v21 = vmul.f32 0.032258064, %v3987_v20 }
0x1a6a   : > { %v3989_v25 = vmax.f32 %v3988_v21, 0.0 }
0x1a6c   : > { %7767 = vrsqrt.f32 %v3989_v25  ;;  %vm3992_vm10 = vcmp.eq.f32.partialorder %v3989_v25, inf  ;;  %v3995_v30 = vand.u32 2147483648, %v3989_v25  ;;  %vm3994_vm11 = vcmp.eq.f32.partialorder %v3989_v25, 0.0 }
0x1a76   : > { %v7768_v34 = vpop.eup %7767 }
0x1a77   : > { %v3991_v27 = vmul.f32 %v7768_v34, %v3989_v25  ;;  %v9428_v34 = vld [vmem:[%s1106_s20] sm:$0xff]  ;;  %s9795_s20 = sld [smem:[#allocation60_spill]] }
0x1a79   : > { %v3993_v31 = vsel %vm3992_vm10, %v3989_v25, %v3991_v27 }
0x1a7a   : > { %v3996_v33 = vsel %vm3994_vm11, %v3995_v30, %v3993_v31 }
0x1a7b   : > { %v3997_v37 = vadd.f32 1e-06, %v3996_v33 }
0x1a7d   : > { %7769 = vrcp.f32 %v3997_v37 }
0x1a87   : > { %v7770_v42 = vpop.eup %7769 }
0x1a88   : > { %v4000_v44 = vmul.f32 %v7770_v42, %v3999_v41 }
0x1a8a   : > { %v4001_v8 = vmul.f32 %v7815_v28, %v4000_v44 }
0x1a8c   : > { %v4002_v56 = vadd.f32 %v7816_v53, %v4001_v8 }
0x1a8e   : > { %7230 = vmatmul.mubr.msk.f32.vlgmr.msra.gmra.mrb[32].mxu0 %vm1321_vm0, %v4002_v56  ;;  %7252 = vmatmul.mubr.msk.f32.vlgmr.msra.gmra.mrb[32].mxu1 %vm1321_vm0, %v4002_v56 }
0x1a8f   : > { %7477 = vmatpush3.bf16.msra.mxu0 %v8977_v12  ;;  %7240 = vmatprep.mubr.msk.f32.mxu0 %vm8402_vm1, %v8403_v15  ;;  %v7817_v12 = vld [vmem:[#allocation10] ss:$0 sm:$0xff] }
0x1a90   : > { %7478 = vmatprep.subr.bf16.mxu0 %v8401_v7  ;;  %7261 = vmatprep.mubr.msk.f32.mxu1 %vm8402_vm1, %v8403_v15 }
0x1a93   : > { %7480 = vmatpush3.bf16.msra.mxu0 %v8990_v17 }
0x1a94   : > { %7254 = vmatprep.subr.mxu0 %v8403_v15 }
0x1a96   : > { %7241 = vmatmul.mubr.msk.f32.vlgmr.msra.gmra.mrb[34].mxu0 %vm1321_vm0, %v4002_v56 }
0x1a97   : > { %7256 = vmatprep.mubr.msk.f32.mxu0 %vm8402_vm1, %v8403_v15 }
0x1b61   : > { %v4072_v52 = vpop.f32.mrb[32].mxu0  ;;  %v4213_v58 = vpop.f32.mrb[32].mxu1 }
0x1b62   : > { %v4073_v61 = vadd.f32 %v7817_v12, %v4072_v52  ;;  %v9400_v39 = vadd.f32 %v7818_v62, %v4213_v58  ;;  %v7231_v6 = vpop.f32.mrb[33].mxu0  ;;  %v7253_v43 = vpop.f32.mrb[33].mxu1 }
0x1b64   : > { %v9402_v10 = vmul.f32 0.35355338, %v4073_v61  ;;  %7260 = vmatpush3.msra.mxu1 %v9400_v39 }
0x1b65   : > { %7269 = vmatprep.subr.mxu1 %v8403_v15 }
0x1b66   : > { %4377 = vrot.lane.b32.xlu0 %v9402_v10, %s8404_s22 }
0x1b69   : > { %v4143_v17 = vpop.f32.mrb[34].mxu0 }
0x1b6a   : > { %v9408_v55 = vadd.f32 %v7819_v13, %v4143_v17  ;;  %v7242_v19 = vpop.f32.mrb[35].mxu0 }
0x1b6c   : > { %4379 = vrot.lane.b32.xlu1 %v9408_v55, %s8404_s22  ;;  %7255 = vmatpush3.xpose.msk.msra.mxu0 %vm1591_vm4, %v9408_v55 }
0x1b6d   : > { %7264 = vmatprep.subr.mxu0 %v8403_v15 }
0x1b6f   : > { %7257 = vmatmul.mubr.msk.f32.vlgmr.msra.gmra.mrb[36].mxu0 %vm1591_vm4, %v9402_v10 }
0x1b70   : > { %7266 = vmatprep.mubr.msk.f32.mxu0 %vm8402_vm1, %v8403_v15 }
0x1bd8   : > { %v4378_v21 = vpop.permute.xlu0 %4377 }
0x1bde   : > { %v4380_v20 = vpop.permute.xlu1 %4379 }
0x1bdf   : > { %7265 = vmatpush3.xpose.msk.msra.mxu0 %vm1591_vm4, %v4380_v20 }
0x1be0   : > { %7274 = vmatprep.subr.mxu0 %v8403_v15 }
0x1be2   : > { %7267 = vmatmul.mubr.msk.f32.vlgmr.msra.gmra.mrb[38].mxu0 %vm1591_vm4, %v4378_v21  ;;  %v7821_v21 = vld [vmem:[%s9786_s23] sm:$0xff] }
0x1be3   : > { %7275 = vmatpush3.msra.mxu0 %v9065_v24  ;;  %7276 = vmatprep.mubr.msk.f32.mxu0 %vm8402_vm1, %v8403_v15 }
0x1be4   : > { %7284 = vmatprep.subr.mxu0 %v8403_v15 }
0x1c42   : > { %v4289_v25 = vpop.f32.mrb[36].mxu0 }
0x1c43   : > { %v4290_v27 = vadd.f32 %v9428_v34, %v4289_v25  ;;  %v7258_v30 = vpop.f32.mrb[37].mxu0 }
0x1c45   : > { %v4293_v31 = vsel %vm1591_vm4, %v4290_v27, -inf }
0x1c46   : > { %4294 = vmax.xlane.f32.xlu0 %v4293_v31 }
0x1cb5   : > { %v4451_v33 = vpop.f32.mrb[38].mxu0 }
0x1cb6   : > { %v4452_v37 = vadd.f32 %v9428_v34, %v4451_v33  ;;  %v7268_v41 = vpop.f32.mrb[39].mxu0 }
0x1cb8   : > { %v4455_v24 = vsel %vm1591_vm4, %v4452_v37, -inf }
0x1cb9   : > { %4456 = vmax.xlane.f32.xlu1 %v4455_v24 }
0x1cca   : > { %4691 = vrot.lane.b32.xlu1 %v9408_v55, %s8405_s25 }
0x1cd3   : > { %v4295_v42 = vpop.xlane.xlu0 %4294 }
0x1cd4   : > { %v4296_v44 = vsub.f32 %v4290_v27, %v4295_v42 }
0x1cd6   : > { %v4297_v28 = vmul.f32 1.442695, %v4296_v44 }
0x1cd8   : > { %7771 = vpow2.f32 %v4297_v28 }
0x1ce2   : > { %v7772_v8 = vpop.eup %7771 }
0x1ce3   : > { %v4299_v53 = vsel %vm1591_vm4, %v7772_v8, 0.0 }
0x1ce4   : > { %4300 = vadd.xlane.f32.xlu0 %v4299_v53 }
0x1d46   : > { %v4457_v56 = vpop.xlane.xlu1 %4456 }
0x1d47   : > { %v4458_v52 = vsub.f32 %v4452_v37, %v4457_v56 }
0x1d49   : > { %v4459_v58 = vmul.f32 1.442695, %v4458_v52 }
0x1d4a   : > { %v4692_v31 = vpop.permute.xlu1 %4691 }
0x1d4b   : > { %7773 = vpow2.f32 %v4459_v58 }
0x1d55   : > { %v7774_v12 = vpop.eup %7773 }
0x1d56   : > { %v4461_v61 = vsel %vm1591_vm4, %v7774_v12, 0.0 }
0x1d57   : > { %4462 = vadd.xlane.f32.xlu0 %v4461_v61 }
0x1d6d   : > { %4467 = vrot.lane.b32.xlu0 %v9400_v39, %s8404_s22 }
0x1d71   : > { %v4301_v62 = vpop.xlane.xlu0 %4300  ;;  %4689 = vrot.lane.b32.xlu0 %v9402_v10, %s8405_s25 }
0x1d72   : > { %7775 = vrcp.f32 %v4301_v62 }
0x1d7c   : > { %v7776_v6 = vpop.eup %7775 }
0x1d7d   : > { %v4303_v43 = vmul.f32 %v7776_v6, %v7772_v8 }
0x1d7f   : > { %7262 = vmatmul.mubr.msk.f32.vlgmr.msra.gmra.mrb[34].mxu1 %vm1591_vm4, %v4303_v43 }
0x1d80   : > { %7271 = vmatprep.mubr.msk.f32.mxu1 %vm8402_vm1, %v8403_v15 }
0x1de4   : > { %v4463_v17 = vpop.xlane.xlu0 %4462 }
0x1de5   : > { %7777 = vrcp.f32 %v4463_v17 }
0x1de8   : > { %v4468_v13 = vpop.permute.xlu0 %4467 }
0x1de9   : > { %7270 = vmatpush3.msra.mxu1 %v4468_v13 }
0x1dea   : > { %7279 = vmatprep.subr.mxu1 %v8403_v15 }
0x1dec   : > { %v4690_v37 = vpop.permute.xlu0 %4689 }
0x1def   : > { %v7778_v19 = vpop.eup %7777 }
0x1df0   : > { %v4465_v20 = vmul.f32 %v7778_v19, %v7774_v12 }
0x1df2   : > { %7272 = vmatmul.mubr.msk.f32.vlgmr.msra.gmra.mrb[36].mxu1 %vm1591_vm4, %v4465_v20 }
0x1df3   : > { %7280 = vmatpush3.msra.mxu1 %v7821_v21  ;;  %7281 = vmatprep.mubr.msk.f32.mxu1 %vm8402_vm1, %v8403_v15 }
0x1df4   : > { %7289 = vmatprep.subr.mxu1 %v8403_v15 }
0x1e52   : > { %v4373_v25 = vpop.f32.mrb[34].mxu1 }
0x1e53   : > { %v7263_v27 = vpop.f32.mrb[35].mxu1  ;;  %7282 = vmatmul.mubr.msk.f32.vlgmr.msra.gmra.mrb[38].mxu1 %vm1591_vm4, %v4373_v25 }
0x1e54   : > { %7291 = vmatprep.mubr.msk.f32.mxu1 %vm8402_vm1, %v8403_v15 }
0x1ec5   : > { %v4539_v30 = vpop.f32.mrb[36].mxu1 }
0x1ec6   : > { %v7273_v33 = vpop.f32.mrb[37].mxu1  ;;  %7277 = vmatmul.mubr.msk.f32.vlgmr.msra.gmra.mrb[40].mxu0 %vm1591_vm4, %v4539_v30 }
0x1ec7   : > { %7285 = vmatpush3.xpose.msk.msra.mxu0 %vm1591_vm4, %v4692_v31  ;;  %7286 = vmatprep.mubr.msk.f32.mxu0 %vm8402_vm1, %v8403_v15 }
0x1ec8   : > { %7294 = vmatprep.subr.mxu0 %v8403_v15 }
0x1eca   : > { %7287 = vmatmul.mubr.msk.f32.vlgmr.msra.gmra.mrb[42].mxu0 %vm1591_vm4, %v4690_v37 }
0x1ecb   : > { %7295 = vmatpush3.msra.mxu0 %v9105_v49  ;;  %7296 = vmatprep.mubr.msk.f32.mxu0 %vm8402_vm1, %v8403_v15 }
0x1ecc   : > { %7304 = vmatprep.subr.mxu0 %v8403_v15 }
0x1f26   : > { %v4685_v41 = vpop.f32.mrb[38].mxu1 }
0x1f27   : > { %v7283_v24 = vpop.f32.mrb[39].mxu1 }
0x1f99   : > { %v4612_v42 = vpop.f32.mrb[40].mxu0 }
0x1f9a   : > { %v4686_v44 = vadd.f32 %v4685_v41, %v4612_v42  ;;  %v7278_v28 = vpop.f32.mrb[41].mxu0 }
0x1f9d   : > { %v4763_v8 = vpop.f32.mrb[42].mxu0 }
0x1f9e   : > { %v4764_v53 = vadd.f32 %v9428_v34, %v4763_v8  ;;  %v7288_v56 = vpop.f32.mrb[43].mxu0 }
0x1fa0   : > { %v4767_v52 = vsel %vm1591_vm4, %v4764_v53, -inf }
0x1fa1   : > { %4768 = vmax.xlane.f32.xlu1 %v4767_v52 }
0x1fb2   : > { %4930 = vrot.lane.b32.xlu1 %v9408_v55, %s8406_s9 }
0x1fb6   : > { %4928 = vrot.lane.b32.xlu1 %v9402_v10, %s8406_s9 }
0x202e   : > { %v4769_v49 = vpop.xlane.xlu1 %4768 }
0x202f   : > { %v4770_v58 = vsub.f32 %v4764_v53, %v4769_v49 }
0x2031   : > { %v4771_v12 = vmul.f32 1.442695, %v4770_v58  ;;  %v7822_v58 = vld [vmem:[#allocation14] ss:$0 sm:$0xff] }
0x2032   : > { %v4931_v17 = vpop.permute.xlu1 %4930 }
0x2033   : > { %7779 = vpow2.f32 %v4771_v12 }
0x2036   : > { %v4929_v13 = vpop.permute.xlu1 %4928 }
0x203d   : > { %v7780_v61 = vpop.eup %7779 }
0x203e   : > { %v4773_v62 = vsel %vm1591_vm4, %v7780_v61, 0.0 }
0x203f   : > { %4774 = vadd.xlane.f32.xlu0 %v4773_v62 }
0x2055   : > { %4778 = vrot.lane.b32.xlu0 %v9400_v39, %s8405_s25 }
0x20cc   : > { %v4775_v6 = vpop.xlane.xlu0 %4774 }
0x20cd   : > { %7781 = vrcp.f32 %v4775_v6 }
0x20d0   : > { %v4779_v43 = vpop.permute.xlu0 %4778 }
0x20d1   : > { %7290 = vmatpush3.msra.mxu1 %v4779_v43 }
0x20d2   : > { %7299 = vmatprep.subr.mxu1 %v8403_v15 }
0x20d7   : > { %v7782_v55 = vpop.eup %7781 }
0x20d8   : > { %v4777_v10 = vmul.f32 %v7782_v55, %v7780_v61 }
0x20da   : > { %7292 = vmatmul.mubr.msk.f32.vlgmr.msra.gmra.mrb[40].mxu1 %vm1591_vm4, %v4777_v10 }
0x20db   : > { %7300 = vmatpush3.xpose.msk.msra.mxu1 %vm1591_vm4, %v4931_v17  ;;  %7301 = vmatprep.mubr.msk.f32.mxu1 %vm8402_vm1, %v8403_v15 }
0x20dc   : > { %7309 = vmatprep.subr.mxu1 %v8403_v15 }
0x20de   : > { %7302 = vmatmul.mubr.msk.f32.vlgmr.msra.gmra.mrb[42].mxu1 %vm1591_vm4, %v4929_v13 }
0x20df   : > { %7310 = vmatpush3.msra.mxu1 %v9119_v59  ;;  %7311 = vmatprep.mubr.msk.f32.mxu1 %vm8402_vm1, %v8403_v15 }
0x20e0   : > { %7325 = vmatprep.subr.mxu1 %v8403_v15 }
0x21ad   : > { %v4850_v19 = vpop.f32.mrb[40].mxu1 }
0x21ae   : > { %v7293_v20 = vpop.f32.mrb[41].mxu1  ;;  %7297 = vmatmul.mubr.msk.f32.vlgmr.msra.gmra.mrb[44].mxu0 %vm1591_vm4, %v4850_v19 }
0x21af   : > { %7306 = vmatprep.mubr.msk.f32.mxu0 %vm8402_vm1, %v8403_v15 }
0x21b1   : > { %v5002_v21 = vpop.f32.mrb[42].mxu1 }
0x21b2   : > { %v5003_v25 = vadd.f32 %v9428_v34, %v5002_v21  ;;  %v7303_v27 = vpop.f32.mrb[43].mxu1 }
0x21b4   : > { %v5006_v30 = vsel %vm1591_vm4, %v5003_v25, -inf }
0x21b5   : > { %5007 = vmax.xlane.f32.xlu0 %v5006_v30 }
0x21cb   : > { %5017 = vrot.lane.b32.xlu0 %v9400_v39, %s8406_s9 }
0x2242   : > { %v5008_v59 = vpop.xlane.xlu0 %5007 }
0x2243   : > { %v5009_v31 = vsub.f32 %v5003_v25, %v5008_v59 }
0x2245   : > { %v5010_v33 = vmul.f32 1.442695, %v5009_v31 }
0x2246   : > { %v5018_v37 = vpop.permute.xlu0 %5017 }
0x2247   : > { %7783 = vpow2.f32 %v5010_v33  ;;  %7305 = vmatpush3.msra.mxu0 %v5018_v37 }
0x2248   : > { %7487 = vmatprep.subr.bf16.mxu0 %v8401_v7 }
0x2251   : > { %v7784_v41 = vpop.eup %7783 }
0x2252   : > { %v5012_v24 = vsel %vm1591_vm4, %v7784_v41, 0.0 }
0x2253   : > { %5013 = vadd.xlane.f32.xlu1 %v5012_v24 }
0x2281   : > { %v4923_v34 = vpop.f32.mrb[44].mxu0 }
0x2282   : > { %v4927_v42 = vadd.f32 %v4923_v34, %v4686_v44  ;;  %v7298_v28 = vpop.f32.mrb[45].mxu0 }
0x22e0   : > { %v5014_v8 = vpop.xlane.xlu1 %5013 }
0x22e1   : > { %7785 = vrcp.f32 %v5014_v8 }
0x22eb   : > { %v7786_v53 = vpop.eup %7785 }
0x22ec   : > { %v5016_v56 = vmul.f32 %v7786_v53, %v7784_v41 }
0x22ee   : > { %7307 = vmatmul.mubr.msk.f32.vlgmr.msra.gmra.mrb[46].mxu0 %vm1591_vm4, %v5016_v56 }
0x22ef   : > { %7489 = vmatpush3.bf16.msra.mxu0 %v9137_v0  ;;  %7322 = vmatprep.mubr.msk.f32.mxu0 %vm8402_vm1, %v8403_v15 }
0x22f0   : > { %7490 = vmatprep.subr.bf16.mxu0 %v8401_v7 }
0x22f3   : > { %7492 = vmatpush3.bf16.msra.mxu0 %v9141_v45 }
0x22f4   : > { %7335 = vmatprep.subr.mxu0 %v8403_v15 }
0x23c1   : > { %v5089_v39 = vpop.f32.mrb[46].mxu0 }
0x23c2   : > { %v7308_v44 = vpop.f32.mrb[47].mxu0  ;;  %7312 = vmatmul.mubr.msk.f32.vlgmr.msra.gmra.mrb[44].mxu1 %vm1591_vm4, %v5089_v39 }
0x23c3   : > { %7326 = vmatpush3.xpose.msk.msra.mxu1 %vm1591_vm4, %v9164_v11  ;;  %7327 = vmatprep.mubr.msk.f32.mxu1 %vm8402_vm1, %v8403_v15 }
0x23c4   : > { %7330 = vmatprep.subr.mxu1 %v8403_v15 }
0x2495   : > { %v5162_v0 = vpop.f32.mrb[44].mxu1 }
0x2496   : > { %v5166_v52 = vadd.f32 %v5162_v0, %v4927_v42  ;;  %v7313_v49 = vpop.f32.mrb[45].mxu1 }
0x2498   : > { %v5167_v12 = vadd.f32 %v7822_v58, %v5166_v52 }
0x249a   : > { %v9507_v45 = vadd.f32 %v5167_v12, %v9377_v1 }
0x249c   : > { %v5169_v61 = vsel %vm1321_vm0, %v9507_v45, 0.0  ;;  %v5172_v62 = vmul.f32 %v9507_v45, %v9507_v45 }
0x249d   : > { %5170 = vadd.xlane.f32.xlu1 %v5169_v61 }
0x249e   : > { %v5173_v11 = vsel %vm1321_vm0, %v5172_v62, 0.0 }
0x24a1   : > { %5174 = vadd.xlane.f32.xlu1 %v5173_v11 }
0x252a   : > { %v5171_v6 = vpop.xlane.xlu1 %5170 }
0x252b   : > { %v5176_v43 = vmul.f32 0.03125, %v5171_v6 }
0x252d   : > { %v5177_v55 = vmul.f32 %v5176_v43, %v5171_v6  ;;  %v5190_v59 = vsub.f32 %v9507_v45, %v5176_v43 }
0x252e   : > { %v5175_v17 = vpop.xlane.xlu1 %5174 }
0x252f   : > { %v5178_v10 = vsub.f32 %v5175_v17, %v5177_v55 }
0x2531   : > { %v5179_v13 = vmul.f32 0.032258064, %v5178_v10 }
0x2533   : > { %v5180_v19 = vmax.f32 %v5179_v13, 0.0 }
0x2535   : > { %7787 = vrsqrt.f32 %v5180_v19  ;;  %vm5183_vm12 = vcmp.eq.f32.partialorder %v5180_v19, inf  ;;  %v5186_v21 = vand.u32 2147483648, %v5180_v19  ;;  %vm5185_vm13 = vcmp.eq.f32.partialorder %v5180_v19, 0.0 }
0x253f   : > { %v7788_v1 = vpop.eup %7787 }
0x2540   : > { %v5182_v20 = vmul.f32 %v7788_v1, %v5180_v19 }
0x2542   : > { %v5184_v25 = vsel %vm5183_vm12, %v5180_v19, %v5182_v20 }
0x2543   : > { %v5187_v27 = vsel %vm5185_vm13, %v5186_v21, %v5184_v25 }
0x2544   : > { %v5188_v30 = vadd.f32 1e-06, %v5187_v27 }
0x2546   : > { %7789 = vrcp.f32 %v5188_v30  ;;  %v7823_v30 = vld [vmem:[%s1115_s16] sm:$0xff]  ;;  %s9796_s16 = sld [smem:[#allocation61_spill]] }
0x2550   : > { %v7790_v31 = vpop.eup %7789 }
0x2551   : > { %v5191_v33 = vmul.f32 %v7790_v31, %v5190_v59 }
0x2553   : > { %v5192_v37 = vmul.f32 %v9154_v2, %v5191_v33 }
0x2555   : > { %v5193_v41 = vadd.f32 %v9157_v4, %v5192_v37 }
0x2557   : > { %7323 = vmatmul.mubr.msk.f32.vlgmr.msra.gmra.mrb[48].mxu0 %vm1321_vm0, %v5193_v41 }
0x2558   : > { %7336 = vmatpush3.xpose.msk.msra.mxu0 %vm1591_vm4, %v9176_v22  ;;  %7337 = vmatprep.mubr.msk.f32.mxu0 %vm8402_vm1, %v8403_v15 }
0x2559   : > { %7345 = vmatprep.subr.mxu0 %v8403_v15 }
0x262a   : > { %v5263_v24 = vpop.f32.mrb[48].mxu0 }
0x262b   : > { %v5264_v34 = vadd.f32 %v9181_v23, %v5263_v24  ;;  %v7324_v42 = vpop.f32.mrb[49].mxu0 }
0x262d   : > { %v9524_v28 = vmul.f32 0.35355338, %v5264_v34 }
0x262f   : > { %5425 = vrot.lane.b32.xlu1 %v9524_v28, %s8404_s22  ;;  %7328 = vmatmul.mubr.msk.f32.vlgmr.msra.gmra.mrb[46].mxu1 %vm1591_vm4, %v9524_v28  ;;  %s9797_s22 = sld [smem:[#allocation65_spill]] }
0x2630   : > { %7331 = vmatpush3.msra.mxu1 %v9192_v32  ;;  %7332 = vmatprep.mubr.msk.f32.mxu1 %vm8402_vm1, %v8403_v15 }
0x2631   : > { %7340 = vmatprep.subr.mxu1 %v8403_v15 }
0x2635   : > { %p9798_p6 = scmp.ne.s32.totalorder %s9797_s22, 0 }
0x26a1   : > { %v5426_v2 = vpop.permute.xlu1 %5425 }
0x26a2   : > { %7338 = vmatmul.mubr.msk.f32.vlgmr.msra.gmra.mrb[50].mxu0 %vm1591_vm4, %v5426_v2 }
0x26a3   : > { %7346 = vmatpush3.msra.mxu0 %v9219_v63  ;;  %7347 = vmatprep.mubr.msk.f32.mxu0 %vm8402_vm1, %v8403_v15 }
0x26a4   : > { %7355 = vmatprep.subr.mxu0 %v8403_v15 }
0x2702   : > { %v5337_v4 = vpop.f32.mrb[46].mxu1 }
0x2703   : > { %v5338_v22 = vadd.f32 %v5337_v4, %v9201_v35  ;;  %v7329_v23 = vpop.f32.mrb[47].mxu1 }
0x2705   : > { %v5341_v32 = vsel %vm1591_vm4, %v5338_v22, -inf }
0x2706   : > { %5342 = vmax.xlane.f32.xlu0 %v5341_v32 }
0x2775   : > { %v5495_v8 = vpop.f32.mrb[50].mxu0 }
0x2776   : > { %v5496_v53 = vadd.f32 %v5495_v8, %v9201_v35  ;;  %v7339_v56 = vpop.f32.mrb[51].mxu0 }
0x2778   : > { %v5499_v39 = vsel %vm1591_vm4, %v5496_v53, -inf }
0x2779   : > { %5500 = vmax.xlane.f32.xlu1 %v5499_v39 }
0x2793   : > { %v5343_v63 = vpop.xlane.xlu0 %5342 }
0x2794   : > { %v5344_v44 = vsub.f32 %v5338_v22, %v5343_v63 }
0x2796   : > { %v5345_v0 = vmul.f32 1.442695, %v5344_v44 }
0x2798   : > { %7791 = vpow2.f32 %v5345_v0 }
0x27a2   : > { %v7792_v52 = vpop.eup %7791 }
0x27a3   : > { %v5347_v49 = vsel %vm1591_vm4, %v7792_v52, 0.0 }
0x27a4   : > { %5348 = vadd.xlane.f32.xlu0 %v5347_v49 }
0x2806   : > { %v5501_v58 = vpop.xlane.xlu1 %5500 }
0x2807   : > { %v5502_v12 = vsub.f32 %v5496_v53, %v5501_v58 }
0x2809   : > { %v5503_v61 = vmul.f32 1.442695, %v5502_v12 }
0x280b   : > { %7793 = vpow2.f32 %v5503_v61 }
0x2815   : > { %v7794_v62 = vpop.eup %7793 }
0x2816   : > { %v5505_v11 = vsel %vm1591_vm4, %v7794_v62, 0.0 }
0x2817   : > { %5506 = vadd.xlane.f32.xlu0 %v5505_v11 }
0x282d   : > { %5729 = vrot.lane.b32.xlu0 %v9524_v28, %s8405_s25  ;;  %s6828_s25 = sshll.u32 %s8599_s11, 7  ;;  %s8407_s11 = smov [#allocation26]  }
0x282e   : > { %s9630_s7 = scalar_lea.hbm %s9796_s16, %s6828_s25 }
0x2831   : > { %v5349_v35 = vpop.xlane.xlu0 %5348 }
0x2832   : > { %7795 = vrcp.f32 %v5349_v35 }
0x283c   : > { %v7796_v6 = vpop.eup %7795 }
0x283d   : > { %v5351_v43 = vmul.f32 %v7796_v6, %v7792_v52 }
0x283f   : > { %7333 = vmatmul.mubr.msk.f32.vlgmr.msra.gmra.mrb[48].mxu1 %vm1591_vm4, %v5351_v43 }
0x2840   : > { %7341 = vmatpush3.msra.mxu1 %v9223_v3  ;;  %7342 = vmatprep.mubr.msk.f32.mxu1 %vm8402_vm1, %v8403_v15 }
0x2841   : > { %7350 = vmatprep.subr.mxu1 %v8403_v15 }
0x28a4   : > { %v5507_v55 = vpop.xlane.xlu0 %5506 }
0x28a5   : > { %7797 = vrcp.f32 %v5507_v55 }
0x28af   : > { %v7798_v17 = vpop.eup %7797 }
0x28b0   : > { %v5509_v10 = vmul.f32 %v7798_v17, %v7794_v62 }
0x28b2   : > { %7343 = vmatmul.mubr.msk.f32.vlgmr.msra.gmra.mrb[50].mxu1 %vm1591_vm4, %v5509_v10 }
0x28b3   : > { %7351 = vmatpush3.msra.mxu1 %v9228_v9  ;;  %7352 = vmatprep.mubr.msk.f32.mxu1 %vm8402_vm1, %v8403_v15  ;;  %v5730_v9 = vpop.permute.xlu0 %5729 }
0x28b4   : > { %7360 = vmatprep.subr.mxu1 %v8403_v15 }
0x2912   : > { %v5421_v13 = vpop.f32.mrb[48].mxu1 }
0x2913   : > { %v7334_v3 = vpop.f32.mrb[49].mxu1  ;;  %7353 = vmatmul.mubr.msk.f32.vlgmr.msra.gmra.mrb[52].mxu1 %vm1591_vm4, %v5421_v13 }
0x2914   : > { %7361 = vmatpush3.msra.mxu1 %v9255_v40  ;;  %7362 = vmatprep.mubr.msk.f32.mxu1 %vm8402_vm1, %v8403_v15 }
0x2915   : > { %7370 = vmatprep.subr.mxu1 %v8403_v15 }
0x2985   : > { %v5579_v19 = vpop.f32.mrb[50].mxu1 }
0x2986   : > { %v7344_v1 = vpop.f32.mrb[51].mxu1  ;;  %7348 = vmatmul.mubr.msk.f32.vlgmr.msra.gmra.mrb[52].mxu0 %vm1591_vm4, %v5579_v19 }
0x2987   : > { %7356 = vmatpush3.xpose.msk.msra.mxu0 %vm1591_vm4, %v9238_v14  ;;  %7357 = vmatprep.mubr.msk.f32.mxu0 %vm8402_vm1, %v8403_v15 }
0x2988   : > { %7365 = vmatprep.subr.mxu0 %v8403_v15 }
0x298a   : > { %7358 = vmatmul.mubr.msk.f32.vlgmr.msra.gmra.mrb[54].mxu0 %vm1591_vm4, %v5730_v9 }
0x298b   : > { %7366 = vmatpush3.msra.mxu0 %v9274_v50  ;;  %7367 = vmatprep.mubr.msk.f32.mxu0 %vm8402_vm1, %v8403_v15 }
0x298c   : > { %7375 = vmatprep.subr.mxu0 %v8403_v15 }
0x29e6   : > { %v5725_v40 = vpop.f32.mrb[52].mxu1 }
0x29e7   : > { %v7354_v20 = vpop.f32.mrb[53].mxu1 }
0x2a59   : > { %v5652_v21 = vpop.f32.mrb[52].mxu0 }
0x2a5a   : > { %v5726_v25 = vadd.f32 %v5725_v40, %v5652_v21  ;;  %v7349_v14 = vpop.f32.mrb[53].mxu0 }
0x2a5d   : > { %v5799_v27 = vpop.f32.mrb[54].mxu0 }
0x2a5e   : > { %v5800_v59 = vadd.f32 %v7823_v30, %v5799_v27  ;;  %v7359_v31 = vpop.f32.mrb[55].mxu0 }
0x2a60   : > { %v5803_v33 = vsel %vm1591_vm4, %v5800_v59, -inf }
0x2a61   : > { %5804 = vmax.xlane.f32.xlu1 %v5803_v33 }
0x2aee   : > { %v5805_v37 = vpop.xlane.xlu1 %5804 }
0x2aef   : > { %v5806_v50 = vsub.f32 %v5800_v59, %v5805_v37 }
0x2af1   : > { %v5807_v41 = vmul.f32 1.442695, %v5806_v50 }
0x2af3   : > { %7799 = vpow2.f32 %v5807_v41 }
0x2afd   : > { %v7800_v24 = vpop.eup %7799 }
0x2afe   : > { %v5809_v34 = vsel %vm1591_vm4, %v7800_v24, 0.0 }
0x2aff   : > { %5810 = vadd.xlane.f32.xlu1 %v5809_v34 }
0x2b10   : > { %5961 = vrot.lane.b32.xlu1 %v9524_v28, %s8406_s9  ;;  %s1254_s9 = scalar_lea.vmem [#allocation26], %s8916_s28  ;;  %s8256_s28 = sshll.u32 %s8407_s11, 4  ;;  %s8257_s28 = int_to_ptr.vmem [resolvable:$false] %s8256_s28 }
0x2b11   : > { %s6420_s3 = sshll.u32 %s1254_s9, 4  ;;  %s9632_s3 = int_to_ptr.vmem [resolvable:$true] %s6420_s3 }
0x2b12   : > { %s8252_s5 = scalar_lea.vmem %s9632_s3, 128  ;;  %p8259_p0 = scmp.lt.s32.totalorder %s9632_s3, %s8257_s28 }
0x2b13   : > { %p8253_p12 = scmp.ne.s32.totalorder %s9632_s3, %s8252_s5 }
0x2b15   : > { %p8254_p7 = pnand %p8253_p12, %p9798_p6 }
0x2b17   : > { %p8255_p2 = pneg %p8254_p7 }
0x2b8c   : > { %v5811_v42 = vpop.xlane.xlu1 %5810 }
0x2b8d   : > { %7801 = vrcp.f32 %v5811_v42 }
0x2b90   : > { %v5962_v22 = vpop.permute.xlu1 %5961 }
0x2b97   : > { %v7802_v2 = vpop.eup %7801 }
0x2b98   : > { %v5813_v4 = vmul.f32 %v7802_v2, %v7800_v24 }
0x2b9a   : > { %7363 = vmatmul.mubr.msk.f32.vlgmr.msra.gmra.mrb[54].mxu1 %vm1591_vm4, %v5813_v4 }
0x2b9b   : > { %7371 = vmatpush3.xpose.msk.msra.mxu1 %vm1591_vm4, %v9262_v47  ;;  %7372 = vmatprep.mubr.msk.f32.mxu1 %vm8402_vm1, %v8403_v15 }
0x2b9c   : > { %7380 = vmatprep.subr.mxu1 %v8403_v15 }
0x2b9e   : > { %7373 = vmatmul.mubr.msk.f32.vlgmr.msra.gmra.mrb[56].mxu1 %vm1591_vm4, %v5962_v22 }
0x2b9f   : > { %7381 = vmatpush3.msra.mxu1 %v9287_v5  ;;  %7382 = vmatprep.mubr.msk.f32.mxu1 %vm8402_vm1, %v8403_v15 }
0x2ba0   : > { %7499 = vmatprep.subr.bf16.mxu1 %v8401_v7 }
0x2c6d   : > { %v5883_v28 = vpop.f32.mrb[54].mxu1 }
0x2c6e   : > { %v7364_v23 = vpop.f32.mrb[55].mxu1  ;;  %7368 = vmatmul.mubr.msk.f32.vlgmr.msra.gmra.mrb[56].mxu0 %vm1591_vm4, %v5883_v28 }
0x2c6f   : > { %7376 = vmatpush3.msra.mxu0 %v9291_v18  ;;  %7377 = vmatprep.mubr.msk.f32.mxu0 %vm8402_vm1, %v8403_v15 }
0x2c70   : > { %7493 = vmatprep.subr.bf16.mxu0 %v8401_v7 }
0x2c71   : > { %v6031_v47 = vpop.f32.mrb[56].mxu1 }
0x2c72   : > { %v6032_v32 = vadd.f32 %v7823_v30, %v6031_v47  ;;  %v7374_v8 = vpop.f32.mrb[57].mxu1 }
0x2c74   : > { %v6035_v5 = vsel %vm1591_vm4, %v6032_v32, -inf }
0x2c75   : > { %6036 = vmax.xlane.f32.xlu0 %v6035_v5 }
0x2d02   : > { %v6037_v53 = vpop.xlane.xlu0 %6036 }
0x2d03   : > { %v6038_v56 = vsub.f32 %v6032_v32, %v6037_v53 }
0x2d05   : > { %v6039_v39 = vmul.f32 1.442695, %v6038_v56  ;;  %v6825_v56 = vld [vmem:[%s8566_s19] ss:$0 sm:$0xff] }
0x2d07   : > { %7803 = vpow2.f32 %v6039_v39 }
0x2d11   : > { %v7804_v63 = vpop.eup %7803 }
0x2d12   : > { %v6041_v44 = vsel %vm1591_vm4, %v7804_v63, 0.0 }
0x2d13   : > { %6042 = vadd.xlane.f32.xlu1 %v6041_v44 }
0x2d41   : > { %v5956_v18 = vpop.f32.mrb[56].mxu0 }
0x2d42   : > { %v5960_v0 = vadd.f32 %v5956_v18, %v5726_v25  ;;  %v7369_v52 = vpop.f32.mrb[57].mxu0 }
0x2da0   : > { %v6043_v49 = vpop.xlane.xlu1 %6042 }
0x2da1   : > { %7805 = vrcp.f32 %v6043_v49 }
0x2dab   : > { %v7806_v58 = vpop.eup %7805 }
0x2dac   : > { %v6045_v12 = vmul.f32 %v7806_v58, %v7804_v63  ;;  %v6826_v63 = vld [vmem:[%s9795_s20] ss:$0 sm:$0xff]  ;;  %s8258_s20 = scalar_lea.vmem %s8257_s28, 256 }
0x2dad   : > { %p8260_p8 = scmp.lt.s32.totalorder %s8258_s20, %s8252_s5 }
0x2dae   : > { %7378 = vmatmul.mubr.msk.f32.vlgmr.msra.gmra.mrb[58].mxu0 %vm1591_vm4, %v6045_v12 }
0x2daf   : > { %7495 = vmatpush3.bf16.msra.mxu0 %v9313_v29  ;;  %7393 = vmatprep.mubr.msk.f32.mxu0 %vm8402_vm1, %v8403_v15  ;;  %p8261_p4 = por %p8260_p8, %p8259_p0 }
0x2db0   : > { %7496 = vmatprep.subr.bf16.mxu0 %v8401_v7 }
0x2db1   : > { %p8262_p9 = pnand %p8261_p4, %p8255_p2 }
0x2db3   : > { %7498 = vmatpush3.bf16.msra.mxu0 %v9316_v46 }
0x2e81   : > { %v6115_v61 = vpop.f32.mrb[58].mxu0 }
0x2e82   : > { %v7379_v62 = vpop.f32.mrb[59].mxu0  ;;  %7383 = vmatmul.mubr.msk.f32.vlgmr.msra.gmra.mrb[58].mxu1 %vm1591_vm4, %v6115_v61 }
0x2e83   : > { %7501 = vmatpush3.bf16.msra.mxu1 %v9324_v54  ;;  %7412 = vmatprep.mubr.msk.f32.mxu1 %vm8402_vm1, %v8403_v15 }
0x2e84   : > { %7502 = vmatprep.subr.bf16.mxu1 %v8401_v7 }
0x2e87   : > { %7504 = vmatpush3.bf16.msra.mxu1 %v9328_v57 }
0x2e88   : > { %7505 = vmatprep.subr.bf16.mxu1 %v8401_v7 }
0x2e8b   : > { %7507 = vmatpush3.bf16.msra.mxu1 %v9334_v60 }
0x2e8c   : > { %7508 = vmatprep.subr.bf16.mxu1 %v8401_v7 }
0x2e8f   : > { %7510 = vmatpush3.bf16.msra.mxu1 %v9357_v48 }
0x2f55   : > { %v6188_v29 = vpop.f32.mrb[58].mxu1 }
0x2f56   : > { %v6192_v46 = vadd.f32 %v6188_v29, %v5960_v0  ;;  %v7384_v11 = vpop.f32.mrb[59].mxu1 }
0x2f58   : > { %v6193_v54 = vadd.f32 %v9302_v26, %v6192_v46 }
0x2f5a   : > { %v6194_v35 = vadd.f32 %v6193_v54, %v9507_v45 }
0x2f5c   : > { %v6195_v15 = vsel %vm1321_vm0, %v6194_v35, 0.0  ;;  %v6198_v6 = vmul.f32 %v6194_v35, %v6194_v35 }
0x2f5d   : > { %6196 = vadd.xlane.f32.xlu0 %v6195_v15 }
0x2f5e   : > { %v6199_v57 = vsel %vm1321_vm0, %v6198_v6, 0.0 }
0x2f61   : > { %6200 = vadd.xlane.f32.xlu0 %v6199_v57 }
0x2fea   : > { %v6197_v43 = vpop.xlane.xlu0 %6196 }
0x2feb   : > { %v6202_v60 = vmul.f32 0.03125, %v6197_v43 }
0x2fed   : > { %v6203_v55 = vmul.f32 %v6202_v60, %v6197_v43  ;;  %v6216_v9 = vsub.f32 %v6194_v35, %v6202_v60 }
0x2fee   : > { %v6201_v7 = vpop.xlane.xlu0 %6200 }
0x2fef   : > { %v6204_v17 = vsub.f32 %v6201_v7, %v6203_v55 }
0x2ff1   : > { %v6205_v48 = vmul.f32 0.032258064, %v6204_v17 }
0x2ff3   : > { %v6206_v10 = vmax.f32 %v6205_v48, 0.0 }
0x2ff5   : > { %7807 = vrsqrt.f32 %v6206_v10  ;;  %vm6209_vm14 = vcmp.eq.f32.partialorder %v6206_v10, inf  ;;  %v6212_v26 = vand.u32 2147483648, %v6206_v10  ;;  %vm6211_vm15 = vcmp.eq.f32.partialorder %v6206_v10, 0.0 }
0x2fff   : > { %v7808_v13 = vpop.eup %7807 }
0x3000   : > { %v6208_v3 = vmul.f32 %v7808_v13, %v6206_v10 }
0x3002   : > { %v6210_v45 = vsel %vm6209_vm14, %v6206_v10, %v6208_v3 }
0x3003   : > { %v6213_v19 = vsel %vm6211_vm15, %v6212_v26, %v6210_v45 }
0x3004   : > { %v6214_v1 = vadd.f32 1e-06, %v6213_v19 }
0x3006   : > { %7809 = vrcp.f32 %v6214_v1 }
0x3010   : > { %v7810_v40 = vpop.eup %7809 }
0x3011   : > { %v6217_v20 = vmul.f32 %v7810_v40, %v6216_v9 }
0x3013   : > { %v6218_v21 = vmul.f32 %v9341_v36, %v6217_v20 }
0x3015   : > { %v6219_v25 = vadd.f32 %v9344_v38, %v6218_v21 }
0x3017   : > { %7394 = vmatmul.mubr.msk.f32.vlgmr.msra.gmra.mrb[60].mxu0 %vm1321_vm0, %v6219_v25 }
0x30ea   : > { %v6289_v14 = vpop.f32.mrb[60].mxu0 }
0x30eb   : > { %v6290_v27 = vadd.f32 %v9362_v51, %v6289_v14  ;;  %v7395_v30 = vpop.f32.mrb[61].mxu0 }
0x30ed   : > { %v6293_v59 = vmax.f32 %v6290_v27, 0.0 }
0x30ef   : > { %7413 = vmatmul.mubr.msk.f32.vlgmr.msra.gmra.mrb[60].mxu1 %vm3903_vm9, %v6293_v59 }
0x31c2   : > { %v6363_v31 = vpop.f32.mrb[60].mxu1 }
0x31c3   : > { %v6364_v33 = vadd.f32 %v9373_v16, %v6363_v31  ;;  %v7414_v37 = vpop.f32.mrb[61].mxu1 }
0x31c5   : > { %v6367_v50 = vadd.f32 %v6364_v33, %v6194_v35 }
0x31c7   : > { %v6368_v41 = vsel %vm1321_vm0, %v6367_v50, 0.0  ;;  %v6371_v24 = vmul.f32 %v6367_v50, %v6367_v50 }
0x31c8   : > { %6369 = vadd.xlane.f32.xlu0 %v6368_v41 }
0x31c9   : > { %v6372_v36 = vsel %vm1321_vm0, %v6371_v24, 0.0 }
0x31cc   : > { %6373 = vadd.xlane.f32.xlu0 %v6372_v36 }
0x3255   : > { %v6370_v38 = vpop.xlane.xlu0 %6369 }
0x3256   : > { %v6375_v34 = vmul.f32 0.03125, %v6370_v38 }
0x3258   : > { %v6376_v42 = vmul.f32 %v6375_v34, %v6370_v38  ;;  %v6389_v5 = vsub.f32 %v6367_v50, %v6375_v34 }
0x3259   : > { %v6374_v51 = vpop.xlane.xlu0 %6373 }
0x325a   : > { %v6377_v2 = vsub.f32 %v6374_v51, %v6376_v42 }
0x325c   : > { %v6378_v4 = vmul.f32 0.032258064, %v6377_v2 }
0x325e   : > { %v6379_v22 = vmax.f32 %v6378_v4, 0.0 }
0x3260   : > { %7811 = vrsqrt.f32 %v6379_v22  ;;  %vm6382_vm1 = vcmp.eq.f32.partialorder %v6379_v22, inf  ;;  %v6385_v23 = vand.u32 2147483648, %v6379_v22  ;;  %vm6384_vm2 = vcmp.eq.f32.partialorder %v6379_v22, 0.0 }
0x326a   : > { %v7812_v16 = vpop.eup %7811 }
0x326b   : > { %v6381_v28 = vmul.f32 %v7812_v16, %v6379_v22 }
0x326d   : > { %v6383_v47 = vsel %vm6382_vm1, %v6379_v22, %v6381_v28 }
0x326e   : > { %v6386_v32 = vsel %vm6384_vm2, %v6385_v23, %v6383_v47 }
0x326f   : > { %v6387_v8 = vadd.f32 1e-06, %v6386_v32 }
0x3271   : > { %7813 = vrcp.f32 %v6387_v8 }
0x327b   : > { %v7814_v53 = vpop.eup %7813 }
0x327c   : > { %v6390_v39 = vmul.f32 %v7814_v53, %v6389_v5 }
0x327e   : > { %v6397_v44 = vmul.f32 %v6825_v56, %v6390_v39 }
0x3280   : > { %v6404_v18 = vadd.f32 %v6826_v63, %v6397_v44 }
0x3282   : > { %6405 = vst.msk [vmem:[%s1254_s9] sm:$0xff] %vm1321_vm0, %v6404_v18 }
0x3283   : > { %8265 = shalt.err (!%p8262_p9)
}
0x3284   : > { %s8266_s10 = scalar_lea.hbm %s9630_s7, 128  ;;  %s8270_s25 = scalar_lea.hbm %s9796_s16, 256 }
0x3285   : > { %p8267_p13 = scmp.ne.s32.totalorder %s9630_s7, %s8266_s10  ;;  %p8271_p11 = scmp.lt.u32.totalorder %s9630_s7, %s9796_s16 }
0x3286   : > { %p8272_p1 = scmp.lt.u32.totalorder %s8270_s25, %s8266_s10  ;;  %p8274_p12 = scmp.lt.u32.totalorder %s8266_s10, %s9630_s7 }
0x3287   : > { %p8268_p5 = pnand %p8267_p13, %p9798_p6 }
0x3288   : > { %p8273_p3 = por %p8272_p1, %p8271_p11 }
0x3289   : > { %p8269_p10 = pneg %p8268_p5 }
0x328a   : > { %p8275_p7 = por %p8274_p12, %p8273_p3 }
0x328c   : > { %p8276_p2 = pnand %p8275_p7, %p8269_p10 }
0x328e   : > { %8279 = shalt.err (!%p8276_p2)
}
0x328f   : > { %7563 = dma.vmem_to_hbm [thread:$0]  (%p9798_p6), %s9632_s3, 128, %s9630_s7, %s6407_s4  }
0x3290 PF: > { %s9799_s5 = sld [smem:[#allocation62_spill]]  ;;  %s9800_s9 = sld [smem:[#allocation66_spill]] }
0x3291   : > { %p9802_p8 = scmp.ge.s32.totalorder %s8350_s0, 2 }
0x3296   : > { %s6432_s11 = sand.u32 1, %s9799_s5   ;;  %p9801_p0 = scmp.ne.s32.totalorder %s9800_s9, 0 }
0x3297   : > { %s6433_s28 = scalar_lea.sflag [#allocation4], %s6432_s11 }
0x3298   : > { %p7613_p4 = pnand %p9802_p8, %p9801_p0 }
0x329a   : > { %8333 = dma.done.wait (!%p7613_p4), %s6433_s28, 128  }
0x329b   : > { %8335 = vsyncadd (!%p7613_p4), %s6433_s28, 4294967168  ;;  %s9803_s0 = sld [smem:[#allocation63_spill]]  ;;  %s9804_s20 = sld [smem:[#allocation64_spill]] }
0x329c   : > { %s9805_s28 = smov %s8342_s1  ;;  %s9806_s1 = smov %s8346_s2 }
0x32a1   : > { %p89_p9 = scmp.ge.s32.totalorder %s9803_s0, 4   ;;  %s9807_s2 = smov %s9804_s20 }
0x32a3   :  { %91 = sbr.rel (!%p89_p9) target bundleno = 79 (0x4f), region = 306 }
0x32aa   :  { %6438 = vsyncpa [#allocation3], 1 }
0x32ab   :  { %6440 = vsyncpa [#allocation3 + $0x1], 1 }
0x32ac   :  { %6441 = vsyncpa [#allocation6], 1 }
0x32ad   :  { %6443 = vsyncpa [#allocation6 + $0x1], 1 }
0x32ae   :  { %6444 = vsyncpa [#allocation9], 1 }
0x32af   :  { %6446 = vsyncpa [#allocation9 + $0x1], 1 }
0x32b0   :  { %6447 = vsyncpa [#allocation12], 1 }
0x32b1   :  { %6448 = vsyncpa [#allocation15], 1 }
0x32b2   :  { %6449 = vsyncpa [#allocation18], 1 }
0x32b3   :  { %6450 = vsyncpa [#allocation21], 1 }
0x32b4   :  { %6451 = vsyncpa [#allocation24], 1 }
0x32b5   :  { %6452 = vsyncpa [#allocation4], 1 }
0x32b6   :  { %6454 = vsyncpa [#allocation4 + $0x1], 1 }

</bundles_post_ra>
